<compile_context>
chip_gen: v5e
topology: v5e:2x2
jax: 0.10.0
libtpu: 0.0.40
codegen_flags: <defaults>
</compile_context>

<pallas_src>
import functools

import jax
import jax.numpy as jnp
import numpy as np
from jax.experimental import pallas as pl
from jax.experimental.pallas import tpu as pltpu

NEG_SLOPE = 0.1   # LeakyReLU(0.1)
BN_EPS = 1e-5     # nn.BatchNorm1d default eps


# ---------------------------------------------------------------------------
# Pallas kernel
# ---------------------------------------------------------------------------
def _inertial_kernel(x_ref, w1_ref, b1_ref, w2_ref, b2_ref, w3_ref, b3_ref,
                     wp_ref, bp_ref, o_ref, h1_ref, h2_ref, *, L, nb):
    R = nb * L                                     # rows in this block (time-major)

    def lrelu(y):
        return jnp.where(y > 0.0, y, NEG_SLOPE * y)

    # ---- Layer 1: taps pre-concatenated host-side -> single K=45 matmul ----
    y1 = (jnp.dot(x_ref[...], w1_ref[...], preferred_element_type=jnp.float32)
          + b1_ref[...])                           # (R, 64) f32
    h1 = lrelu(y1).astype(jnp.bfloat16)            # cast once per layer

    # Zero-halo slab: rows [0, nb) and [nb+R, nb+R+nb) stay zero ("same" pad);
    # taps become static, 16-row-aligned sublane slices (nb % 16 == 0).
    h1_ref[pl.ds(0, nb), :] = jnp.zeros((nb, h1_ref.shape[1]), jnp.bfloat16)
    h1_ref[pl.ds(nb + R, nb), :] = jnp.zeros((nb, h1_ref.shape[1]), jnp.bfloat16)
    h1_ref[pl.ds(nb, R), :] = h1

    # ---- Layer 2: fuse the 3 taps into one K=192 matmul via lane concat ----
    cat2 = jnp.concatenate(
        [h1_ref[pl.ds(0, R), :],          # prev timestep
         h1_ref[pl.ds(nb, R), :],         # current
         h1_ref[pl.ds(2 * nb, R), :]],    # next
        axis=-1)                                   # (R, 192) bf16
    y2 = (jnp.dot(cat2, w2_ref[...], preferred_element_type=jnp.float32)
          + b2_ref[...])                           # (R, 128) f32
    h2 = lrelu(y2).astype(jnp.bfloat16)

    h2_ref[pl.ds(0, nb), :] = jnp.zeros((nb, h2_ref.shape[1]), jnp.bfloat16)
    h2_ref[pl.ds(nb + R, nb), :] = jnp.zeros((nb, h2_ref.shape[1]), jnp.bfloat16)
    h2_ref[pl.ds(nb, R), :] = h2

    # ---- Layer 3: K=128 per tap already fills MXU well -> 3 dots on slices ----
    y3 = (jnp.dot(h2_ref[pl.ds(0, R), :], w3_ref[0],
                  preferred_element_type=jnp.float32)
          + jnp.dot(h2_ref[pl.ds(nb, R), :], w3_ref[1],
                    preferred_element_type=jnp.float32)
          + jnp.dot(h2_ref[pl.ds(2 * nb, R), :], w3_ref[2],
                    preferred_element_type=jnp.float32)
          + b3_ref[...])                           # (R, 256) f32
    # TODO(synk): Dropout is stochastic only in training; eval mode => identity.
    h3 = lrelu(y3).astype(jnp.bfloat16)            # cast once, reused by all slices

    # ---- Projection (channel-major flatten + Linear), time-major slices ----
    #   out[n, d] = sum_t h3[t*nb + n, :] @ wp[t, :, d] + bp[d]
    acc = (jnp.dot(h3[0:nb, :], wp_ref[0], preferred_element_type=jnp.float32)
           + bp_ref[...])                          # init from bias
    for t in range(1, L):                          # unrolled, L small (e.g. 11)
        acc += jnp.dot(h3[t * nb:(t + 1) * nb, :], wp_ref[t],
                       preferred_element_type=jnp.float32)
    o_ref[...] = acc.astype(o_ref.dtype)


# ---------------------------------------------------------------------------
# Wrapper
# ---------------------------------------------------------------------------
def _pick_nb(N, max_nb=512, min_grid=1):
    """Largest multiple of 16 dividing N (capped at max_nb).

    min_grid=1: single-TC parts (v5e/v6e) -- biggest nb wins, grid=1 is fine.
    min_grid=2: v7x -- keep >=2 grid steps so "parallel" shards across both TCs.
    """
    assert N % 16 == 0, "B*S must be a multiple of 16"
    best = 16
    for nb in range(16, min(max_nb, N) + 1, 16):
        if N % nb == 0 and (N // nb) >= min_grid:
            best = nb
    return best


def inertial_encoder_forward(x, params, *, nb=None, min_grid=1):
    """x: (B, S, L, 15) float32 -> (B, S, i_f_len) float32."""
    B, S, L, C0 = x.shape
    N = B * S
    if nb is None:
        nb = _pick_nb(N, min_grid=min_grid)
    assert N % nb == 0 and nb % 16 == 0, "nb must be a multiple of 16 dividing B*S"
    # TODO(synk): general (non-divisible / odd) B*S needs a padded remainder step.
    G = N // nb
    R = nb * L

    w1, b1, w2, b2, w3, b3, wp, bp = params
    D = wp.shape[-1]

    # Glue 1: pre-concatenate the k=3 taps (zero "same" padding) -> (N, L, 45).
    x3 = x.reshape(N, L, C0)
    xprev = jnp.pad(x3, ((0, 0), (1, 0), (0, 0)))[:, :L, :]   # x[t-1], 0 at t=0
    xnext = jnp.pad(x3, ((0, 0), (0, 1), (0, 0)))[:, 1:, :]   # x[t+1], 0 at t=L-1
    xcat = jnp.concatenate([xprev, x3, xnext], axis=-1)       # (N, L, 3*C0)

    # Glue 2: time-major row layout per block of nb samples, shipped as bf16:
    #   (N, L, 3C0) -> (G, nb, L, 3C0) -> (G, L, nb, 3C0) -> (G*L*nb, 3C0)
    xf = (xcat.reshape(G, nb, L, 3 * C0)
              .transpose(0, 2, 1, 3)
              .reshape(G * R, 3 * C0)
              .astype(jnp.bfloat16))

    def _resident(arr):
        nd = arr.ndim
        return pl.BlockSpec(arr.shape, lambda g, _nd=nd: (0,) * _nd)

    out = pl.pallas_call(
        functools.partial(_inertial_kernel, L=L, nb=nb),
        out_shape=jax.ShapeDtypeStruct((N, D), jnp.float32),
        grid_spec=pltpu.PrefetchScalarGridSpec(
            num_scalar_prefetch=0,
            grid=(G,),
            in_specs=[
                pl.BlockSpec((R, 3 * C0), lambda g: (g, 0)),
                _resident(w1), _resident(b1),
                _resident(w2), _resident(b2),
                _resident(w3), _resident(b3),
                _resident(wp), _resident(bp),
            ],
            out_specs=pl.BlockSpec((nb, D), lambda g: (g, 0)),
            scratch_shapes=[
                pltpu.VMEM((R + 2 * nb, 64), jnp.bfloat16),    # layer-1 halo slab
                pltpu.VMEM((R + 2 * nb, 128), jnp.bfloat16),   # layer-2 halo slab
            ],
        ),
        compiler_params=pltpu.CompilerParams(dimension_semantics=("parallel",)),
    )(xf, w1, b1, w2, b2, w3, b3, wp, bp)

    return out.reshape(B, S, D)


# ---------------------------------------------------------------------------
# Deterministic synthetic parameters (PyTorch-layout), + fold for the kernel
# ---------------------------------------------------------------------------
def make_raw_params(key, L, i_f_len):
    chans = [15, 64, 128, 256]
    keys = iter(jax.random.split(key, 24))
    raw = {}
    for i in range(3):
        cin, cout = chans[i], chans[i + 1]
        raw[f'conv{i}_w'] = jax.random.normal(next(keys), (cout, cin, 3),
                                              jnp.float32) / np.sqrt(cin * 3)
        raw[f'conv{i}_b'] = 0.05 * jax.random.normal(next(keys), (cout,), jnp.float32)
        raw[f'bn{i}_gamma'] = 1.0 + 0.1 * jax.random.normal(next(keys), (cout,), jnp.float32)
        raw[f'bn{i}_beta'] = 0.1 * jax.random.normal(next(keys), (cout,), jnp.float32)
        raw[f'bn{i}_mean'] = 0.1 * jax.random.normal(next(keys), (cout,), jnp.float32)
        raw[f'bn{i}_var'] = jax.random.uniform(next(keys), (cout,), jnp.float32, 0.5, 1.5)
    raw['proj_w'] = jax.random.normal(next(keys), (i_f_len, 256 * L),
                                      jnp.float32) / np.sqrt(256 * L)
    raw['proj_b'] = 0.05 * jax.random.normal(next(keys), (i_f_len,), jnp.float32)
    return raw


def fold_params(raw, L, i_f_len):
    """Fold BN into conv weights; tap-major fused layouts; bf16 matmul operands."""
    folded = []
    for i in range(3):
        w = raw[f'conv{i}_w']                       # (Cout, Cin, 3) PyTorch layout
        b = raw[f'conv{i}_b']
        scale = raw[f'bn{i}_gamma'] / jnp.sqrt(raw[f'bn{i}_var'] + BN_EPS)
        shift = raw[f'bn{i}_beta'] - raw[f'bn{i}_mean'] * scale
        wk = jnp.transpose(w, (2, 1, 0)) * scale[None, None, :]   # (3, Cin, Cout)
        if i < 2:
            # Layers 1 & 2: tap-major fused weight for the concatenated taps:
            # rows [0:Cin)=prev(k=0), [Cin:2Cin)=cur(k=1), [2Cin:3Cin)=next(k=2).
            wk = wk.reshape(3 * wk.shape[1], wk.shape[2])          # (3*Cin, Cout)
        wk = wk.astype(jnp.bfloat16)
        bk = (b * scale + shift).reshape(1, -1).astype(jnp.float32)
        folded += [wk, bk]
    # PyTorch flattens (N, 256, L) channel-major: flat[:, c*L + t] = h[:, c, t]
    wp = raw['proj_w'].reshape(i_f_len, 256, L).transpose(2, 1, 0).astype(jnp.bfloat16)
    bp = raw['proj_b'].reshape(1, -1).astype(jnp.float32)
    folded += [wp, bp]
    return tuple(folded)


# ---------------------------------------------------------------------------
# Pure-JAX reference that follows the PyTorch module literally (eval mode)
# ---------------------------------------------------------------------------
def ref_forward(x, raw):
    B, S, L, C0 = x.shape
    h = x.reshape(B * S, L, C0).transpose(0, 2, 1)          # (N, Cin, L)  NCW
    for i in range(3):
        w, b = raw[f'conv{i}_w'], raw[f'conv{i}_b']
        h = jax.lax.conv_general_dilated(
            h, w, window_strides=(1,), padding=((1, 1),),
            dimension_numbers=('NCH', 'OIH', 'NCH'),
            precision=jax.lax.Precision.HIGHEST) + b[None, :, None]
        scale = raw[f'bn{i}_gamma'] / jnp.sqrt(raw[f'bn{i}_var'] + BN_EPS)
        shift = raw[f'bn{i}_beta'] - raw[f'bn{i}_mean'] * scale
        h = h * scale[None, :, None] + shift[None, :, None]
        h = jnp.where(h > 0, h, NEG_SLOPE * h)               # Dropout = identity (eval)
    flat = h.reshape(h.shape[0], -1)                         # channel-major flatten
    out = flat @ raw['proj_w'].T + raw['proj_b']
    return out.reshape(B, S, -1)


# ---------------------------------------------------------------------------
if __name__ == "__main__":
    B, S = 2, 8
    skip_frames = 1
    L = skip_frames * 10 + 1          # 11 IMU samples per frame pair
    i_f_len = 128

    key = jax.random.PRNGKey(0)
    kx, kp = jax.random.split(key)
    x = jax.random.normal(kx, (B, S, L, 15), jnp.float32)

    raw = make_raw_params(kp, L, i_f_len)
    params = fold_params(raw, L, i_f_len)

    out = inertial_encoder_forward(x, params)
    out = jax.block_until_ready(out)

    assert out.shape == (B, S, i_f_len), out.shape
    ref = ref_forward(x, raw)
    max_err = float(jnp.max(jnp.abs(out - ref)))
    # Kernel uses bf16 MXU operands (f32 accumulation) vs the f32
    # Precision.HIGHEST reference, so allow a slightly wider band than 1e-2.
    if not bool(jnp.allclose(out, ref, atol=2e-2, rtol=2e-2)):
        raise AssertionError(f"Pallas kernel mismatch vs reference, max abs err={max_err}")

    print("KERNEL_OK")
</pallas_src>

<mosaic_0001>
module attributes {stable_mosaic.version = 11 : i64} {
  func.func @_inertial_kernel(%arg0: i32, %arg1: memref<176x45xbf16, #tpu.memory_space<vmem>>, %arg2: memref<45x64xbf16, #tpu.memory_space<vmem>>, %arg3: memref<1x64xf32, #tpu.memory_space<vmem>>, %arg4: memref<192x128xbf16, #tpu.memory_space<vmem>>, %arg5: memref<1x128xf32, #tpu.memory_space<vmem>>, %arg6: memref<3x128x256xbf16, #tpu.memory_space<vmem>>, %arg7: memref<1x256xf32, #tpu.memory_space<vmem>>, %arg8: memref<11x256x128xbf16, #tpu.memory_space<vmem>>, %arg9: memref<1x128xf32, #tpu.memory_space<vmem>>, %arg10: memref<16x128xf32, #tpu.memory_space<vmem>>, %arg11: memref<208x64xbf16, #tpu.memory_space<vmem>>, %arg12: memref<208x128xbf16, #tpu.memory_space<vmem>>) attributes {dimension_semantics = [#tpu.dimension_semantics<parallel>], iteration_bounds = array<i64: 1>, scalar_prefetch = 0 : i64, scratch_operands = 2 : i64, tpu.core_type = #tpu.core_type<tc>, window_params = [{transform_indices = @transform_0, window_bounds = array<i64: 176, 45>}, {pipeline_mode = #tpu.pipeline_mode<synchronous>, transform_indices = @transform_1, window_bounds = array<i64: 45, 64>}, {pipeline_mode = #tpu.pipeline_mode<synchronous>, transform_indices = @transform_2, window_bounds = array<i64: 1, 64>}, {pipeline_mode = #tpu.pipeline_mode<synchronous>, transform_indices = @transform_3, window_bounds = array<i64: 192, 128>}, {pipeline_mode = #tpu.pipeline_mode<synchronous>, transform_indices = @transform_4, window_bounds = array<i64: 1, 128>}, {pipeline_mode = #tpu.pipeline_mode<synchronous>, transform_indices = @transform_5, window_bounds = array<i64: 3, 128, 256>}, {pipeline_mode = #tpu.pipeline_mode<synchronous>, transform_indices = @transform_6, window_bounds = array<i64: 1, 256>}, {pipeline_mode = #tpu.pipeline_mode<synchronous>, transform_indices = @transform_7, window_bounds = array<i64: 11, 256, 128>}, {pipeline_mode = #tpu.pipeline_mode<synchronous>, transform_indices = @transform_8, window_bounds = array<i64: 1, 128>}, {transform_indices = @transform_9, window_bounds = array<i64: 16, 128>}]} {
    %c0 = arith.constant 0 : index
    %c0_0 = arith.constant 0 : index
    %0 = vector.load %arg1[%c0, %c0_0] : memref<176x45xbf16, #tpu.memory_space<vmem>>, vector<176x45xbf16>
    %c0_1 = arith.constant 0 : index
    %c0_2 = arith.constant 0 : index
    %1 = vector.load %arg2[%c0_1, %c0_2] : memref<45x64xbf16, #tpu.memory_space<vmem>>, vector<45x64xbf16>
    %cst = arith.constant dense<0.000000e+00> : vector<176x64xf32>
    %2 = tpu.matmul %0, %1, %cst {dimension_numbers = #tpu.dot_dimension_numbers<[1], [0], [0], [1], [0, 0, 1, 1], [], []>} : vector<176x45xbf16>, vector<45x64xbf16>, vector<176x64xf32> -> vector<176x64xf32>
    %c0_3 = arith.constant 0 : index
    %c0_4 = arith.constant 0 : index
    %3 = vector.load %arg3[%c0_3, %c0_4] : memref<1x64xf32, #tpu.memory_space<vmem>>, vector<1x64xf32>
    %4 = vector.broadcast %3 : vector<1x64xf32> to vector<176x64xf32>
    %5 = arith.addf %2, %4 : vector<176x64xf32>
    %cst_5 = arith.constant 0.000000e+00 : f32
    %6 = vector.broadcast %cst_5 : f32 to vector<176x64xf32>
    %7 = arith.cmpf ogt, %5, %6 : vector<176x64xf32>
    %cst_6 = arith.constant 1.000000e-01 : f32
    %8 = vector.broadcast %cst_6 : f32 to vector<176x64xf32>
    %9 = arith.mulf %8, %5 : vector<176x64xf32>
    %10 = arith.select %7, %5, %9 : vector<176x64xi1>, vector<176x64xf32>
    %11 = arith.truncf %10 : vector<176x64xf32> to vector<176x64xbf16>
    %cst_7 = arith.constant 0.000000e+00 : bf16
    %12 = vector.broadcast %cst_7 : bf16 to vector<16x64xbf16>
    %c0_8 = arith.constant 0 : index
    %c0_9 = arith.constant 0 : index
    %13 = vector.load %arg11[%c0_8, %c0_9] : memref<208x64xbf16, #tpu.memory_space<vmem>>, vector<16x64xbf16>
    tpu.vector_store %arg11[%c0_8, %c0_9], %12 {strides = array<i32>} : memref<208x64xbf16, #tpu.memory_space<vmem>>, vector<16x64xbf16>,
    %cst_10 = arith.constant 0.000000e+00 : bf16
    %14 = vector.broadcast %cst_10 : bf16 to vector<16x64xbf16>
    %c192 = arith.constant 192 : index
    %c0_11 = arith.constant 0 : index
    %15 = vector.load %arg11[%c192, %c0_11] : memref<208x64xbf16, #tpu.memory_space<vmem>>, vector<16x64xbf16>
    tpu.vector_store %arg11[%c192, %c0_11], %14 {strides = array<i32>} : memref<208x64xbf16, #tpu.memory_space<vmem>>, vector<16x64xbf16>,
    %c16 = arith.constant 16 : index
    %c0_12 = arith.constant 0 : index
    %16 = vector.load %arg11[%c16, %c0_12] : memref<208x64xbf16, #tpu.memory_space<vmem>>, vector<176x64xbf16>
    tpu.vector_store %arg11[%c16, %c0_12], %11 {strides = array<i32>} : memref<208x64xbf16, #tpu.memory_space<vmem>>, vector<176x64xbf16>,
    %c0_13 = arith.constant 0 : index
    %c0_14 = arith.constant 0 : index
    %17 = vector.load %arg11[%c0_13, %c0_14] : memref<208x64xbf16, #tpu.memory_space<vmem>>, vector<176x64xbf16>
    %c16_15 = arith.constant 16 : index
    %c0_16 = arith.constant 0 : index
    %18 = vector.load %arg11[%c16_15, %c0_16] : memref<208x64xbf16, #tpu.memory_space<vmem>>, vector<176x64xbf16>
    %c32 = arith.constant 32 : index
    %c0_17 = arith.constant 0 : index
    %19 = vector.load %arg11[%c32, %c0_17] : memref<208x64xbf16, #tpu.memory_space<vmem>>, vector<176x64xbf16>
    %20 = tpu.concatenate %17, %18, %19 in 1 : vector<176x64xbf16>, vector<176x64xbf16>, vector<176x64xbf16> -> vector<176x192xbf16>
    %c0_18 = arith.constant 0 : index
    %c0_19 = arith.constant 0 : index
    %21 = vector.load %arg4[%c0_18, %c0_19] : memref<192x128xbf16, #tpu.memory_space<vmem>>, vector<192x128xbf16>
    %cst_20 = arith.constant dense<0.000000e+00> : vector<176x128xf32>
    %22 = tpu.matmul %20, %21, %cst_20 {dimension_numbers = #tpu.dot_dimension_numbers<[1], [0], [0], [1], [0, 0, 1, 1], [], []>} : vector<176x192xbf16>, vector<192x128xbf16>, vector<176x128xf32> -> vector<176x128xf32>
    %c0_21 = arith.constant 0 : index
    %c0_22 = arith.constant 0 : index
    %23 = vector.load %arg5[%c0_21, %c0_22] : memref<1x128xf32, #tpu.memory_space<vmem>>, vector<1x128xf32>
    %24 = vector.broadcast %23 : vector<1x128xf32> to vector<176x128xf32>
    %25 = arith.addf %22, %24 : vector<176x128xf32>
    %cst_23 = arith.constant 0.000000e+00 : f32
    %26 = vector.broadcast %cst_23 : f32 to vector<176x128xf32>
    %27 = arith.cmpf ogt, %25, %26 : vector<176x128xf32>
    %cst_24 = arith.constant 1.000000e-01 : f32
    %28 = vector.broadcast %cst_24 : f32 to vector<176x128xf32>
    %29 = arith.mulf %28, %25 : vector<176x128xf32>
    %30 = arith.select %27, %25, %29 : vector<176x128xi1>, vector<176x128xf32>
    %31 = arith.truncf %30 : vector<176x128xf32> to vector<176x128xbf16>
    %cst_25 = arith.constant 0.000000e+00 : bf16
    %32 = vector.broadcast %cst_25 : bf16 to vector<16x128xbf16>
    %c0_26 = arith.constant 0 : index
    %c0_27 = arith.constant 0 : index
    %33 = vector.load %arg12[%c0_26, %c0_27] : memref<208x128xbf16, #tpu.memory_space<vmem>>, vector<16x128xbf16>
    tpu.vector_store %arg12[%c0_26, %c0_27], %32 {strides = array<i32>} : memref<208x128xbf16, #tpu.memory_space<vmem>>, vector<16x128xbf16>,
    %cst_28 = arith.constant 0.000000e+00 : bf16
    %34 = vector.broadcast %cst_28 : bf16 to vector<16x128xbf16>
    %c192_29 = arith.constant 192 : index
    %c0_30 = arith.constant 0 : index
    %35 = vector.load %arg12[%c192_29, %c0_30] : memref<208x128xbf16, #tpu.memory_space<vmem>>, vector<16x128xbf16>
    tpu.vector_store %arg12[%c192_29, %c0_30], %34 {strides = array<i32>} : memref<208x128xbf16, #tpu.memory_space<vmem>>, vector<16x128xbf16>,
    %c16_31 = arith.constant 16 : index
    %c0_32 = arith.constant 0 : index
    %36 = vector.load %arg12[%c16_31, %c0_32] : memref<208x128xbf16, #tpu.memory_space<vmem>>, vector<176x128xbf16>
    tpu.vector_store %arg12[%c16_31, %c0_32], %31 {strides = array<i32>} : memref<208x128xbf16, #tpu.memory_space<vmem>>, vector<176x128xbf16>,
    %c0_33 = arith.constant 0 : index
    %c0_34 = arith.constant 0 : index
    %37 = vector.load %arg12[%c0_33, %c0_34] : memref<208x128xbf16, #tpu.memory_space<vmem>>, vector<176x128xbf16>
    %c0_35 = arith.constant 0 : index
    %c0_36 = arith.constant 0 : index
    %c0_37 = arith.constant 0 : index
    %38 = vector.load %arg6[%c0_35, %c0_36, %c0_37] : memref<3x128x256xbf16, #tpu.memory_space<vmem>>, vector<1x128x256xbf16>
    %39 = vector.shape_cast %38 : vector<1x128x256xbf16> to vector<128x256xbf16>
    %cst_38 = arith.constant dense<0.000000e+00> : vector<176x256xf32>
    %40 = tpu.matmul %37, %39, %cst_38 {dimension_numbers = #tpu.dot_dimension_numbers<[1], [0], [0], [1], [0, 0, 1, 1], [], []>} : vector<176x128xbf16>, vector<128x256xbf16>, vector<176x256xf32> -> vector<176x256xf32>
    %c16_39 = arith.constant 16 : index
    %c0_40 = arith.constant 0 : index
    %41 = vector.load %arg12[%c16_39, %c0_40] : memref<208x128xbf16, #tpu.memory_space<vmem>>, vector<176x128xbf16>
    %c1 = arith.constant 1 : index
    %c0_41 = arith.constant 0 : index
    %c0_42 = arith.constant 0 : index
    %42 = vector.load %arg6[%c1, %c0_41, %c0_42] : memref<3x128x256xbf16, #tpu.memory_space<vmem>>, vector<1x128x256xbf16>
    %43 = vector.shape_cast %42 : vector<1x128x256xbf16> to vector<128x256xbf16>
    %cst_43 = arith.constant dense<0.000000e+00> : vector<176x256xf32>
    %44 = tpu.matmul %41, %43, %cst_43 {dimension_numbers = #tpu.dot_dimension_numbers<[1], [0], [0], [1], [0, 0, 1, 1], [], []>} : vector<176x128xbf16>, vector<128x256xbf16>, vector<176x256xf32> -> vector<176x256xf32>
    %45 = arith.addf %40, %44 : vector<176x256xf32>
    %c32_44 = arith.constant 32 : index
    %c0_45 = arith.constant 0 : index
    %46 = vector.load %arg12[%c32_44, %c0_45] : memref<208x128xbf16, #tpu.memory_space<vmem>>, vector<176x128xbf16>
    %c2 = arith.constant 2 : index
    %c0_46 = arith.constant 0 : index
    %c0_47 = arith.constant 0 : index
    %47 = vector.load %arg6[%c2, %c0_46, %c0_47] : memref<3x128x256xbf16, #tpu.memory_space<vmem>>, vector<1x128x256xbf16>
    %48 = vector.shape_cast %47 : vector<1x128x256xbf16> to vector<128x256xbf16>
    %cst_48 = arith.constant dense<0.000000e+00> : vector<176x256xf32>
    %49 = tpu.matmul %46, %48, %cst_48 {dimension_numbers = #tpu.dot_dimension_numbers<[1], [0], [0], [1], [0, 0, 1, 1], [], []>} : vector<176x128xbf16>, vector<128x256xbf16>, vector<176x256xf32> -> vector<176x256xf32>
    %50 = arith.addf %45, %49 : vector<176x256xf32>
    %c0_49 = arith.constant 0 : index
    %c0_50 = arith.constant 0 : index
    %51 = vector.load %arg7[%c0_49, %c0_50] : memref<1x256xf32, #tpu.memory_space<vmem>>, vector<1x256xf32>
    %52 = vector.broadcast %51 : vector<1x256xf32> to vector<176x256xf32>
    %53 = arith.addf %50, %52 : vector<176x256xf32>
    %cst_51 = arith.constant 0.000000e+00 : f32
    %54 = vector.broadcast %cst_51 : f32 to vector<176x256xf32>
    %55 = arith.cmpf ogt, %53, %54 : vector<176x256xf32>
    %cst_52 = arith.constant 1.000000e-01 : f32
    %56 = vector.broadcast %cst_52 : f32 to vector<176x256xf32>
    %57 = arith.mulf %56, %53 : vector<176x256xf32>
    %58 = arith.select %55, %53, %57 : vector<176x256xi1>, vector<176x256xf32>
    %59 = arith.truncf %58 : vector<176x256xf32> to vector<176x256xbf16>
    %60 = vector.extract_strided_slice %59 {offsets = [0, 0], sizes = [16, 256], strides = [1, 1]} : vector<176x256xbf16> to vector<16x256xbf16>
    %c0_53 = arith.constant 0 : index
    %c0_54 = arith.constant 0 : index
    %c0_55 = arith.constant 0 : index
    %61 = vector.load %arg8[%c0_53, %c0_54, %c0_55] : memref<11x256x128xbf16, #tpu.memory_space<vmem>>, vector<1x256x128xbf16>
    %62 = vector.shape_cast %61 : vector<1x256x128xbf16> to vector<256x128xbf16>
    %cst_56 = arith.constant dense<0.000000e+00> : vector<16x128xf32>
    %63 = tpu.matmul %60, %62, %cst_56 {dimension_numbers = #tpu.dot_dimension_numbers<[1], [0], [0], [1], [0, 0, 1, 1], [], []>} : vector<16x256xbf16>, vector<256x128xbf16>, vector<16x128xf32> -> vector<16x128xf32>
    %c0_57 = arith.constant 0 : index
    %c0_58 = arith.constant 0 : index
    %64 = vector.load %arg9[%c0_57, %c0_58] : memref<1x128xf32, #tpu.memory_space<vmem>>, vector<1x128xf32>
    %65 = vector.broadcast %64 : vector<1x128xf32> to vector<16x128xf32>
    %66 = arith.addf %63, %65 : vector<16x128xf32>
    %67 = vector.extract_strided_slice %59 {offsets = [16, 0], sizes = [16, 256], strides = [1, 1]} : vector<176x256xbf16> to vector<16x256xbf16>
    %c1_59 = arith.constant 1 : index
    %c0_60 = arith.constant 0 : index
    %c0_61 = arith.constant 0 : index
    %68 = vector.load %arg8[%c1_59, %c0_60, %c0_61] : memref<11x256x128xbf16, #tpu.memory_space<vmem>>, vector<1x256x128xbf16>
    %69 = vector.shape_cast %68 : vector<1x256x128xbf16> to vector<256x128xbf16>
    %cst_62 = arith.constant dense<0.000000e+00> : vector<16x128xf32>
    %70 = tpu.matmul %67, %69, %cst_62 {dimension_numbers = #tpu.dot_dimension_numbers<[1], [0], [0], [1], [0, 0, 1, 1], [], []>} : vector<16x256xbf16>, vector<256x128xbf16>, vector<16x128xf32> -> vector<16x128xf32>
    %71 = arith.addf %66, %70 : vector<16x128xf32>
    %72 = vector.extract_strided_slice %59 {offsets = [32, 0], sizes = [16, 256], strides = [1, 1]} : vector<176x256xbf16> to vector<16x256xbf16>
    %c2_63 = arith.constant 2 : index
    %c0_64 = arith.constant 0 : index
    %c0_65 = arith.constant 0 : index
    %73 = vector.load %arg8[%c2_63, %c0_64, %c0_65] : memref<11x256x128xbf16, #tpu.memory_space<vmem>>, vector<1x256x128xbf16>
    %74 = vector.shape_cast %73 : vector<1x256x128xbf16> to vector<256x128xbf16>
    %cst_66 = arith.constant dense<0.000000e+00> : vector<16x128xf32>
    %75 = tpu.matmul %72, %74, %cst_66 {dimension_numbers = #tpu.dot_dimension_numbers<[1], [0], [0], [1], [0, 0, 1, 1], [], []>} : vector<16x256xbf16>, vector<256x128xbf16>, vector<16x128xf32> -> vector<16x128xf32>
    %76 = arith.addf %71, %75 : vector<16x128xf32>
    %77 = vector.extract_strided_slice %59 {offsets = [48, 0], sizes = [16, 256], strides = [1, 1]} : vector<176x256xbf16> to vector<16x256xbf16>
    %c3 = arith.constant 3 : index
    %c0_67 = arith.constant 0 : index
    %c0_68 = arith.constant 0 : index
    %78 = vector.load %arg8[%c3, %c0_67, %c0_68] : memref<11x256x128xbf16, #tpu.memory_space<vmem>>, vector<1x256x128xbf16>
    %79 = vector.shape_cast %78 : vector<1x256x128xbf16> to vector<256x128xbf16>
    %cst_69 = arith.constant dense<0.000000e+00> : vector<16x128xf32>
    %80 = tpu.matmul %77, %79, %cst_69 {dimension_numbers = #tpu.dot_dimension_numbers<[1], [0], [0], [1], [0, 0, 1, 1], [], []>} : vector<16x256xbf16>, vector<256x128xbf16>, vector<16x128xf32> -> vector<16x128xf32>
    %81 = arith.addf %76, %80 : vector<16x128xf32>
    %82 = vector.extract_strided_slice %59 {offsets = [64, 0], sizes = [16, 256], strides = [1, 1]} : vector<176x256xbf16> to vector<16x256xbf16>
    %c4 = arith.constant 4 : index
    %c0_70 = arith.constant 0 : index
    %c0_71 = arith.constant 0 : index
    %83 = vector.load %arg8[%c4, %c0_70, %c0_71] : memref<11x256x128xbf16, #tpu.memory_space<vmem>>, vector<1x256x128xbf16>
    %84 = vector.shape_cast %83 : vector<1x256x128xbf16> to vector<256x128xbf16>
    %cst_72 = arith.constant dense<0.000000e+00> : vector<16x128xf32>
    %85 = tpu.matmul %82, %84, %cst_72 {dimension_numbers = #tpu.dot_dimension_numbers<[1], [0], [0], [1], [0, 0, 1, 1], [], []>} : vector<16x256xbf16>, vector<256x128xbf16>, vector<16x128xf32> -> vector<16x128xf32>
    %86 = arith.addf %81, %85 : vector<16x128xf32>
    %87 = vector.extract_strided_slice %59 {offsets = [80, 0], sizes = [16, 256], strides = [1, 1]} : vector<176x256xbf16> to vector<16x256xbf16>
    %c5 = arith.constant 5 : index
    %c0_73 = arith.constant 0 : index
    %c0_74 = arith.constant 0 : index
    %88 = vector.load %arg8[%c5, %c0_73, %c0_74] : memref<11x256x128xbf16, #tpu.memory_space<vmem>>, vector<1x256x128xbf16>
    %89 = vector.shape_cast %88 : vector<1x256x128xbf16> to vector<256x128xbf16>
    %cst_75 = arith.constant dense<0.000000e+00> : vector<16x128xf32>
    %90 = tpu.matmul %87, %89, %cst_75 {dimension_numbers = #tpu.dot_dimension_numbers<[1], [0], [0], [1], [0, 0, 1, 1], [], []>} : vector<16x256xbf16>, vector<256x128xbf16>, vector<16x128xf32> -> vector<16x128xf32>
    %91 = arith.addf %86, %90 : vector<16x128xf32>
    %92 = vector.extract_strided_slice %59 {offsets = [96, 0], sizes = [16, 256], strides = [1, 1]} : vector<176x256xbf16> to vector<16x256xbf16>
    %c6 = arith.constant 6 : index
    %c0_76 = arith.constant 0 : index
    %c0_77 = arith.constant 0 : index
    %93 = vector.load %arg8[%c6, %c0_76, %c0_77] : memref<11x256x128xbf16, #tpu.memory_space<vmem>>, vector<1x256x128xbf16>
    %94 = vector.shape_cast %93 : vector<1x256x128xbf16> to vector<256x128xbf16>
    %cst_78 = arith.constant dense<0.000000e+00> : vector<16x128xf32>
    %95 = tpu.matmul %92, %94, %cst_78 {dimension_numbers = #tpu.dot_dimension_numbers<[1], [0], [0], [1], [0, 0, 1, 1], [], []>} : vector<16x256xbf16>, vector<256x128xbf16>, vector<16x128xf32> -> vector<16x128xf32>
    %96 = arith.addf %91, %95 : vector<16x128xf32>
    %97 = vector.extract_strided_slice %59 {offsets = [112, 0], sizes = [16, 256], strides = [1, 1]} : vector<176x256xbf16> to vector<16x256xbf16>
    %c7 = arith.constant 7 : index
    %c0_79 = arith.constant 0 : index
    %c0_80 = arith.constant 0 : index
    %98 = vector.load %arg8[%c7, %c0_79, %c0_80] : memref<11x256x128xbf16, #tpu.memory_space<vmem>>, vector<1x256x128xbf16>
    %99 = vector.shape_cast %98 : vector<1x256x128xbf16> to vector<256x128xbf16>
    %cst_81 = arith.constant dense<0.000000e+00> : vector<16x128xf32>
    %100 = tpu.matmul %97, %99, %cst_81 {dimension_numbers = #tpu.dot_dimension_numbers<[1], [0], [0], [1], [0, 0, 1, 1], [], []>} : vector<16x256xbf16>, vector<256x128xbf16>, vector<16x128xf32> -> vector<16x128xf32>
    %101 = arith.addf %96, %100 : vector<16x128xf32>
    %102 = vector.extract_strided_slice %59 {offsets = [128, 0], sizes = [16, 256], strides = [1, 1]} : vector<176x256xbf16> to vector<16x256xbf16>
    %c8 = arith.constant 8 : index
    %c0_82 = arith.constant 0 : index
    %c0_83 = arith.constant 0 : index
    %103 = vector.load %arg8[%c8, %c0_82, %c0_83] : memref<11x256x128xbf16, #tpu.memory_space<vmem>>, vector<1x256x128xbf16>
    %104 = vector.shape_cast %103 : vector<1x256x128xbf16> to vector<256x128xbf16>
    %cst_84 = arith.constant dense<0.000000e+00> : vector<16x128xf32>
    %105 = tpu.matmul %102, %104, %cst_84 {dimension_numbers = #tpu.dot_dimension_numbers<[1], [0], [0], [1], [0, 0, 1, 1], [], []>} : vector<16x256xbf16>, vector<256x128xbf16>, vector<16x128xf32> -> vector<16x128xf32>
    %106 = arith.addf %101, %105 : vector<16x128xf32>
    %107 = vector.extract_strided_slice %59 {offsets = [144, 0], sizes = [16, 256], strides = [1, 1]} : vector<176x256xbf16> to vector<16x256xbf16>
    %c9 = arith.constant 9 : index
    %c0_85 = arith.constant 0 : index
    %c0_86 = arith.constant 0 : index
    %108 = vector.load %arg8[%c9, %c0_85, %c0_86] : memref<11x256x128xbf16, #tpu.memory_space<vmem>>, vector<1x256x128xbf16>
    %109 = vector.shape_cast %108 : vector<1x256x128xbf16> to vector<256x128xbf16>
    %cst_87 = arith.constant dense<0.000000e+00> : vector<16x128xf32>
    %110 = tpu.matmul %107, %109, %cst_87 {dimension_numbers = #tpu.dot_dimension_numbers<[1], [0], [0], [1], [0, 0, 1, 1], [], []>} : vector<16x256xbf16>, vector<256x128xbf16>, vector<16x128xf32> -> vector<16x128xf32>
    %111 = arith.addf %106, %110 : vector<16x128xf32>
    %112 = vector.extract_strided_slice %59 {offsets = [160, 0], sizes = [16, 256], strides = [1, 1]} : vector<176x256xbf16> to vector<16x256xbf16>
    %c10 = arith.constant 10 : index
    %c0_88 = arith.constant 0 : index
    %c0_89 = arith.constant 0 : index
    %113 = vector.load %arg8[%c10, %c0_88, %c0_89] : memref<11x256x128xbf16, #tpu.memory_space<vmem>>, vector<1x256x128xbf16>
    %114 = vector.shape_cast %113 : vector<1x256x128xbf16> to vector<256x128xbf16>
    %cst_90 = arith.constant dense<0.000000e+00> : vector<16x128xf32>
    %115 = tpu.matmul %112, %114, %cst_90 {dimension_numbers = #tpu.dot_dimension_numbers<[1], [0], [0], [1], [0, 0, 1, 1], [], []>} : vector<16x256xbf16>, vector<256x128xbf16>, vector<16x128xf32> -> vector<16x128xf32>
    %116 = arith.addf %111, %115 : vector<16x128xf32>
    %c0_91 = arith.constant 0 : index
    %c0_92 = arith.constant 0 : index
    %117 = vector.load %arg10[%c0_91, %c0_92] : memref<16x128xf32, #tpu.memory_space<vmem>>, vector<16x128xf32>
    tpu.vector_store %arg10[%c0_91, %c0_92], %116 {strides = array<i32>} : memref<16x128xf32, #tpu.memory_space<vmem>>, vector<16x128xf32>,
    return
  }
  func.func @transform_0(%arg0: i32) -> (i32, i32) {
    %c0_i32 = arith.constant 0 : i32
    %c0_i32_0 = arith.constant 0 : i32
    return %arg0, %c0_i32 : i32, i32
  }
  func.func @transform_1(%arg0: i32) -> (i32, i32) {
    %c0_i32 = arith.constant 0 : i32
    %c0_i32_0 = arith.constant 0 : i32
    %c0_i32_1 = arith.constant 0 : i32
    return %c0_i32, %c0_i32_0 : i32, i32
  }
  func.func @transform_2(%arg0: i32) -> (i32, i32) {
    %c0_i32 = arith.constant 0 : i32
    %c0_i32_0 = arith.constant 0 : i32
    %c0_i32_1 = arith.constant 0 : i32
    return %c0_i32, %c0_i32_0 : i32, i32
  }
  func.func @transform_3(%arg0: i32) -> (i32, i32) {
    %c0_i32 = arith.constant 0 : i32
    %c0_i32_0 = arith.constant 0 : i32
    %c0_i32_1 = arith.constant 0 : i32
    return %c0_i32, %c0_i32_0 : i32, i32
  }
  func.func @transform_4(%arg0: i32) -> (i32, i32) {
    %c0_i32 = arith.constant 0 : i32
    %c0_i32_0 = arith.constant 0 : i32
    %c0_i32_1 = arith.constant 0 : i32
    return %c0_i32, %c0_i32_0 : i32, i32
  }
  func.func @transform_5(%arg0: i32) -> (i32, i32, i32) {
    %c0_i32 = arith.constant 0 : i32
    %c0_i32_0 = arith.constant 0 : i32
    %c0_i32_1 = arith.constant 0 : i32
    %c0_i32_2 = arith.constant 0 : i32
    return %c0_i32, %c0_i32_0, %c0_i32_1 : i32, i32, i32
  }
  func.func @transform_6(%arg0: i32) -> (i32, i32) {
    %c0_i32 = arith.constant 0 : i32
    %c0_i32_0 = arith.constant 0 : i32
    %c0_i32_1 = arith.constant 0 : i32
    return %c0_i32, %c0_i32_0 : i32, i32
  }
  func.func @transform_7(%arg0: i32) -> (i32, i32, i32) {
    %c0_i32 = arith.constant 0 : i32
    %c0_i32_0 = arith.constant 0 : i32
    %c0_i32_1 = arith.constant 0 : i32
    %c0_i32_2 = arith.constant 0 : i32
    return %c0_i32, %c0_i32_0, %c0_i32_1 : i32, i32, i32
  }
  func.func @transform_8(%arg0: i32) -> (i32, i32) {
    %c0_i32 = arith.constant 0 : i32
    %c0_i32_0 = arith.constant 0 : i32
    %c0_i32_1 = arith.constant 0 : i32
    return %c0_i32, %c0_i32_0 : i32, i32
  }
  func.func @transform_9(%arg0: i32) -> (i32, i32) {
    %c0_i32 = arith.constant 0 : i32
    %c0_i32_0 = arith.constant 0 : i32
    return %arg0, %c0_i32 : i32, i32
  }
}

</mosaic_0001>

<bundles_post_ra>
// kernel: tpu_custom_call.1
= control target key start
LH: loop header
LB: loop body
LE: loop exit
PB: predicated region body
PF: predicated region fallthrough
CT: control target
= control target key end

     0   :  { %14 = vsyncpa [#allocation5], 0  ;;  %s6228_s0 = inlined_call_operand.vmem [shape: bf16[176,45], index: 0, kind: input, shape index: {}]   ;;  %s6229_s1 = inlined_call_operand.vmem [shape: bf16[45,64], index: 1, kind: input, shape index: {}]   ;;  %s6230_s2 = inlined_call_operand.vmem [shape: f32[1,64], index: 2, kind: input, shape index: {}]   ;;  %s6231_s3 = inlined_call_operand.vmem [shape: bf16[192,128], index: 3, kind: input, shape index: {}]   ;;  %s6232_s4 = inlined_call_operand.vmem [shape: f32[1,128], index: 4, kind: input, shape index: {}]   ;;  %s6233_s5 = inlined_call_operand.hbm [shape: bf16[3,128,256], index: 5, kind: input, shape index: {}]   ;;  %s6234_s6 = inlined_call_operand.vmem [shape: f32[1,256], index: 6, kind: input, shape index: {}]   ;;  %s6235_s7 = inlined_call_operand.hbm [shape: bf16[11,256,128], index: 7, kind: input, shape index: {}]   ;;  %s6236_s8 = inlined_call_operand.vmem [shape: f32[1,128], index: 8, kind: input, shape index: {}]   ;;  %s6237_s9 = inlined_call_operand.hbm [shape: f32[16,128], index: 9, kind: output, shape index: {}]  }
   0x1   :  { %15 = vsyncpa [#allocation8], 0 }
   0x2   :  { %16 = vsyncpa [#allocation6], 0  ;;  %s31_s11 = sshll.u32 %s6233_s5, 4  ;;  %s5510_s12 = smov [#allocation4]   ;;  %s32_s11 = int_to_ptr.hbm [resolvable:$true] %s31_s11 }
   0x3   :  { %s33_s13 = sshll.u32 %s5510_s12, 4  ;;  %s46_s16 = sshll.u32 %s6235_s7, 4  ;;  %s34_s13 = int_to_ptr.vmem [resolvable:$true] %s33_s13  ;;  %s47_s16 = int_to_ptr.hbm [resolvable:$true] %s46_s16 }
   0x4   :  { %s5511_s17 = smov 128   ;;  %s5512_s18 = smov 8  }
   0x5   :  { %39 = dma.hbm_to_vmem [thread:$0]  %s32_s11, 6144, %s34_s13, [#allocation5], %s5511_s17, %s5511_s17, %s5512_s18  }
   0x6   :  { %s5513_s19 = smov [#allocation7]   ;;  %s5514_s21 = smov 64  }
   0x7   :  { %s48_s20 = sshll.u32 %s5513_s19, 4  ;;  %s5515_s5 = smov 4   ;;  %s49_s20 = int_to_ptr.vmem [resolvable:$true] %s48_s20 }
   0x8   :  { %54 = dma.hbm_to_vmem [thread:$0]  %s47_s16, 22528, %s49_s20, [#allocation8], %s5514_s21, %s5514_s21, %s5515_s5  }
   0x9   :  { %5504 = dma.done.wait [#allocation5], 6144  }
   0xa   :  { %5505 = vsyncadd [#allocation5], 4294961152 }
   0xb   :  { %5506 = dma.done.wait [#allocation8], 22528  }
   0xc   :  { %5507 = vsyncadd [#allocation8], 4294944768  ;;  %vm204_vm0 = vcmask 1045504   ;;  %vm205_vm1 = vcmask 1046528   ;;  %v5516_v0 = vmov 65535   ;;  %v5080_v7 = vld [vmem:[%s6229_s1 + $0x8] sm:$0xff] }
   0xd   :  { %v206_v1 = vsel %vm204_vm0, 4294967295, %v5516_v0  ;;  %v3956_v2 = vld [vmem:[%s6229_s1 + $0x10] sm:$0xf]  ;;  %v5081_v3 = vld [vmem:[%s6229_s1 + $0x10] sm:$0x70]  ;;  %v5079_v8 = vld [vmem:[%s6229_s1] sm:$0xff] }
   0xe   :  { %v207_v4 = vsel %vm205_vm1, %v206_v1, 0  ;;  %v3957_v5 = vor.u32 %v5081_v3, %v3956_v2  ;;  %v5068_v9 = vld [vmem:[%s6228_s0] sm:$0xff]  ;;  %vm170_vm2 = vcmask 367616   ;;  %v5069_v10 = vld [vmem:[%s6228_s0 + $0x8] sm:$0xff]  ;;  %v5070_v11 = vld [vmem:[%s6228_s0 + $0x10] sm:$0xff]  ;;  %vm363_vm4 = vcmask 519168  }
   0xf   :  { %v5071_v12 = vld [vmem:[%s6228_s0 + $0x18] sm:$0xff]  ;;  %v5072_v13 = vld [vmem:[%s6228_s0 + $0x20] sm:$0xff]  ;;  %v5073_v14 = vld [vmem:[%s6228_s0 + $0x28] sm:$0xff]  ;;  %vm503_vm9 = vcmask 523264   ;;  %s3888_s15 = sshll.u32 %s6237_s9, 4  ;;  %s3889_s15 = int_to_ptr.hbm [resolvable:$true] %s3888_s15 }
  0x10   :  { %v209_v6 = vand.u32 %v3957_v5, %v207_v4  ;;  %v5074_v15 = vld [vmem:[%s6228_s0 + $0x30] sm:$0xff]  ;;  %v5075_v16 = vld [vmem:[%s6228_s0 + $0x38] sm:$0xff]  ;;  %v5633_v19 = vld [vmem:[%s6230_s2] ss:$0 sm:$0xff] }
  0x11   :  { %v5106_v17 = vld [vmem:[%s6231_s3 + $0x58] sm:$0xff]  ;;  %v5105_v18 = vld [vmem:[%s6231_s3 + $0x50] sm:$0xff]  ;;  %v5076_v20 = vld [vmem:[%s6228_s0 + $0x40] sm:$0xff] }
  0x12   :  { %216 = vmatpush.bf16.msra.mxu0 %v209_v6  ;;  %740 = vmatpush.bf16.msra.mxu2 %v5106_v17  ;;  %v5104_v22 = vld [vmem:[%s6231_s3 + $0x48] sm:$0xff]  ;;  %v5103_v25 = vld [vmem:[%s6231_s3 + $0x40] sm:$0xff]  ;;  %v5078_v45 = vld [vmem:[%s6228_s0 + $0x50] sm:$0xff] }
  0x13   :  { %v5077_v33 = vld [vmem:[%s6228_s0 + $0x48] sm:$0xff]  ;;  %v5101_v17 = vld [vmem:[%s6231_s3 + $0x30] sm:$0xff] }
  0x16   :  { %217 = vmatpush.bf16.msra.mxu0 %v5080_v7  ;;  %741 = vmatpush.bf16.msra.mxu2 %v5105_v18 }
  0x1a   :  { %218 = vmatpush.bf16.msra.mxu0 %v5079_v8  ;;  %742 = vmatpush.bf16.msra.mxu2 %v5104_v22 }
  0x1d   :  { %3958 = vmatmul.msk.bf16.vlgmr.msra.gmra.mxu0 %vm170_vm2, %v5068_v9 }
  0x1e   :  { %743 = vmatpush.bf16.msra.mxu2 %v5103_v25 }
  0x2d   :  { %3959 = vmatmul.msk.bf16.gmra.mxu0 %vm170_vm2, %v5069_v10 }
  0x3d   :  { %3960 = vmatmul.msk.bf16.gmra.mxu0 %vm170_vm2, %v5070_v11 }
  0x4d   :  { %3961 = vmatmul.msk.bf16.gmra.mxu0 %vm170_vm2, %v5071_v12 }
  0x5d   :  { %3962 = vmatmul.msk.bf16.gmra.mxu0 %vm170_vm2, %v5072_v13  ;;  %v5102_v13 = vld [vmem:[%s6231_s3 + $0x38] sm:$0xff] }
  0x5e   :  { %672 = vmatpush.bf16.msra.mxu1 %v5102_v13 }
  0x62   :  { %673 = vmatpush.bf16.msra.mxu1 %v5101_v17 }
  0x6d   :  { %3963 = vmatmul.msk.bf16.gmra.mxu0 %vm170_vm2, %v5073_v14 }
  0x7d   :  { %3964 = vmatmul.msk.bf16.gmra.mxu0 %vm170_vm2, %v5074_v15 }
  0x8d   :  { %3965 = vmatmul.msk.bf16.gmra.mxu0 %vm170_vm2, %v5075_v16 }
  0x9a   :  { %v220_v21 = vpop.f32.mrf.mxu0 }
  0x9b   :  { %v221_v23 = vadd.f32 %v5633_v19, %v220_v21  ;;  %v5100_v21 = vld [vmem:[%s6231_s3 + $0x28] sm:$0xff] }
  0x9c   :  { %674 = vmatpush.bf16.msra.mxu1 %v5100_v21  ;;  %v4168_v21 = vld [vmem:[#allocation4 + $0xd8] sm:$0xf0] }
  0x9d   :  { %vm275_vm3 = vcmp.gt.f32.partialorder %v221_v23, 0.0  ;;  %v297_v24 = vmul.f32 0.1, %v221_v23  ;;  %3966 = vmatmul.msk.bf16.gmra.mxu0 %vm170_vm2, %v5076_v20 }
  0x9f   :  { %v319_v26 = vsel %vm275_vm3, %v221_v23, %v297_v24 }
  0xa0   :  { %v341_v27 = vpack.c.bf16 %v319_v26, %v319_v26  ;;  %v5099_v26 = vld [vmem:[%s6231_s3 + $0x20] sm:$0xff] }
  0xa1   :  { %675 = vmatpush.bf16.msra.mxu1 %v5099_v26 }
  0xa2   :  { %368 = vst.msk [vmem:[#allocation2 + $0x8] sm:$0xf] %vm363_vm4, %v341_v27  ;;  %v222_v28 = vpop.f32.mrf.mxu0 }
  0xa3   :  { %v223_v29 = vadd.f32 %v5633_v19, %v222_v28 }
  0xa5   :  { %vm276_vm5 = vcmp.gt.f32.partialorder %v223_v29, 0.0  ;;  %v298_v30 = vmul.f32 0.1, %v223_v29 }
  0xa7   :  { %v320_v31 = vsel %vm276_vm5, %v223_v29, %v298_v30  ;;  %v5098_v29 = vld [vmem:[%s6231_s3 + $0x18] sm:$0xff] }
  0xa8   :  { %v342_v32 = vpack.c.bf16 %v320_v31, %v320_v31  ;;  %676 = vmatpush.bf16.msra.mxu1 %v5098_v29 }
  0xaa   :  { %369 = vst.msk [vmem:[#allocation2 + $0xc] sm:$0xf] %vm363_vm4, %v342_v32  ;;  %v225_v34 = vpop.f32.mrf.mxu0 }
  0xab   :  { %v226_v35 = vadd.f32 %v5633_v19, %v225_v34  ;;  %v4184_v34 = vld [vmem:[#allocation4 + $0xf8] sm:$0xf0] }
  0xad   :  { %vm277_vm6 = vcmp.gt.f32.partialorder %v226_v35, 0.0  ;;  %v299_v36 = vmul.f32 0.1, %v226_v35  ;;  %3967 = vmatmul.msk.bf16.gmra.mxu0 %vm170_vm2, %v5077_v33  ;;  %v5149_v33 = vld [vmem:[#allocation4 + $0xf4] sm:$0xf] }
  0xaf   :  { %v321_v37 = vsel %vm277_vm6, %v226_v35, %v299_v36  ;;  %v4187_v36 = vor.u32 %v5149_v33, %v4184_v34 }
  0xb0   :  { %v343_v38 = vpack.c.bf16 %v321_v37, %v321_v37  ;;  %v5097_v37 = vld [vmem:[%s6231_s3 + $0x10] sm:$0xff] }
  0xb1   :  { %v5654_v39 = vld [vmem:[#allocation2 + $0x8] sm:$0xff]  ;;  %1181 = vmatpush.bf16.msrb.mxu0 %v4187_v36  ;;  %677 = vmatpush.bf16.msra.mxu1 %v5097_v37  ;;  %v4160_v36 = vld [vmem:[#allocation4 + $0xc8] sm:$0xf0] }
  0xb2   :  { %370 = vst.msk [vmem:[#allocation2 + $0x10] sm:$0xf] %vm363_vm4, %v343_v38  ;;  %v227_v40 = vpop.f32.mrf.mxu0  ;;  %476 = vrot.lane.b32.xlu0 %v5654_v39, %s5514_s21 }
  0xb3   :  { %v228_v41 = vadd.f32 %v5633_v19, %v227_v40  ;;  %v5517_v40 = vmov 0  }
  0xb4   :  { %364 = vst.msk [vmem:[#allocation2] sm:$0xf] %vm363_vm4, %v5517_v40 }
  0xb5   :  { %vm278_vm7 = vcmp.gt.f32.partialorder %v228_v41, 0.0  ;;  %v300_v42 = vmul.f32 0.1, %v228_v41  ;;  %365 = vst.msk [vmem:[#allocation2 + $0x4] sm:$0xf] %vm363_vm4, %v5517_v40 }
  0xb6   :  { %366 = vst.msk [vmem:[#allocation2 + $0x60] sm:$0xf] %vm363_vm4, %v5517_v40 }
  0xb7   :  { %v322_v43 = vsel %vm278_vm7, %v228_v41, %v300_v42  ;;  %v5096_v41 = vld [vmem:[%s6231_s3 + $0x8] sm:$0xff]  ;;  %367 = vst.msk [vmem:[#allocation2 + $0x64] sm:$0xf] %vm363_vm4, %v5517_v40 }
  0xb8   :  { %v344_v44 = vpack.c.bf16 %v322_v43, %v322_v43  ;;  %678 = vmatpush.bf16.msra.mxu1 %v5096_v41  ;;  %888 = vst [vmem:[#allocation3] sm:$0xf] %v5517_v40 }
  0xb9   :  { %889 = vst [vmem:[#allocation3 + $0x4] sm:$0xf] %v5517_v40 }
  0xba   :  { %371 = vst.msk [vmem:[#allocation2 + $0x14] sm:$0xf] %vm363_vm4, %v344_v44  ;;  %v230_v46 = vpop.f32.mrf.mxu0 }
  0xbb   :  { %v231_v47 = vadd.f32 %v5633_v19, %v230_v46  ;;  %v5095_v46 = vld [vmem:[%s6231_s3] sm:$0xff]  ;;  %890 = vst [vmem:[#allocation3 + $0x60] sm:$0xf] %v5517_v40 }
  0xbc   :  { %679 = vmatpush.bf16.msra.mxu1 %v5095_v46  ;;  %891 = vst [vmem:[#allocation3 + $0x64] sm:$0xf] %v5517_v40 }
  0xbd   :  { %vm279_vm8 = vcmp.gt.f32.partialorder %v231_v47, 0.0  ;;  %v301_v48 = vmul.f32 0.1, %v231_v47  ;;  %3968 = vmatmul.msk.bf16.gmra.mxu0 %vm170_vm2, %v5078_v45 }
  0xbf   :  { %v323_v49 = vsel %vm279_vm8, %v231_v47, %v301_v48 }
  0xc0   :  { %v345_v50 = vpack.c.bf16 %v323_v49, %v323_v49 }
  0xc1   :  { %v5666_v51 = vld [vmem:[#allocation2 + $0x10] sm:$0xff] }
  0xc2   :  { %372 = vst.msk [vmem:[#allocation2 + $0x18] sm:$0xf] %vm363_vm4, %v345_v50  ;;  %v232_v52 = vpop.f32.mrf.mxu0  ;;  %4069 = vmatmul.msk.bf16.vlgmr.msra.gmra.mxu2 %vm503_vm9, %v5666_v51  ;;  %478 = vrot.lane.b32.xlu0 %v5666_v51, %s5514_s21 }
  0xc3   :  { %v233_v53 = vadd.f32 %v5633_v19, %v232_v52 }
  0xc5   :  { %vm280_vm10 = vcmp.gt.f32.partialorder %v233_v53, 0.0  ;;  %v302_v54 = vmul.f32 0.1, %v233_v53 }
  0xc7   :  { %v324_v55 = vsel %vm280_vm10, %v233_v53, %v302_v54 }
  0xc8   :  { %v346_v56 = vpack.c.bf16 %v324_v55, %v324_v55 }
  0xca   :  { %373 = vst.msk [vmem:[#allocation2 + $0x1c] sm:$0xf] %vm363_vm4, %v346_v56  ;;  %v235_v57 = vpop.f32.mrf.mxu0 }
  0xcb   :  { %v236_v58 = vadd.f32 %v5633_v19, %v235_v57 }
  0xcd   :  { %vm281_vm11 = vcmp.gt.f32.partialorder %v236_v58, 0.0  ;;  %v303_v59 = vmul.f32 0.1, %v236_v58 }
  0xcf   :  { %v325_v60 = vsel %vm281_vm11, %v236_v58, %v303_v59  ;;  %v5147_v59 = vld [vmem:[#allocation4 + $0xe4] sm:$0xf] }
  0xd0   :  { %v347_v61 = vpack.c.bf16 %v325_v60, %v325_v60  ;;  %v4176_v60 = vld [vmem:[#allocation4 + $0xe8] sm:$0xf0] }
  0xd1   :  { %v5676_v62 = vld [vmem:[#allocation2 + $0x18] sm:$0xff] }
  0xd2   :  { %374 = vst.msk [vmem:[#allocation2 + $0x20] sm:$0xf] %vm363_vm4, %v347_v61  ;;  %v237_v63 = vpop.f32.mrf.mxu0  ;;  %480 = vrot.lane.b32.xlu1 %v5676_v62, %s5514_s21  ;;  %4070 = vmatmul.msk.bf16.gmra.mxu2 %vm503_vm9, %v5676_v62 }
  0xd3   :  { %v238_v0 = vadd.f32 %v5633_v19, %v237_v63  ;;  %v4179_v63 = vor.u32 %v5147_v59, %v4176_v60  ;;  %v4144_v60 = vld [vmem:[#allocation4 + $0xa8] sm:$0xf0] }
  0xd5   :  { %vm282_vm12 = vcmp.gt.f32.partialorder %v238_v0, 0.0  ;;  %v304_v1 = vmul.f32 0.1, %v238_v0  ;;  %1182 = vmatpush.bf16.msrb.mxu0 %v4179_v63 }
  0xd7   :  { %v326_v2 = vsel %vm282_vm12, %v238_v0, %v304_v1 }
  0xd8   :  { %v348_v3 = vpack.c.bf16 %v326_v2, %v326_v2 }
  0xda   :  { %375 = vst.msk [vmem:[#allocation2 + $0x24] sm:$0xf] %vm363_vm4, %v348_v3  ;;  %v240_v4 = vpop.f32.mrf.mxu0 }
  0xdb   :  { %v241_v5 = vadd.f32 %v5633_v19, %v240_v4 }
  0xdd   :  { %vm283_vm13 = vcmp.gt.f32.partialorder %v241_v5, 0.0  ;;  %v305_v6 = vmul.f32 0.1, %v241_v5 }
  0xdf   :  { %v327_v7 = vsel %vm283_vm13, %v241_v5, %v305_v6 }
  0xe0   :  { %v349_v8 = vpack.c.bf16 %v327_v7, %v327_v7 }
  0xe1   :  { %v5686_v9 = vld [vmem:[#allocation2 + $0x20] sm:$0xff] }
  0xe2   :  { %376 = vst.msk [vmem:[#allocation2 + $0x28] sm:$0xf] %vm363_vm4, %v349_v8  ;;  %v242_v10 = vpop.f32.mrf.mxu0  ;;  %482 = vrot.lane.b32.xlu1 %v5686_v9, %s5514_s21  ;;  %4071 = vmatmul.msk.bf16.gmra.mxu2 %vm503_vm9, %v5686_v9 }
  0xe3   :  { %v243_v11 = vadd.f32 %v5633_v19, %v242_v10 }
  0xe5   :  { %vm284_vm14 = vcmp.gt.f32.partialorder %v243_v11, 0.0  ;;  %v306_v12 = vmul.f32 0.1, %v243_v11 }
  0xe7   :  { %v328_v14 = vsel %vm284_vm14, %v243_v11, %v306_v12  ;;  %v5082_v11 = vld [vmem:[#allocation2] sm:$0xff] }
  0xe8   :  { %v350_v15 = vpack.c.bf16 %v328_v14, %v328_v14 }
  0xea   :  { %377 = vst.msk [vmem:[#allocation2 + $0x2c] sm:$0xf] %vm363_vm4, %v350_v15  ;;  %v245_v16 = vpop.f32.mrf.mxu0 }
  0xeb   :  { %v246_v18 = vadd.f32 %v5633_v19, %v245_v16 }
  0xed   :  { %vm285_vm15 = vcmp.gt.f32.partialorder %v246_v18, 0.0  ;;  %v307_v20 = vmul.f32 0.1, %v246_v18 }
  0xef   :  { %v329_v22 = vsel %vm285_vm15, %v246_v18, %v307_v20  ;;  %v5145_v20 = vld [vmem:[#allocation4 + $0xd4] sm:$0xf] }
  0xf0   :  { %v351_v23 = vpack.c.bf16 %v329_v22, %v329_v22 }
  0xf1   :  { %v5705_v24 = vld [vmem:[#allocation2 + $0x28] sm:$0xff] }
  0xf2   :  { %378 = vst.msk [vmem:[#allocation2 + $0x30] sm:$0xf] %vm363_vm4, %v351_v23  ;;  %v247_v25 = vpop.f32.mrf.mxu0  ;;  %484 = vrot.lane.b32.xlu2 %v5705_v24, %s5514_s21  ;;  %4072 = vmatmul.msk.bf16.gmra.mxu2 %vm503_vm9, %v5705_v24  ;;  %v4171_v23 = vor.u32 %v5145_v20, %v4168_v21  ;;  %v5094_v20 = vld [vmem:[#allocation2 + $0x60] sm:$0xff] }
  0xf3   :  { %v248_v27 = vadd.f32 %v5633_v19, %v247_v25  ;;  %v4182_v21 = vld [vmem:[#allocation4 + $0xf0] sm:$0xf] }
  0xf4   :  { %1183 = vmatpush.bf16.msrb.mxu0 %v4171_v23 }
  0xf5   :  { %vm286_vm0 = vcmp.gt.f32.partialorder %v248_v27, 0.0  ;;  %v308_v28 = vmul.f32 0.1, %v248_v27 }
  0xf7   :  { %v330_v30 = vsel %vm286_vm0, %v248_v27, %v308_v28 }
  0xf8   :  { %v352_v31 = vpack.c.bf16 %v330_v30, %v330_v30 }
  0xfa   :  { %379 = vst.msk [vmem:[#allocation2 + $0x34] sm:$0xf] %vm363_vm4, %v352_v31  ;;  %v250_v32 = vpop.f32.mrf.mxu0 }
  0xfb   :  { %v251_v35 = vadd.f32 %v5633_v19, %v250_v32 }
  0xfd   :  { %vm287_vm1 = vcmp.gt.f32.partialorder %v251_v35, 0.0  ;;  %v309_v38 = vmul.f32 0.1, %v251_v35 }
  0xff   :  { %v331_v42 = vsel %vm287_vm1, %v251_v35, %v309_v38  ;;  %v5143_v35 = vld [vmem:[#allocation4 + $0xc4] sm:$0xf] }
 0x100   :  { %v353_v43 = vpack.c.bf16 %v331_v42, %v331_v42  ;;  %v4163_v38 = vor.u32 %v5143_v35, %v4160_v36  ;;  %v4166_v35 = vld [vmem:[#allocation4 + $0xd0] sm:$0xf]  ;;  %v5146_v36 = vld [vmem:[#allocation4 + $0xd4] sm:$0xf0] }
 0x101   :  { %v5731_v44 = vld [vmem:[#allocation2 + $0x30] sm:$0xff] }
 0x102   :  { %380 = vst.msk [vmem:[#allocation2 + $0x38] sm:$0xf] %vm363_vm4, %v353_v43  ;;  %v252_v45 = vpop.f32.mrf.mxu0  ;;  %486 = vrot.lane.b32.xlu2 %v5731_v44, %s5514_s21  ;;  %4073 = vmatmul.msk.bf16.gmra.mxu2 %vm503_vm9, %v5731_v44 }
 0x103   :  { %v253_v47 = vadd.f32 %v5633_v19, %v252_v45  ;;  %1184 = vmatpush.bf16.msrb.mxu0 %v4163_v38 }
 0x105   :  { %vm288_vm2 = vcmp.gt.f32.partialorder %v253_v47, 0.0  ;;  %v310_v48 = vmul.f32 0.1, %v253_v47 }
 0x107   :  { %v332_v49 = vsel %vm288_vm2, %v253_v47, %v310_v48 }
 0x108   :  { %v354_v50 = vpack.c.bf16 %v332_v49, %v332_v49 }
 0x10a   :  { %381 = vst.msk [vmem:[#allocation2 + $0x3c] sm:$0xf] %vm363_vm4, %v354_v50  ;;  %v255_v52 = vpop.f32.mrf.mxu0 }
 0x10b   :  { %v256_v53 = vadd.f32 %v5633_v19, %v255_v52 }
 0x10d   :  { %vm289_vm3 = vcmp.gt.f32.partialorder %v256_v53, 0.0  ;;  %v311_v54 = vmul.f32 0.1, %v256_v53 }
 0x10f   :  { %v333_v55 = vsel %vm289_vm3, %v256_v53, %v311_v54  ;;  %v5141_v54 = vld [vmem:[#allocation4 + $0xb4] sm:$0xf] }
 0x110   :  { %v355_v56 = vpack.c.bf16 %v333_v55, %v333_v55  ;;  %v4152_v55 = vld [vmem:[#allocation4 + $0xb8] sm:$0xf0] }
 0x111   :  { %v5744_v57 = vld [vmem:[#allocation2 + $0x38] sm:$0xff] }
 0x112   :  { %382 = vst.msk [vmem:[#allocation2 + $0x40] sm:$0xf] %vm363_vm4, %v355_v56  ;;  %v257_v58 = vpop.f32.mrf.mxu0  ;;  %4074 = vmatmul.msk.bf16.gmra.mxu2 %vm503_vm9, %v5744_v57  ;;  %488 = vrot.lane.b32.xlu0 %v5744_v57, %s5514_s21 }
 0x113   :  { %v258_v61 = vadd.f32 %v5633_v19, %v257_v58 }
 0x115   :  { %vm290_vm5 = vcmp.gt.f32.partialorder %v258_v61, 0.0  ;;  %v312_v0 = vmul.f32 0.1, %v258_v61 }
 0x117   :  { %v334_v1 = vsel %vm290_vm5, %v258_v61, %v312_v0 }
 0x118   :  { %v356_v2 = vpack.c.bf16 %v334_v1, %v334_v1  ;;  %v4250_v1 = vld [vmem:[#allocation4 + $0x70] sm:$0xf] }
 0x11a   :  { %383 = vst.msk [vmem:[#allocation2 + $0x44] sm:$0xf] %vm363_vm4, %v356_v2  ;;  %v260_v3 = vpop.f32.mrf.mxu0  ;;  %v5133_v2 = vld [vmem:[#allocation4 + $0x74] sm:$0xf0] }
 0x11b   :  { %v261_v4 = vadd.f32 %v5633_v19, %v260_v3  ;;  %v4251_v3 = vor.u32 %v5133_v2, %v4250_v1  ;;  %v4128_v1 = vld [vmem:[#allocation4 + $0x88] sm:$0xf0] }
 0x11d   :  { %vm291_vm6 = vcmp.gt.f32.partialorder %v261_v4, 0.0  ;;  %v313_v5 = vmul.f32 0.1, %v261_v4  ;;  %1331 = vmatpush.bf16.msrb.mxu2 %v4251_v3  ;;  %v5138_v3 = vld [vmem:[#allocation4 + $0x94] sm:$0xf0] }
 0x11f   :  { %v335_v6 = vsel %vm291_vm6, %v261_v4, %v313_v5  ;;  %v4242_v4 = vld [vmem:[#allocation4 + $0x60] sm:$0xf]  ;;  %v5131_v5 = vld [vmem:[#allocation4 + $0x64] sm:$0xf0] }
 0x120   :  { %v357_v7 = vpack.c.bf16 %v335_v6, %v335_v6  ;;  %v4243_v6 = vor.u32 %v5131_v5, %v4242_v4 }
 0x121   :  { %v5754_v8 = vld [vmem:[#allocation2 + $0x40] sm:$0xff] }
 0x122   :  { %384 = vst.msk [vmem:[#allocation2 + $0x48] sm:$0xf] %vm363_vm4, %v357_v7  ;;  %v262_v10 = vpop.f32.mrf.mxu0  ;;  %490 = vrot.lane.b32.xlu1 %v5754_v8, %s5514_s21  ;;  %4075 = vmatmul.msk.bf16.gmra.mxu2 %vm503_vm9, %v5754_v8 }
 0x123   :  { %v263_v12 = vadd.f32 %v5633_v19, %v262_v10  ;;  %1332 = vmatpush.bf16.msrb.mxu2 %v4243_v6  ;;  %v5129_v10 = vld [vmem:[#allocation4 + $0x54] sm:$0xf0]  ;;  %v5130_v6 = vld [vmem:[#allocation4 + $0x64] sm:$0xf] }
 0x124   :  { %v477_v14 = vpop.permute.xlu0 %476 }
 0x125   :  { %vm292_vm7 = vcmp.gt.f32.partialorder %v263_v12, 0.0  ;;  %v314_v13 = vmul.f32 0.1, %v263_v12  ;;  %v506_v15 = vsel %vm503_vm9, %v5082_v11, %v477_v14  ;;  %v4136_v14 = vld [vmem:[#allocation4 + $0x98] sm:$0xf0] }
 0x126   :  { %680 = vmatmul.bf16.vlgmr.msra.gmra.mxu1 %v506_v15 }
 0x127   :  { %v336_v16 = vsel %vm292_vm7, %v263_v12, %v314_v13  ;;  %v5137_v13 = vld [vmem:[#allocation4 + $0x94] sm:$0xf] }
 0x128   :  { %v358_v17 = vpack.c.bf16 %v336_v16, %v336_v16  ;;  %v4139_v15 = vor.u32 %v5137_v13, %v4136_v14  ;;  %v5127_v16 = vld [vmem:[#allocation4 + $0x44] sm:$0xf0]  ;;  %v4236_v14 = vld [vmem:[#allocation4 + $0x58] sm:$0xf0] }
 0x12a   :  { %385 = vst.msk [vmem:[#allocation2 + $0x4c] sm:$0xf] %vm363_vm4, %v358_v17  ;;  %v265_v18 = vpop.f32.mrf.mxu0 }
 0x12b   :  { %v266_v22 = vadd.f32 %v5633_v19, %v265_v18 }
 0x12d   :  { %vm293_vm8 = vcmp.gt.f32.partialorder %v266_v22, 0.0  ;;  %v315_v25 = vmul.f32 0.1, %v266_v22 }
 0x12f   :  { %v337_v26 = vsel %vm293_vm8, %v266_v22, %v315_v25  ;;  %v5150_v22 = vld [vmem:[#allocation4 + $0xf4] sm:$0xf0]  ;;  %v4218_v25 = vld [vmem:[#allocation4 + $0x30] sm:$0xf] }
 0x130   :  { %v359_v27 = vpack.c.bf16 %v337_v26, %v337_v26  ;;  %v4183_v23 = vor.u32 %v5150_v22, %v4182_v21  ;;  %v5125_v26 = vld [vmem:[#allocation4 + $0x34] sm:$0xf0] }
 0x131   :  { %v5765_v28 = vld [vmem:[#allocation2 + $0x48] sm:$0xff] }
 0x132   :  { %386 = vst.msk [vmem:[#allocation2 + $0x50] sm:$0xf] %vm363_vm4, %v359_v27  ;;  %v267_v29 = vpop.f32.mrf.mxu0  ;;  %492 = vrot.lane.b32.xlu2 %v5765_v28, %s5514_s21  ;;  %4076 = vmatmul.msk.bf16.gmra.mxu2 %vm503_vm9, %v5765_v28  ;;  %v4174_v27 = vld [vmem:[#allocation4 + $0xe0] sm:$0xf] }
 0x133   :  { %v268_v30 = vadd.f32 %v5633_v19, %v267_v29  ;;  %1117 = vmatpush.bf16.msra.mxu3 %v4183_v23  ;;  %v5148_v29 = vld [vmem:[#allocation4 + $0xe4] sm:$0xf0] }
 0x134   :  { %v479_v32 = vpop.permute.xlu0 %478 }
 0x135   :  { %vm294_vm10 = vcmp.gt.f32.partialorder %v268_v30, 0.0  ;;  %v316_v31 = vmul.f32 0.1, %v268_v30  ;;  %v510_v33 = vsel %vm503_vm9, %v5654_v39, %v479_v32  ;;  %v5123_v32 = vld [vmem:[#allocation4 + $0x24] sm:$0xf0] }
 0x136   :  { %685 = vmatmul.bf16.gmra.mxu1 %v510_v33 }
 0x137   :  { %v338_v34 = vsel %vm294_vm10, %v268_v30, %v316_v31  ;;  %v4210_v30 = vld [vmem:[#allocation4 + $0x20] sm:$0xf]  ;;  %v4175_v31 = vor.u32 %v5148_v29, %v4174_v27  ;;  %v5124_v27 = vld [vmem:[#allocation4 + $0x34] sm:$0xf] }
 0x138   :  { %v360_v37 = vpack.c.bf16 %v338_v34, %v338_v34  ;;  %v4211_v33 = vor.u32 %v5123_v32, %v4210_v30 }
 0x139   :  { %1118 = vmatpush.bf16.msra.mxu3 %v4175_v31  ;;  %v4220_v31 = vld [vmem:[#allocation4 + $0x38] sm:$0xf0] }
 0x13a   :  { %387 = vst.msk [vmem:[#allocation2 + $0x54] sm:$0xf] %vm363_vm4, %v360_v37  ;;  %v270_v40 = vpop.f32.mrf.mxu0  ;;  %v4202_v37 = vld [vmem:[#allocation4 + $0x10] sm:$0xf]  ;;  %v4223_v32 = vor.u32 %v5124_v27, %v4220_v31 }
 0x13b   :  { %v271_v41 = vadd.f32 %v5633_v19, %v270_v40  ;;  %v4167_v40 = vor.u32 %v5146_v36, %v4166_v35  ;;  %v5176_v36 = vld [vmem:[#allocation4 + $0x174] sm:$0xf]  ;;  %v4342_v31 = vld [vmem:[#allocation4 + $0x150] sm:$0xf] }
 0x13d   :  { %vm295_vm11 = vcmp.gt.f32.partialorder %v271_v41, 0.0  ;;  %v317_v42 = vmul.f32 0.1, %v271_v41  ;;  %1119 = vmatpush.bf16.msra.mxu3 %v4167_v40 }
 0x13f   :  { %v339_v43 = vsel %vm295_vm11, %v271_v41, %v317_v42  ;;  %v5121_v41 = vld [vmem:[#allocation4 + $0x14] sm:$0xf0] }
 0x140   :  { %v361_v45 = vpack.c.bf16 %v339_v43, %v339_v43  ;;  %v4203_v43 = vor.u32 %v5121_v41, %v4202_v37  ;;  %v4360_v37 = vld [vmem:[#allocation4 + $0x178] sm:$0xf0] }
 0x141   :  { %v5777_v46 = vld [vmem:[#allocation2 + $0x50] sm:$0xff] }
 0x142   :  { %388 = vst.msk [vmem:[#allocation2 + $0x58] sm:$0xf] %vm363_vm4, %v361_v45  ;;  %v272_v39 = vpop.f32.mrf.mxu0  ;;  %4077 = vmatmul.msk.bf16.gmra.mxu2 %vm503_vm9, %v5777_v46  ;;  %494 = vrot.lane.b32.xlu0 %v5777_v46, %s5514_s21  ;;  %v4158_v45 = vld [vmem:[#allocation4 + $0xc0] sm:$0xf] }
 0x143   :  { %v273_v47 = vadd.f32 %v5633_v19, %v272_v39  ;;  %v4155_v19 = vor.u32 %v5141_v54, %v4152_v55  ;;  %v5144_v39 = vld [vmem:[#allocation4 + $0xc4] sm:$0xf0] }
 0x144   :  { %v481_v49 = vpop.permute.xlu1 %480 }
 0x145   :  { %vm296_vm12 = vcmp.gt.f32.partialorder %v273_v47, 0.0  ;;  %v318_v48 = vmul.f32 0.1, %v273_v47  ;;  %v514_v50 = vsel %vm503_vm9, %v5666_v51, %v481_v49  ;;  %1185 = vmatpush.bf16.msrb.mxu0 %v4155_v19  ;;  %v5139_v51 = vld [vmem:[#allocation4 + $0xa4] sm:$0xf]  ;;  %v5796_v18 = vpop.f32.mrf.mxu2 }
 0x146   :  { %690 = vmatmul.bf16.gmra.mxu1 %v514_v50  ;;  %v4147_v61 = vor.u32 %v5139_v51, %v4144_v60  ;;  %v5119_v49 = vld [vmem:[#allocation4 + $0x4] sm:$0xf0]  ;;  %v4142_v19 = vld [vmem:[#allocation4 + $0xa0] sm:$0xf]  ;;  %v5132_v51 = vld [vmem:[#allocation4 + $0x74] sm:$0xf] }
 0x147   :  { %v340_v52 = vsel %vm296_vm12, %v273_v47, %v318_v48  ;;  %v4194_v47 = vld [vmem:[#allocation4] sm:$0xf]  ;;  %v4159_v48 = vor.u32 %v5144_v39, %v4158_v45  ;;  %v4252_v60 = vld [vmem:[#allocation4 + $0x78] sm:$0xf0] }
 0x148   :  { %v362_v53 = vpack.c.bf16 %v340_v52, %v340_v52  ;;  %v4195_v50 = vor.u32 %v5119_v49, %v4194_v47  ;;  %v5803_v52 = vld [vmem:[#allocation3] sm:$0xff]  ;;  %v4255_v2 = vor.u32 %v5132_v51, %v4252_v60 }
 0x149   :  { %1186 = vmatpush.bf16.msrb.mxu0 %v4147_v61  ;;  %1120 = vmatpush.bf16.msra.mxu3 %v4159_v48  ;;  %v4134_v61 = vld [vmem:[#allocation4 + $0x90] sm:$0xf]  ;;  %v4204_v45 = vld [vmem:[#allocation4 + $0x18] sm:$0xf0] }
 0x14a   :  { %389 = vst.msk [vmem:[#allocation2 + $0x5c] sm:$0xf] %vm363_vm4, %v362_v53  ;;  %v4150_v53 = vld [vmem:[#allocation4 + $0xb0] sm:$0xf]  ;;  %v4135_v5 = vor.u32 %v5138_v3, %v4134_v61  ;;  %1395 = vmatpush.bf16.msrb.mxu1 %v4255_v2 }
 0x14c   :  { %v485_v63 = vpop.permute.xlu2 %484 }
 0x14d   :  { %v522_v0 = vsel %vm503_vm9, %v5686_v9, %v485_v63  ;;  %v4226_v9 = vld [vmem:[#allocation4 + $0x40] sm:$0xf]  ;;  %1187 = vmatpush.bf16.msrb.mxu0 %v4139_v15  ;;  %v5801_v42 = vpop.f32.mrf.mxu2  ;;  %v5126_v15 = vld [vmem:[#allocation4 + $0x44] sm:$0xf] }
 0x14e   :  { %v4227_v17 = vor.u32 %v5127_v16, %v4226_v9  ;;  %v4228_v16 = vld [vmem:[#allocation4 + $0x48] sm:$0xf0] }
 0x14f   :  { %v4231_v21 = vor.u32 %v5126_v15, %v4228_v16 }
 0x151   :  { %v5093_v56 = vld [vmem:[#allocation2 + $0x58] sm:$0xff] }
 0x152   :  { %496 = vrot.lane.b32.xlu1 %v5093_v56, %s5514_s21  ;;  %4078 = vmatmul.msk.bf16.gmra.mxu2 %vm503_vm9, %v5093_v56  ;;  %v5140_v56 = vld [vmem:[#allocation4 + $0xa4] sm:$0xf0] }
 0x154   :  { %v483_v58 = vpop.permute.xlu1 %482 }
 0x155   :  { %v518_v59 = vsel %vm503_vm9, %v5676_v62, %v483_v58  ;;  %v4234_v62 = vld [vmem:[#allocation4 + $0x50] sm:$0xf]  ;;  %v5806_v55 = vpop.f32.mrf.mxu2  ;;  %v4143_v58 = vor.u32 %v5140_v56, %v4142_v19 }
 0x156   :  { %695 = vmatmul.bf16.gmra.mxu1 %v518_v59  ;;  %v4235_v12 = vor.u32 %v5129_v10, %v4234_v62  ;;  %v4126_v62 = vld [vmem:[#allocation4 + $0x80] sm:$0xf] }
 0x158   :  { %1333 = vmatpush.bf16.msrb.mxu2 %v4235_v12 }
 0x15c   :  { %v487_v7 = vpop.permute.xlu2 %486  ;;  %1334 = vmatpush.bf16.msrb.mxu2 %v4227_v17 }
 0x15d   :  { %v526_v11 = vsel %vm503_vm9, %v5705_v24, %v487_v7  ;;  %v4219_v24 = vor.u32 %v5125_v26, %v4218_v25  ;;  %v4244_v7 = vld [vmem:[#allocation4 + $0x68] sm:$0xf0]  ;;  %v5810_v12 = vpop.f32.mrf.mxu2  ;;  %v4358_v26 = vld [vmem:[#allocation4 + $0x170] sm:$0xf] }
 0x15e   :  { %v4247_v10 = vor.u32 %v5130_v6, %v4244_v7 }
 0x160   :  { %1335 = vmatpush.bf16.msrb.mxu2 %v4219_v24  ;;  %1396 = vmatpush.bf16.msrb.mxu1 %v4247_v10  ;;  %v5177_v24 = vld [vmem:[#allocation4 + $0x174] sm:$0xf0] }
 0x161   :  { %v4359_v30 = vor.u32 %v5177_v24, %v4358_v26 }
 0x162   :  { %4079 = vmatmul.msk.bf16.gmra.mxu2 %vm503_vm9, %v5094_v20  ;;  %v5815_v20 = vld [vmem:[%s6232_s4] ss:$0 sm:$0xff] }
 0x164   :  { %1336 = vmatpush.bf16.msrb.mxu2 %v4211_v33  ;;  %v5122_v33 = vld [vmem:[#allocation4 + $0x24] sm:$0xf] }
 0x165   :  { %v5817_v23 = vpop.f32.mrf.mxu2 }
 0x166   :  { %700 = vmatmul.bf16.gmra.mxu1 %v522_v0  ;;  %v5135_v0 = vld [vmem:[#allocation4 + $0x84] sm:$0xf] }
 0x167   :  { %v4131_v4 = vor.u32 %v5135_v0, %v4128_v1  ;;  %v5175_v0 = vld [vmem:[#allocation4 + $0x164] sm:$0xf0] }
 0x168   :  { %1337 = vmatpush.bf16.msrb.mxu2 %v4203_v43  ;;  %v5120_v43 = vld [vmem:[#allocation4 + $0x14] sm:$0xf] }
 0x169   :  { %1188 = vmatpush.bf16.msrb.mxu0 %v4131_v4  ;;  %v4207_v49 = vor.u32 %v5120_v43, %v4204_v45 }
 0x16c   :  { %1338 = vmatpush.bf16.msrb.mxu2 %v4195_v50 }
 0x16d   :  { %v757_v39 = vpop.f32.mrf.mxu2 }
 0x172   :  { %1339 = vmatmul.bf16.vlgmr.msrb.gmra.mxu2 %v5803_v52 }
 0x175   :  { %v760_v60 = vpop.f32.mrf.mxu2 }
 0x176   :  { %705 = vmatmul.bf16.gmra.mxu1 %v526_v11  ;;  %v5136_v11 = vld [vmem:[#allocation4 + $0x84] sm:$0xf0] }
 0x177   :  { %v4127_v13 = vor.u32 %v5136_v11, %v4126_v62 }
 0x184   :  { %v489_v34 = vpop.permute.xlu0 %488 }
 0x185   :  { %v530_v38 = vsel %vm503_vm9, %v5731_v44, %v489_v34  ;;  %v5142_v44 = vld [vmem:[#allocation4 + $0xb4] sm:$0xf0]  ;;  %v4212_v34 = vld [vmem:[#allocation4 + $0x28] sm:$0xf0] }
 0x186   :  { %710 = vmatmul.bf16.gmra.mxu1 %v530_v38  ;;  %v4151_v54 = vor.u32 %v5142_v44, %v4150_v53  ;;  %v4215_v38 = vor.u32 %v5122_v33, %v4212_v34  ;;  %v4196_v53 = vld [vmem:[#allocation4 + $0x8] sm:$0xf0] }
 0x188   :  { %1121 = vmatpush.bf16.msra.mxu3 %v4151_v54 }
 0x18c   :  { %1122 = vmatpush.bf16.msra.mxu3 %v4143_v58  ;;  %v493_v17 = vpop.permute.xlu2 %492 }
 0x18d   :  { %v538_v25 = vsel %vm503_vm9, %v5754_v8, %v493_v17  ;;  %v4363_v8 = vor.u32 %v5176_v36, %v4360_v37  ;;  %v5172_v36 = vld [vmem:[#allocation4 + $0x154] sm:$0xf]  ;;  %v4344_v37 = vld [vmem:[#allocation4 + $0x158] sm:$0xf0] }
 0x18f   :  { %1708 = vmatpush.bf16.msra.mxu0 %v4363_v8 }
 0x190   :  { %1123 = vmatpush.bf16.msra.mxu3 %v4135_v5 }
 0x194   :  { %v491_v59 = vpop.permute.xlu1 %490  ;;  %1124 = vmatpush.bf16.msra.mxu3 %v4127_v13 }
 0x195   :  { %v534_v63 = vsel %vm503_vm9, %v5744_v57, %v491_v59  ;;  %v5128_v57 = vld [vmem:[#allocation4 + $0x54] sm:$0xf] }
 0x196   :  { %715 = vmatmul.bf16.gmra.mxu1 %v534_v63  ;;  %v4239_v9 = vor.u32 %v5128_v57, %v4236_v14  ;;  %v4350_v63 = vld [vmem:[#allocation4 + $0x160] sm:$0xf]  ;;  %v4352_v14 = vld [vmem:[#allocation4 + $0x168] sm:$0xf0] }
 0x197   :  { %v4351_v2 = vor.u32 %v5175_v0, %v4350_v63 }
 0x198   :  { %1397 = vmatpush.bf16.msrb.mxu1 %v4239_v9  ;;  %1644 = vmatpush.bf16.msrb.mxu3 %v4359_v30 }
 0x19c   :  { %1398 = vmatpush.bf16.msrb.mxu1 %v4231_v21  ;;  %1645 = vmatpush.bf16.msrb.mxu3 %v4351_v2 }
 0x1a0   :  { %1399 = vmatpush.bf16.msrb.mxu1 %v4223_v32  ;;  %v5173_v32 = vld [vmem:[#allocation4 + $0x154] sm:$0xf0] }
 0x1a3   :  { %v681_v22 = vpop.f32.mrf.mxu1 }
 0x1a4   :  { %v682_v29 = vadd.f32 %v5815_v20, %v681_v22  ;;  %1400 = vmatpush.bf16.msrb.mxu1 %v4215_v38  ;;  %v4347_v38 = vor.u32 %v5172_v36, %v4344_v37 }
 0x1a6   :  { %720 = vmatmul.bf16.gmra.mxu1 %v538_v25  ;;  %v746_v35 = vadd.f32 %v5796_v18, %v682_v29  ;;  %v5118_v18 = vld [vmem:[#allocation4 + $0x4] sm:$0xf] }
 0x1a7   :  { %v4199_v19 = vor.u32 %v5118_v18, %v4196_v53  ;;  %v4334_v53 = vld [vmem:[#allocation4 + $0x140] sm:$0xf] }
 0x1a8   :  { %v822_v47 = vmul.f32 0.1, %v746_v35  ;;  %vm800_vm4 = vcmp.gt.f32.partialorder %v746_v35, 0.0  ;;  %1401 = vmatpush.bf16.msrb.mxu1 %v4207_v49 }
 0x1aa   :  { %v844_v44 = vsel %vm800_vm4, %v746_v35, %v822_v47  ;;  %v4343_v35 = vor.u32 %v5173_v32, %v4342_v31 }
 0x1ab   :  { %v683_v40 = vpop.f32.mrf.mxu1 }
 0x1ac   :  { %v684_v41 = vadd.f32 %v5815_v20, %v683_v40  ;;  %1402 = vmatpush.bf16.msrb.mxu1 %v4199_v19  ;;  %1646 = vmatpush.bf16.msrb.mxu3 %v4343_v35 }
 0x1ae   :  { %v748_v48 = vadd.f32 %v5801_v42, %v684_v41 }
 0x1b0   :  { %vm801_vm13 = vcmp.gt.f32.partialorder %v748_v48, 0.0  ;;  %v823_v50 = vmul.f32 0.1, %v748_v48 }
 0x1b2   :  { %v845_v54 = vsel %vm801_vm13, %v748_v48, %v823_v50 }
 0x1b3   :  { %v5357_v56 = vpack.c.bf16 %v845_v54, %v844_v44  ;;  %v686_v58 = vpop.f32.mrf.mxu1  ;;  %v5171_v44 = vld [vmem:[#allocation4 + $0x144] sm:$0xf0] }
 0x1b4   :  { %v495_v59 = vpop.permute.xlu0 %494  ;;  %v687_v42 = vadd.f32 %v5815_v20, %v686_v58  ;;  %v4335_v19 = vor.u32 %v5171_v44, %v4334_v53 }
 0x1b5   :  { %5409 = vst [vmem:[#allocation3 + $0x8] sm:$0xff] %v5357_v56   ;;  %v542_v51 = vsel %vm503_vm9, %v5765_v28, %v495_v59  ;;  %v5170_v59 = vld [vmem:[#allocation4 + $0x144] sm:$0xf] }
 0x1b6   :  { %725 = vmatmul.bf16.gmra.mxu1 %v542_v51  ;;  %v751_v61 = vadd.f32 %v5806_v55, %v687_v42  ;;  %v762_v55 = vpop.f32.mrf.mxu2  ;;  %1647 = vmatpush.bf16.msrb.mxu3 %v4335_v19  ;;  %v4336_v51 = vld [vmem:[#allocation4 + $0x148] sm:$0xf0] }
 0x1b8   :  { %v824_v5 = vmul.f32 0.1, %v751_v61  ;;  %vm802_vm14 = vcmp.gt.f32.partialorder %v751_v61, 0.0 }
 0x1ba   :  { %v846_v7 = vsel %vm802_vm14, %v751_v61, %v824_v5 }
 0x1bb   :  { %v688_v1 = vpop.f32.mrf.mxu1 }
 0x1bc   :  { %v689_v3 = vadd.f32 %v5815_v20, %v688_v1  ;;  %v5830_v4 = vld [vmem:[#allocation3 + $0x8] sm:$0xff] }
 0x1bd   :  { %1125 = vmatmul.bf16.vlgmr.msra.gmra.mxu3 %v5830_v4  ;;  %1189 = vmatmul.bf16.vlgmr.msrb.gmra.mxu0 %v5830_v4 }
 0x1be   :  { %v753_v6 = vadd.f32 %v5810_v12, %v689_v3  ;;  %1344 = vmatmul.bf16.gmra.mxu2 %v5830_v4  ;;  %v5174_v12 = vld [vmem:[#allocation4 + $0x164] sm:$0xf]  ;;  %v765_v21 = vpop.f32.mrf.mxu2 }
 0x1bf   :  { %v4355_v15 = vor.u32 %v5174_v12, %v4352_v14 }
 0x1c0   :  { %vm803_vm15 = vcmp.gt.f32.partialorder %v753_v6, 0.0  ;;  %v825_v28 = vmul.f32 0.1, %v753_v6 }
 0x1c1   :  { %1709 = vmatpush.bf16.msra.mxu0 %v4355_v15 }
 0x1c2   :  { %v847_v62 = vsel %vm803_vm15, %v753_v6, %v825_v28 }
 0x1c3   :  { %v5362_v10 = vpack.c.bf16 %v847_v62, %v846_v7  ;;  %v691_v11 = vpop.f32.mrf.mxu1  ;;  %v4326_v62 = vld [vmem:[#allocation4 + $0x130] sm:$0xf] }
 0x1c4   :  { %v497_v13 = vpop.permute.xlu1 %496  ;;  %v692_v9 = vadd.f32 %v5815_v20, %v691_v11 }
 0x1c5   :  { %5410 = vst [vmem:[#allocation3 + $0x10] sm:$0xff] %v5362_v10   ;;  %v546_v57 = vsel %vm503_vm9, %v5777_v46, %v497_v13  ;;  %1710 = vmatpush.bf16.msra.mxu0 %v4347_v38  ;;  %v5169_v10 = vld [vmem:[#allocation4 + $0x134] sm:$0xf0] }
 0x1c6   :  { %730 = vmatmul.bf16.gmra.mxu1 %v546_v57  ;;  %v756_v16 = vadd.f32 %v5817_v23, %v692_v9  ;;  %v767_v33 = vpop.f32.mrf.mxu2  ;;  %v4327_v13 = vor.u32 %v5169_v10, %v4326_v62 }
 0x1c8   :  { %v826_v26 = vmul.f32 0.1, %v756_v16  ;;  %vm804_vm9 = vcmp.gt.f32.partialorder %v756_v16, 0.0  ;;  %1648 = vmatpush.bf16.msrb.mxu3 %v4327_v13 }
 0x1ca   :  { %v848_v27 = vsel %vm804_vm9, %v756_v16, %v826_v26  ;;  %v5168_v26 = vld [vmem:[#allocation4 + $0x134] sm:$0xf] }
 0x1cb   :  { %v693_v17 = vpop.f32.mrf.mxu1 }
 0x1cc   :  { %v694_v22 = vadd.f32 %v5815_v20, %v693_v17  ;;  %v5841_v25 = vld [vmem:[#allocation3 + $0x10] sm:$0xff] }
 0x1cd   :  { %1130 = vmatmul.bf16.gmra.mxu3 %v5841_v25  ;;  %1194 = vmatmul.bf16.gmra.mxu0 %v5841_v25 }
 0x1ce   :  { %v758_v24 = vadd.f32 %v757_v39, %v694_v22  ;;  %1349 = vmatmul.bf16.gmra.mxu2 %v5841_v25 }
 0x1d0   :  { %vm805_vm0 = vcmp.gt.f32.partialorder %v758_v24, 0.0  ;;  %v827_v46 = vmul.f32 0.1, %v758_v24 }
 0x1d2   :  { %v849_v29 = vsel %vm805_vm0, %v758_v24, %v827_v46  ;;  %v4328_v24 = vld [vmem:[#allocation4 + $0x138] sm:$0xf0] }
 0x1d3   :  { %v5367_v23 = vpack.c.bf16 %v849_v29, %v848_v27  ;;  %v696_v30 = vpop.f32.mrf.mxu1  ;;  %v4331_v27 = vor.u32 %v5168_v26, %v4328_v24 }
 0x1d4   :  { %v697_v34 = vadd.f32 %v5815_v20, %v696_v30 }
 0x1d5   :  { %5411 = vst [vmem:[#allocation3 + $0x18] sm:$0xff] %v5367_v23  }
 0x1d6   :  { %1403 = vmatmul.bf16.vlgmr.msrb.gmra.mxu1 %v5803_v52  ;;  %v761_v40 = vadd.f32 %v760_v60, %v697_v34  ;;  %v770_v52 = vpop.f32.mrf.mxu2  ;;  %v4339_v60 = vor.u32 %v5170_v59, %v4336_v51 }
 0x1d8   :  { %v828_v45 = vmul.f32 0.1, %v761_v40  ;;  %vm806_vm1 = vcmp.gt.f32.partialorder %v761_v40, 0.0  ;;  %1711 = vmatpush.bf16.msra.mxu0 %v4339_v60 }
 0x1da   :  { %v850_v48 = vsel %vm806_vm1, %v761_v40, %v828_v45 }
 0x1db   :  { %v698_v8 = vpop.f32.mrf.mxu1 }
 0x1dc   :  { %v699_v41 = vadd.f32 %v5815_v20, %v698_v8  ;;  %v5849_v43 = vld [vmem:[#allocation3 + $0x18] sm:$0xff]  ;;  %1712 = vmatpush.bf16.msra.mxu0 %v4331_v27 }
 0x1dd   :  { %1135 = vmatmul.bf16.gmra.mxu3 %v5849_v43  ;;  %1199 = vmatmul.bf16.gmra.mxu0 %v5849_v43 }
 0x1de   :  { %v763_v39 = vadd.f32 %v762_v55, %v699_v41  ;;  %1354 = vmatmul.bf16.gmra.mxu2 %v5849_v43  ;;  %v772_v56 = vpop.f32.mrf.mxu2  ;;  %v4318_v41 = vld [vmem:[#allocation4 + $0x120] sm:$0xf] }
 0x1e0   :  { %vm807_vm2 = vcmp.gt.f32.partialorder %v763_v39, 0.0  ;;  %v829_v47 = vmul.f32 0.1, %v763_v39 }
 0x1e2   :  { %v851_v49 = vsel %vm807_vm2, %v763_v39, %v829_v47  ;;  %v5166_v47 = vld [vmem:[#allocation4 + $0x124] sm:$0xf] }
 0x1e3   :  { %v5372_v50 = vpack.c.bf16 %v851_v49, %v850_v48  ;;  %v701_v18 = vpop.f32.mrf.mxu1  ;;  %v4320_v48 = vld [vmem:[#allocation4 + $0x128] sm:$0xf0] }
 0x1e4   :  { %v702_v54 = vadd.f32 %v5815_v20, %v701_v18 }
 0x1e5   :  { %5412 = vst [vmem:[#allocation3 + $0x20] sm:$0xff] %v5372_v50   ;;  %v4323_v50 = vor.u32 %v5166_v47, %v4320_v48 }
 0x1e6   :  { %1408 = vmatmul.bf16.gmra.mxu1 %v5830_v4  ;;  %v766_v58 = vadd.f32 %v765_v21, %v702_v54  ;;  %v775_v28 = vpop.f32.mrf.mxu2 }
 0x1e7   :  { %1713 = vmatpush.bf16.msra.mxu0 %v4323_v50 }
 0x1e8   :  { %v830_v0 = vmul.f32 0.1, %v766_v58  ;;  %vm808_vm3 = vcmp.gt.f32.partialorder %v766_v58, 0.0 }
 0x1ea   :  { %v852_v3 = vsel %vm808_vm3, %v766_v58, %v830_v0  ;;  %v4310_v0 = vld [vmem:[#allocation4 + $0x110] sm:$0xf] }
 0x1eb   :  { %v703_v42 = vpop.f32.mrf.mxu1 }
 0x1ec   :  { %v704_v61 = vadd.f32 %v5815_v20, %v703_v42  ;;  %v5857_v63 = vld [vmem:[#allocation3 + $0x20] sm:$0xff] }
 0x1ed   :  { %1140 = vmatmul.bf16.gmra.mxu3 %v5857_v63  ;;  %1204 = vmatmul.bf16.gmra.mxu0 %v5857_v63 }
 0x1ee   :  { %v768_v1 = vadd.f32 %v767_v33, %v704_v61  ;;  %1359 = vmatmul.bf16.gmra.mxu2 %v5857_v63  ;;  %v777_v14 = vpop.f32.mrf.mxu2 }
 0x1f0   :  { %vm809_vm5 = vcmp.gt.f32.partialorder %v768_v1, 0.0  ;;  %v831_v2 = vmul.f32 0.1, %v768_v1 }
 0x1f2   :  { %v853_v4 = vsel %vm809_vm5, %v768_v1, %v831_v2  ;;  %v5165_v1 = vld [vmem:[#allocation4 + $0x114] sm:$0xf0]  ;;  %v5164_v2 = vld [vmem:[#allocation4 + $0x114] sm:$0xf] }
 0x1f3   :  { %v5377_v5 = vpack.c.bf16 %v853_v4, %v852_v3  ;;  %v706_v6 = vpop.f32.mrf.mxu1  ;;  %v4311_v4 = vor.u32 %v5165_v1, %v4310_v0  ;;  %v5185_v0 = vld [vmem:[#allocation7 + $0x38] sm:$0xff] }
 0x1f4   :  { %v707_v55 = vadd.f32 %v5815_v20, %v706_v6  ;;  %2162 = vmatpush.bf16.msra.mxu2 %v5185_v0  ;;  %v5178_v0 = vld [vmem:[#allocation7] sm:$0xff] }
 0x1f5   :  { %5413 = vst [vmem:[#allocation3 + $0x28] sm:$0xff] %v5377_v5   ;;  %v4312_v5 = vld [vmem:[#allocation4 + $0x118] sm:$0xf0] }
 0x1f6   :  { %1413 = vmatmul.bf16.gmra.mxu1 %v5841_v25  ;;  %v771_v7 = vadd.f32 %v770_v52, %v707_v55  ;;  %v780_v29 = vpop.f32.mrf.mxu2  ;;  %v4315_v55 = vor.u32 %v5164_v2, %v4312_v5 }
 0x1f8   :  { %v832_v9 = vmul.f32 0.1, %v771_v7  ;;  %vm810_vm6 = vcmp.gt.f32.partialorder %v771_v7, 0.0  ;;  %1714 = vmatpush.bf16.msra.mxu0 %v4315_v55 }
 0x1fa   :  { %v854_v17 = vsel %vm810_vm6, %v771_v7, %v832_v9 }
 0x1fb   :  { %v708_v11 = vpop.f32.mrf.mxu1 }
 0x1fc   :  { %v709_v57 = vadd.f32 %v5815_v20, %v708_v11  ;;  %v5865_v12 = vld [vmem:[#allocation3 + $0x28] sm:$0xff] }
 0x1fd   :  { %1145 = vmatmul.bf16.gmra.mxu3 %v5865_v12  ;;  %1209 = vmatmul.bf16.gmra.mxu0 %v5865_v12 }
 0x1fe   :  { %v773_v15 = vadd.f32 %v772_v56, %v709_v57  ;;  %1364 = vmatmul.bf16.gmra.mxu2 %v5865_v12  ;;  %v782_v36 = vpop.f32.mrf.mxu2 }
 0x200   :  { %vm811_vm7 = vcmp.gt.f32.partialorder %v773_v15, 0.0  ;;  %v833_v16 = vmul.f32 0.1, %v773_v15 }
 0x202   :  { %v855_v21 = vsel %vm811_vm7, %v773_v15, %v833_v16  ;;  %v4302_v15 = vld [vmem:[#allocation4 + $0x100] sm:$0xf]  ;;  %v5163_v16 = vld [vmem:[#allocation4 + $0x104] sm:$0xf0] }
 0x203   :  { %v5382_v22 = vpack.c.bf16 %v855_v21, %v854_v17  ;;  %v711_v25 = vpop.f32.mrf.mxu1  ;;  %v4303_v17 = vor.u32 %v5163_v16, %v4302_v15 }
 0x204   :  { %v712_v46 = vadd.f32 %v5815_v20, %v711_v25 }
 0x205   :  { %5414 = vst [vmem:[#allocation3 + $0x30] sm:$0xff] %v5382_v22  }
 0x206   :  { %1418 = vmatmul.bf16.gmra.mxu1 %v5849_v43  ;;  %v776_v23 = vadd.f32 %v775_v28, %v712_v46  ;;  %v5167_v43 = vld [vmem:[#allocation4 + $0x124] sm:$0xf0]  ;;  %v785_v18 = vpop.f32.mrf.mxu2 }
 0x207   :  { %v4319_v39 = vor.u32 %v5167_v43, %v4318_v41 }
 0x208   :  { %v834_v33 = vmul.f32 0.1, %v776_v23  ;;  %vm812_vm8 = vcmp.gt.f32.partialorder %v776_v23, 0.0 }
 0x209   :  { %1649 = vmatpush.bf16.msrb.mxu3 %v4319_v39 }
 0x20a   :  { %v856_v37 = vsel %vm812_vm8, %v776_v23, %v834_v33  ;;  %v5162_v23 = vld [vmem:[#allocation4 + $0x104] sm:$0xf] }
 0x20b   :  { %v713_v30 = vpop.f32.mrf.mxu1 }
 0x20c   :  { %v714_v31 = vadd.f32 %v5815_v20, %v713_v30  ;;  %v5873_v32 = vld [vmem:[#allocation3 + $0x30] sm:$0xff] }
 0x20d   :  { %1150 = vmatmul.bf16.gmra.mxu3 %v5873_v32  ;;  %1214 = vmatmul.bf16.gmra.mxu0 %v5873_v32  ;;  %v4304_v30 = vld [vmem:[#allocation4 + $0x108] sm:$0xf0] }
 0x20e   :  { %v778_v34 = vadd.f32 %v777_v14, %v714_v31  ;;  %1369 = vmatmul.bf16.gmra.mxu2 %v5873_v32  ;;  %v787_v60 = vpop.f32.mrf.mxu2  ;;  %1650 = vmatpush.bf16.msrb.mxu3 %v4311_v4  ;;  %v4307_v31 = vor.u32 %v5162_v23, %v4304_v30  ;;  %v5199_v23 = vld [vmem:[#allocation7 + $0xa8] sm:$0xff] }
 0x210   :  { %vm813_vm10 = vcmp.gt.f32.partialorder %v778_v34, 0.0  ;;  %v835_v35 = vmul.f32 0.1, %v778_v34  ;;  %1715 = vmatpush.bf16.msra.mxu0 %v4307_v31 }
 0x212   :  { %v857_v38 = vsel %vm813_vm10, %v778_v34, %v835_v35  ;;  %1651 = vmatpush.bf16.msrb.mxu3 %v4303_v17  ;;  %v5154_v17 = vld [vmem:[#allocation3 + $0x28] sm:$0xff] }
 0x213   :  { %v5387_v40 = vpack.c.bf16 %v857_v38, %v856_v37  ;;  %v716_v8 = vpop.f32.mrf.mxu1 }
 0x214   :  { %v717_v45 = vadd.f32 %v5815_v20, %v716_v8 }
 0x215   :  { %5415 = vst [vmem:[#allocation3 + $0x38] sm:$0xff] %v5387_v40  }
 0x216   :  { %1423 = vmatmul.bf16.gmra.mxu1 %v5857_v63  ;;  %v781_v52 = vadd.f32 %v780_v29, %v717_v45  ;;  %v790_v10 = vpop.f32.mrf.mxu2 }
 0x218   :  { %v836_v54 = vmul.f32 0.1, %v781_v52  ;;  %vm814_vm11 = vcmp.gt.f32.partialorder %v781_v52, 0.0 }
 0x21a   :  { %v858_v58 = vsel %vm814_vm11, %v781_v52, %v836_v54 }
 0x21b   :  { %v718_v49 = vpop.f32.mrf.mxu1 }
 0x21c   :  { %v719_v53 = vadd.f32 %v5815_v20, %v718_v49  ;;  %v5881_v44 = vld [vmem:[#allocation3 + $0x38] sm:$0xff] }
 0x21d   :  { %1155 = vmatmul.bf16.gmra.mxu3 %v5881_v44  ;;  %1219 = vmatmul.bf16.gmra.mxu0 %v5881_v44 }
 0x21e   :  { %v783_v19 = vadd.f32 %v782_v36, %v719_v53  ;;  %1374 = vmatmul.bf16.gmra.mxu2 %v5881_v44  ;;  %v792_v21 = vpop.f32.mrf.mxu2 }
 0x220   :  { %vm815_vm12 = vcmp.gt.f32.partialorder %v783_v19, 0.0  ;;  %v837_v56 = vmul.f32 0.1, %v783_v19 }
 0x222   :  { %v859_v59 = vsel %vm815_vm12, %v783_v19, %v837_v56 }
 0x223   :  { %v5392_v51 = vpack.c.bf16 %v859_v59, %v858_v58  ;;  %v721_v42 = vpop.f32.mrf.mxu1 }
 0x224   :  { %v722_v61 = vadd.f32 %v5815_v20, %v721_v42 }
 0x225   :  { %5416 = vst [vmem:[#allocation3 + $0x40] sm:$0xff] %v5392_v51  }
 0x226   :  { %1428 = vmatmul.bf16.gmra.mxu1 %v5865_v12  ;;  %v786_v63 = vadd.f32 %v785_v18, %v722_v61  ;;  %v795_v34 = vpop.f32.mrf.mxu2 }
 0x228   :  { %v838_v7 = vmul.f32 0.1, %v786_v63  ;;  %vm816_vm4 = vcmp.gt.f32.partialorder %v786_v63, 0.0 }
 0x22a   :  { %v860_v13 = vsel %vm816_vm4, %v786_v63, %v838_v7  ;;  %v5151_v63 = vld [vmem:[#allocation3 + $0x10] sm:$0xff] }
 0x22b   :  { %v723_v3 = vpop.f32.mrf.mxu1 }
 0x22c   :  { %v724_v6 = vadd.f32 %v5815_v20, %v723_v3  ;;  %v5889_v28 = vld [vmem:[#allocation3 + $0x40] sm:$0xff] }
 0x22d   :  { %1160 = vmatmul.bf16.gmra.mxu3 %v5889_v28  ;;  %1224 = vmatmul.bf16.gmra.mxu0 %v5889_v28  ;;  %v5193_v3 = vld [vmem:[#allocation7 + $0x78] sm:$0xff] }
 0x22e   :  { %v788_v62 = vadd.f32 %v787_v60, %v724_v6  ;;  %1379 = vmatmul.bf16.gmra.mxu2 %v5889_v28  ;;  %v797_v48 = vpop.f32.mrf.mxu2  ;;  %2176 = vmatpush.bf16.msra.mxu1 %v5193_v3  ;;  %v5152_v6 = vld [vmem:[#allocation3 + $0x18] sm:$0xff] }
 0x230   :  { %vm817_vm13 = vcmp.gt.f32.partialorder %v788_v62, 0.0  ;;  %v839_v11 = vmul.f32 0.1, %v788_v62 }
 0x232   :  { %v861_v57 = vsel %vm817_vm13, %v788_v62, %v839_v11  ;;  %v5184_v62 = vld [vmem:[#allocation7 + $0x30] sm:$0xff] }
 0x233   :  { %v5397_v12 = vpack.c.bf16 %v861_v57, %v860_v13  ;;  %v726_v14 = vpop.f32.mrf.mxu1  ;;  %2163 = vmatpush.bf16.msra.mxu2 %v5184_v62  ;;  %v5153_v13 = vld [vmem:[#allocation3 + $0x20] sm:$0xff]  ;;  %v5192_v57 = vld [vmem:[#allocation7 + $0x70] sm:$0xff]  ;;  %v5187_v62 = vld [vmem:[#allocation7 + $0x48] sm:$0xff] }
 0x234   :  { %v727_v9 = vadd.f32 %v5815_v20, %v726_v14  ;;  %2177 = vmatpush.bf16.msra.mxu1 %v5192_v57  ;;  %v5208_v57 = vld [vmem:[#allocation7 + $0xf0] sm:$0xff] }
 0x235   :  { %5417 = vst [vmem:[#allocation3 + $0x48] sm:$0xff] %v5397_v12  }
 0x236   :  { %1433 = vmatmul.bf16.gmra.mxu1 %v5873_v32  ;;  %v791_v22 = vadd.f32 %v790_v10, %v727_v9  ;;  %v5200_v9 = vld [vmem:[#allocation7 + $0xb0] sm:$0xff]  ;;  %v5959_v30 = vpop.f32.mrf.mxu2 }
 0x238   :  { %v840_v27 = vmul.f32 0.1, %v791_v22  ;;  %vm818_vm14 = vcmp.gt.f32.partialorder %v791_v22, 0.0 }
 0x23a   :  { %v5896_v26 = vpop.f32.mrf.mxu0  ;;  %v862_v35 = vsel %vm818_vm14, %v791_v22, %v840_v27 }
 0x23b   :  { %v728_v25 = vpop.f32.mrf.mxu1 }
 0x23c   :  { %v729_v24 = vadd.f32 %v5815_v20, %v728_v25  ;;  %v5116_v46 = vld [vmem:[#allocation3 + $0x48] sm:$0xff] }
 0x23d   :  { %1165 = vmatmul.bf16.gmra.mxu3 %v5116_v46  ;;  %1229 = vmatmul.bf16.gmra.mxu0 %v5116_v46 }
 0x23e   :  { %v793_v29 = vadd.f32 %v792_v21, %v729_v24  ;;  %1384 = vmatmul.bf16.gmra.mxu2 %v5116_v46  ;;  %v5183_v21 = vld [vmem:[#allocation7 + $0x28] sm:$0xff] }
 0x23f   :  { %2164 = vmatpush.bf16.msra.mxu2 %v5183_v21  ;;  %v5191_v24 = vld [vmem:[#allocation7 + $0x68] sm:$0xff]  ;;  %v5186_v21 = vld [vmem:[#allocation7 + $0x40] sm:$0xff] }
 0x240   :  { %vm819_vm15 = vcmp.gt.f32.partialorder %v793_v29, 0.0  ;;  %v841_v32 = vmul.f32 0.1, %v793_v29  ;;  %v5899_v33 = vpop.f32.mrf.mxu3  ;;  %2178 = vmatpush.bf16.msra.mxu1 %v5191_v24  ;;  %v5217_v24 = vld [vmem:[#allocation7 + $0x138] sm:$0xff] }
 0x242   :  { %v863_v36 = vsel %vm819_vm15, %v793_v29, %v841_v32  ;;  %v5901_v40 = vpop.f32.mrf.mxu0  ;;  %v5155_v29 = vld [vmem:[#allocation3 + $0x30] sm:$0xff] }
 0x243   :  { %v5402_v37 = vpack.c.bf16 %v863_v36, %v862_v35  ;;  %v731_v38 = vpop.f32.mrf.mxu1 }
 0x244   :  { %v732_v8 = vadd.f32 %v5815_v20, %v731_v38 }
 0x245   :  { %5418 = vst [vmem:[#allocation3 + $0x50] sm:$0xff] %v5402_v37   ;;  %v5969_v37 = vpop.f32.mrf.mxu2 }
 0x246   :  { %1438 = vmatmul.bf16.gmra.mxu1 %v5881_v44  ;;  %v796_v43 = vadd.f32 %v795_v34, %v732_v8  ;;  %v5182_v34 = vld [vmem:[#allocation7 + $0x20] sm:$0xff] }
 0x247   :  { %2165 = vmatpush.bf16.msra.mxu2 %v5182_v34  ;;  %v5190_v8 = vld [vmem:[#allocation7 + $0x60] sm:$0xff] }
 0x248   :  { %v5905_v41 = vpop.f32.mrf.mxu3  ;;  %v842_v49 = vmul.f32 0.1, %v796_v43  ;;  %vm820_vm9 = vcmp.gt.f32.partialorder %v796_v43, 0.0  ;;  %2179 = vmatpush.bf16.msra.mxu1 %v5190_v8  ;;  %v5197_v8 = vld [vmem:[#allocation7 + $0x98] sm:$0xff] }
 0x24a   :  { %v5907_v39 = vpop.f32.mrf.mxu0  ;;  %v864_v44 = vsel %vm820_vm9, %v796_v43, %v842_v49  ;;  %v5198_v49 = vld [vmem:[#allocation7 + $0xa0] sm:$0xff] }
 0x24b   :  { %v733_v45 = vpop.f32.mrf.mxu1 }
 0x24c   :  { %v734_v52 = vadd.f32 %v5815_v20, %v733_v45  ;;  %v5117_v47 = vld [vmem:[#allocation3 + $0x50] sm:$0xff]  ;;  %v5156_v45 = vld [vmem:[#allocation3 + $0x38] sm:$0xff] }
 0x24d   :  { %1170 = vmatmul.bf16.gmra.mxu3 %v5117_v47  ;;  %1234 = vmatmul.bf16.gmra.mxu0 %v5117_v47 }
 0x24e   :  { %v798_v50 = vadd.f32 %v797_v48, %v734_v52  ;;  %1389 = vmatmul.bf16.gmra.mxu2 %v5117_v47  ;;  %v5181_v52 = vld [vmem:[#allocation7 + $0x18] sm:$0xff] }
 0x24f   :  { %2166 = vmatpush.bf16.msra.mxu2 %v5181_v52  ;;  %v5206_v52 = vld [vmem:[#allocation7 + $0xe0] sm:$0xff] }
 0x250   :  { %vm821_vm0 = vcmp.gt.f32.partialorder %v798_v50, 0.0  ;;  %v843_v18 = vmul.f32 0.1, %v798_v50  ;;  %v5910_v53 = vpop.f32.mrf.mxu3 }
 0x252   :  { %v865_v54 = vsel %vm821_vm0, %v798_v50, %v843_v18  ;;  %v5912_v56 = vpop.f32.mrf.mxu0  ;;  %v5189_v18 = vld [vmem:[#allocation7 + $0x58] sm:$0xff] }
 0x253   :  { %v5407_v19 = vpack.c.bf16 %v865_v54, %v864_v44  ;;  %v5961_v31 = vpop.f32.mrf.mxu1  ;;  %v5979_v44 = vpop.f32.mrf.mxu2  ;;  %2180 = vmatpush.bf16.msra.mxu1 %v5189_v18 }
 0x255   :  { %5419 = vst [vmem:[#allocation3 + $0x58] sm:$0xff] %v5407_v19   ;;  %v5179_v19 = vld [vmem:[#allocation7 + $0x8] sm:$0xff] }
 0x256   :  { %1443 = vmatmul.bf16.gmra.mxu1 %v5889_v28  ;;  %v5201_v28 = vld [vmem:[#allocation7 + $0xb8] sm:$0xff] }
 0x257   :  { %2329 = vmatpush.bf16.msra.mxu3 %v5201_v28 }
 0x258   :  { %v5915_v20 = vpop.f32.mrf.mxu3 }
 0x25a   :  { %v5917_v58 = vpop.f32.mrf.mxu0 }
 0x25b   :  { %2330 = vmatpush.bf16.msra.mxu3 %v5200_v9  ;;  %v5971_v38 = vpop.f32.mrf.mxu1  ;;  %v5987_v9 = vpop.f32.mrf.mxu2 }
 0x25c   :  { %v5134_v59 = vld [vmem:[#allocation3 + $0x58] sm:$0xff] }
 0x25d   :  { %1175 = vmatmul.bf16.gmra.mxu3 %v5134_v59  ;;  %1239 = vmatmul.bf16.gmra.mxu0 %v5134_v59  ;;  %v5313_v59 = vld [vmem:[#allocation7 + $0x438] sm:$0xff] }
 0x25e   :  { %3512 = vmatpush.bf16.msrb.mxu0 %v5313_v59 }
 0x25f   :  { %2331 = vmatpush.bf16.msra.mxu3 %v5199_v23  ;;  %v5207_v23 = vld [vmem:[#allocation7 + $0xe8] sm:$0xff] }
 0x260   :  { %v5919_v51 = vpop.f32.mrf.mxu3 }
 0x262   :  { %v5921_v42 = vpop.f32.mrf.mxu0 }
 0x263   :  { %v5981_v54 = vpop.f32.mrf.mxu1  ;;  %2332 = vmatpush.bf16.msra.mxu3 %v5198_v49  ;;  %v5995_v49 = vpop.f32.mrf.mxu2 }
 0x266   :  { %1448 = vmatmul.bf16.gmra.mxu1 %v5116_v46 }
 0x267   :  { %2333 = vmatpush.bf16.msra.mxu3 %v5197_v8 }
 0x268   :  { %v5923_v60 = vpop.f32.mrf.mxu3 }
 0x26a   :  { %v5925_v61 = vpop.f32.mrf.mxu0 }
 0x26d   :  { %1652 = vmatmul.bf16.vlgmr.msrb.gmra.mxu3 %v5151_v63  ;;  %1716 = vmatmul.bf16.vlgmr.msra.gmra.mxu0 %v5151_v63  ;;  %v5188_v63 = vld [vmem:[#allocation7 + $0x50] sm:$0xff] }
 0x26e   :  { %2181 = vmatpush.bf16.msra.mxu1 %v5188_v63  ;;  %v5205_v63 = vld [vmem:[#allocation7 + $0xd8] sm:$0xff] }
 0x270   :  { %v5927_v1 = vpop.f32.mrf.mxu3 }
 0x272   :  { %v5929_v2 = vpop.f32.mrf.mxu0  ;;  %2182 = vmatpush.bf16.msra.mxu1 %v5187_v62  ;;  %v5158_v62 = vld [vmem:[#allocation3 + $0x48] sm:$0xff] }
 0x276   :  { %1453 = vmatmul.bf16.gmra.mxu1 %v5117_v47  ;;  %v5180_v47 = vld [vmem:[#allocation7 + $0x10] sm:$0xff] }
 0x277   :  { %2167 = vmatpush.bf16.msra.mxu2 %v5180_v47  ;;  %2183 = vmatpush.bf16.msra.mxu1 %v5186_v21  ;;  %v5196_v47 = vld [vmem:[#allocation7 + $0x90] sm:$0xff]  ;;  %v5194_v21 = vld [vmem:[#allocation7 + $0x80] sm:$0xff] }
 0x278   :  { %v5931_v4 = vpop.f32.mrf.mxu3  ;;  %2334 = vmatpush.bf16.msra.mxu3 %v5196_v47 }
 0x27a   :  { %v5933_v5 = vpop.f32.mrf.mxu0 }
 0x27b   :  { %2168 = vmatpush.bf16.msra.mxu2 %v5179_v19  ;;  %2498 = vmatpush.bf16.msrb.mxu1 %v5217_v24  ;;  %v5215_v19 = vld [vmem:[#allocation7 + $0x128] sm:$0xff]  ;;  %v5213_v24 = vld [vmem:[#allocation7 + $0x118] sm:$0xff] }
 0x27d   :  { %1657 = vmatmul.bf16.gmra.mxu3 %v5152_v6  ;;  %1721 = vmatmul.bf16.gmra.mxu0 %v5152_v6  ;;  %v5209_v6 = vld [vmem:[#allocation7 + $0xf8] sm:$0xff] }
 0x27f   :  { %2169 = vmatpush.bf16.msra.mxu2 %v5178_v0 }
 0x280   :  { %v5935_v55 = vpop.f32.mrf.mxu3 }
 0x282   :  { %v5937_v7 = vpop.f32.mrf.mxu0 }
 0x283   :  { %2343 = vmatpush.bf16.msrb.mxu2 %v5209_v6  ;;  %v5195_v6 = vld [vmem:[#allocation7 + $0x88] sm:$0xff] }
 0x284   :  { %2335 = vmatpush.bf16.msra.mxu3 %v5195_v6  ;;  %v5212_v6 = vld [vmem:[#allocation7 + $0x110] sm:$0xff] }
 0x287   :  { %2344 = vmatpush.bf16.msrb.mxu2 %v5208_v57  ;;  %v5204_v57 = vld [vmem:[#allocation7 + $0xd0] sm:$0xff] }
 0x288   :  { %v5939_v10 = vpop.f32.mrf.mxu3  ;;  %2336 = vmatpush.bf16.msra.mxu3 %v5194_v21  ;;  %v5223_v21 = vld [vmem:[#allocation7 + $0x168] sm:$0xff] }
 0x28a   :  { %v5941_v11 = vpop.f32.mrf.mxu0 }
 0x28b   :  { %2345 = vmatpush.bf16.msrb.mxu2 %v5207_v23  ;;  %v5225_v23 = vld [vmem:[#allocation7 + $0x178] sm:$0xff] }
 0x28c   :  { %2512 = vmatpush.bf16.msrb.mxu3 %v5225_v23  ;;  %v1816_v23 = vld [vmem:[%s6234_s6] sm:$0x3] }
 0x28d   :  { %1662 = vmatmul.bf16.gmra.mxu3 %v5153_v13  ;;  %1726 = vmatmul.bf16.gmra.mxu0 %v5153_v13  ;;  %v5157_v13 = vld [vmem:[#allocation3 + $0x40] sm:$0xff] }
 0x28f   :  { %2346 = vmatpush.bf16.msrb.mxu2 %v5206_v52  ;;  %v6005_v52 = vpop.f32.mrf.mxu2 }
 0x290   :  { %v5943_v12 = vpop.f32.mrf.mxu3 }
 0x292   :  { %v5945_v14 = vpop.f32.mrf.mxu0 }
 0x293   :  { %2347 = vmatpush.bf16.msrb.mxu2 %v5205_v63  ;;  %v5312_v63 = vld [vmem:[#allocation7 + $0x430] sm:$0xff] }
 0x294   :  { %3513 = vmatpush.bf16.msrb.mxu0 %v5312_v63 }
 0x297   :  { %2348 = vmatpush.bf16.msrb.mxu2 %v5204_v57  ;;  %v5211_v57 = vld [vmem:[#allocation7 + $0x108] sm:$0xff] }
 0x298   :  { %v5947_v15 = vpop.f32.mrf.mxu3 }
 0x29a   :  { %v5949_v16 = vpop.f32.mrf.mxu0 }
 0x29d   :  { %1667 = vmatmul.bf16.gmra.mxu3 %v5154_v17  ;;  %1731 = vmatmul.bf16.gmra.mxu0 %v5154_v17  ;;  %v5989_v17 = vpop.f32.mrf.mxu1 }
 0x2a0   :  { %v5951_v22 = vpop.f32.mrf.mxu3 }
 0x2a2   :  { %v5953_v25 = vpop.f32.mrf.mxu0 }
 0x2a5   :  { %v5997_v18 = vpop.f32.mrf.mxu1 }
 0x2a8   :  { %v5955_v46 = vpop.f32.mrf.mxu3 }
 0x2aa   :  { %v5957_v27 = vpop.f32.mrf.mxu0 }
 0x2ad   :  { %1672 = vmatmul.bf16.gmra.mxu3 %v5155_v29  ;;  %1736 = vmatmul.bf16.gmra.mxu0 %v5155_v29  ;;  %v6007_v47 = vpop.f32.mrf.mxu1 }
 0x2b0   :  { %v5963_v32 = vpop.f32.mrf.mxu3 }
 0x2b2   :  { %v5965_v35 = vpop.f32.mrf.mxu0 }
 0x2b5   :  { %v6020_v63 = vpop.f32.mrf.mxu1 }
 0x2b8   :  { %v5967_v36 = vpop.f32.mrf.mxu3 }
 0x2ba   :  { %v5973_v43 = vpop.f32.mrf.mxu0 }
 0x2bb   :  { %6238 = vst [vmem:[#allocation13_spill] sm:$0xff] %v5973_v43  ;;  %v5160_v43 = vld [vmem:[#allocation3 + $0x58] sm:$0xff] }
 0x2bd   :  { %1677 = vmatmul.bf16.gmra.mxu3 %v5156_v45  ;;  %1741 = vmatmul.bf16.gmra.mxu0 %v5156_v45  ;;  %v5216_v45 = vld [vmem:[#allocation7 + $0x130] sm:$0xff] }
 0x2be   :  { %2499 = vmatpush.bf16.msrb.mxu1 %v5216_v45  ;;  %v5203_v45 = vld [vmem:[#allocation7 + $0xc8] sm:$0xff] }
 0x2bf   :  { %2349 = vmatpush.bf16.msrb.mxu2 %v5203_v45  ;;  %v6018_v45 = vpop.f32.mrf.mxu2 }
 0x2c0   :  { %v5975_v48 = vpop.f32.mrf.mxu3 }
 0x2c1   :  { %6239 = vst [vmem:[#allocation14_spill] sm:$0xff] %v5975_v48 }
 0x2c2   :  { %v5977_v50 = vpop.f32.mrf.mxu0  ;;  %2500 = vmatpush.bf16.msrb.mxu1 %v5215_v19 }
 0x2c3   :  { %6240 = vst [vmem:[#allocation15_spill] sm:$0xff] %v5977_v50 }
 0x2c8   :  { %v5983_v3 = vpop.f32.mrf.mxu3 }
 0x2c9   :  { %6241 = vst [vmem:[#allocation16_spill] sm:$0xff] %v5983_v3  ;;  %v5311_v3 = vld [vmem:[#allocation7 + $0x428] sm:$0xff] }
 0x2ca   :  { %v5985_v28 = vpop.f32.mrf.mxu0  ;;  %3514 = vmatpush.bf16.msrb.mxu0 %v5311_v3  ;;  %v1412_v3 = vadd.f32 %v5989_v17, %v5912_v56  ;;  %v1348_v56 = vadd.f32 %v5987_v9, %v5915_v20  ;;  %v5161_v9 = vld [vmem:[#allocation3 + $0x60] sm:$0xff] }
 0x2cb   :  { %6242 = vst [vmem:[#allocation17_spill] sm:$0xff] %v5985_v28  ;;  %v6032_v28 = vpop.f32.mrf.mxu2 }
 0x2cd   :  { %1682 = vmatmul.bf16.gmra.mxu3 %v5157_v13  ;;  %1746 = vmatmul.bf16.gmra.mxu0 %v5157_v13  ;;  %v5214_v13 = vld [vmem:[#allocation7 + $0x120] sm:$0xff] }
 0x2ce   :  { %2501 = vmatpush.bf16.msrb.mxu1 %v5214_v13  ;;  %v5202_v13 = vld [vmem:[#allocation7 + $0xc0] sm:$0xff] }
 0x2cf   :  { %2350 = vmatpush.bf16.msrb.mxu2 %v5202_v13  ;;  %v5159_v13 = vld [vmem:[#allocation3 + $0x50] sm:$0xff] }
 0x2d0   :  { %v5991_v29 = vpop.f32.mrf.mxu3 }
 0x2d1   :  { %6243 = vst [vmem:[#allocation18_spill] sm:$0xff] %v5991_v29 }
 0x2d2   :  { %v5993_v34 = vpop.f32.mrf.mxu0  ;;  %2502 = vmatpush.bf16.msrb.mxu1 %v5213_v24 }
 0x2d3   :  { %6244 = vst [vmem:[#allocation19_spill] sm:$0xff] %v5993_v34 }
 0x2d6   :  { %2503 = vmatpush.bf16.msrb.mxu1 %v5212_v6 }
 0x2d8   :  { %v5999_v59 = vpop.f32.mrf.mxu3 }
 0x2d9   :  { %6245 = vst [vmem:[#allocation20_spill] sm:$0xff] %v5999_v59 }
 0x2da   :  { %v6001_v0 = vpop.f32.mrf.mxu0  ;;  %2504 = vmatpush.bf16.msrb.mxu1 %v5211_v57  ;;  %v6027_v57 = vperm.slane %v1816_v23, 0 }
 0x2db   :  { %6246 = vst [vmem:[#allocation21_spill] sm:$0xff] %v6001_v0  ;;  %v5210_v0 = vld [vmem:[#allocation7 + $0x100] sm:$0xff] }
 0x2dd   :  { %1687 = vmatmul.bf16.gmra.mxu3 %v5158_v62  ;;  %1751 = vmatmul.bf16.gmra.mxu0 %v5158_v62  ;;  %v5224_v62 = vld [vmem:[#allocation7 + $0x170] sm:$0xff] }
 0x2de   :  { %2513 = vmatpush.bf16.msrb.mxu3 %v5224_v62  ;;  %v6022_v62 = vperm.slane %v1816_v23, 1  ;;  %2505 = vmatpush.bf16.msrb.mxu1 %v5210_v0  ;;  %v1343_v23 = vadd.f32 %v5969_v37, %v5905_v41  ;;  %v5218_v41 = vld [vmem:[#allocation7 + $0x140] sm:$0xff] }
 0x2e0   :  { %v6003_v8 = vpop.f32.mrf.mxu3 }
 0x2e1   :  { %6247 = vst [vmem:[#allocation22_spill] sm:$0xff] %v6003_v8 }
 0x2e2   :  { %v6009_v19 = vpop.f32.mrf.mxu0  ;;  %2514 = vmatpush.bf16.msrb.mxu3 %v5223_v21  ;;  %v5221_v21 = vld [vmem:[#allocation7 + $0x158] sm:$0xff] }
 0x2e3   :  { %6248 = vst [vmem:[#allocation23_spill] sm:$0xff] %v6009_v19  ;;  %v1405_v19 = vadd.f32 %v5961_v31, %v5896_v26  ;;  %v1341_v26 = vadd.f32 %v5959_v30, %v5899_v33  ;;  %v6034_v33 = vpop.f32.mrf.mxu1 }
 0x2e8   :  { %v6011_v8 = vpop.f32.mrf.mxu3 }
 0x2e9   :  { %6249 = vst [vmem:[#allocation24_spill] sm:$0xff] %v6011_v8  ;;  %v5222_v8 = vld [vmem:[#allocation7 + $0x160] sm:$0xff] }
 0x2ea   :  { %v1717_v24 = vpop.f32.mrf.mxu0  ;;  %2515 = vmatpush.bf16.msrb.mxu3 %v5222_v8  ;;  %v5220_v8 = vld [vmem:[#allocation7 + $0x150] sm:$0xff] }
 0x2eb   :  { %v1773_v6 = vadd.f32 %v1717_v24, %v1405_v19  ;;  %v1407_v19 = vadd.f32 %v5971_v38, %v5901_v40 }
 0x2ed   :  { %1692 = vmatmul.bf16.gmra.mxu3 %v5159_v13  ;;  %1756 = vmatmul.bf16.gmra.mxu0 %v5159_v13  ;;  %v1823_v31 = vadd.f32 %v6022_v62, %v1773_v6  ;;  %v5219_v6 = vld [vmem:[#allocation7 + $0x148] sm:$0xff] }
 0x2ee   :  { %2516 = vmatpush.bf16.msrb.mxu3 %v5221_v21 }
 0x2ef   :  { %v1911_v29 = vmul.f32 0.1, %v1823_v31  ;;  %vm1867_vm1 = vcmp.gt.f32.partialorder %v1823_v31, 0.0 }
 0x2f0   :  { %v1653_v59 = vpop.f32.mrf.mxu3 }
 0x2f1   :  { %v1772_v24 = vadd.f32 %v1653_v59, %v1341_v26  ;;  %v1955_v40 = vsel %vm1867_vm1, %v1823_v31, %v1911_v29  ;;  %v6046_v29 = vpop.f32.mrf.mxu1 }
 0x2f2   :  { %v1719_v34 = vpop.f32.mrf.mxu0  ;;  %2517 = vmatpush.bf16.msrb.mxu3 %v5220_v8 }
 0x2f3   :  { %v1822_v13 = vadd.f32 %v6027_v57, %v1772_v24  ;;  %v1775_v0 = vadd.f32 %v1719_v34, %v1407_v19  ;;  %v1410_v34 = vadd.f32 %v5981_v54, %v5907_v39  ;;  %v1346_v39 = vadd.f32 %v5979_v44, %v5910_v53  ;;  %v6044_v54 = vpop.f32.mrf.mxu2 }
 0x2f5   :  { %vm1866_vm2 = vcmp.gt.f32.partialorder %v1822_v13, 0.0  ;;  %v1910_v30 = vmul.f32 0.1, %v1822_v13  ;;  %v1825_v59 = vadd.f32 %v6022_v62, %v1775_v0 }
 0x2f6   :  { %2518 = vmatpush.bf16.msrb.mxu3 %v5219_v6 }
 0x2f7   :  { %v1954_v38 = vsel %vm1866_vm2, %v1822_v13, %v1910_v30  ;;  %v1913_v50 = vmul.f32 0.1, %v1825_v59  ;;  %vm1869_vm3 = vcmp.gt.f32.partialorder %v1825_v59, 0.0 }
 0x2f8   :  { %v1998_v26 = vpack.c.bf16 %v1955_v40, %v1954_v38  ;;  %v1655_v21 = vpop.f32.mrf.mxu3 }
 0x2f9   :  { %v1774_v19 = vadd.f32 %v1655_v21, %v1343_v23  ;;  %v1957_v31 = vsel %vm1869_vm3, %v1825_v59, %v1913_v50  ;;  %v5241_v50 = vld [vmem:[#allocation7 + $0x1f8] sm:$0xff] }
 0x2fa   :  { %v1722_v24 = vpop.f32.mrf.mxu0  ;;  %2519 = vmatpush.bf16.msrb.mxu3 %v5218_v41  ;;  %v2058_v38 = vunpack.c.l.b16 %v1998_v26 }
 0x2fb   :  { %v1824_v8 = vadd.f32 %v6027_v57, %v1774_v19  ;;  %v1777_v48 = vadd.f32 %v1722_v24, %v1410_v34  ;;  %v5233_v24 = vld [vmem:[#allocation7 + $0x1b8] sm:$0xff] }
 0x2fd   :  { %vm1868_vm5 = vcmp.gt.f32.partialorder %v1824_v8, 0.0  ;;  %v1912_v37 = vmul.f32 0.1, %v1824_v8  ;;  %1697 = vmatmul.bf16.gmra.mxu3 %v5160_v43  ;;  %1761 = vmatmul.bf16.gmra.mxu0 %v5160_v43  ;;  %v1827_v0 = vadd.f32 %v6022_v62, %v1777_v48  ;;  %v2059_v43 = vunpack.c.h.b16 %v1998_v26 }
 0x2ff   :  { %v1956_v13 = vsel %vm1868_vm5, %v1824_v8, %v1912_v37  ;;  %v1915_v53 = vmul.f32 0.1, %v1827_v0  ;;  %vm1871_vm6 = vcmp.gt.f32.partialorder %v1827_v0, 0.0  ;;  %v5232_v37 = vld [vmem:[#allocation7 + $0x1b0] sm:$0xff] }
 0x300   :  { %v1999_v30 = vpack.c.bf16 %v1957_v31, %v1956_v13  ;;  %v1658_v23 = vpop.f32.mrf.mxu3 }
 0x301   :  { %v1776_v40 = vadd.f32 %v1658_v23, %v1346_v39  ;;  %v1959_v17 = vsel %vm1871_vm6, %v1827_v0, %v1915_v53  ;;  %v5240_v39 = vld [vmem:[#allocation7 + $0x1f0] sm:$0xff]  ;;  %v6057_v23 = vpop.f32.mrf.mxu2 }
 0x302   :  { %v2060_v6 = vunpack.c.l.b16 %v1999_v30  ;;  %v2061_v21 = vunpack.c.h.b16 %v1999_v30  ;;  %v1724_v34 = vpop.f32.mrf.mxu0  ;;  %v1415_v30 = vadd.f32 %v5997_v18, %v5917_v58  ;;  %v1351_v58 = vadd.f32 %v5995_v49, %v5919_v51  ;;  %v5310_v51 = vld [vmem:[#allocation7 + $0x420] sm:$0xff] }
 0x303   :  { %v1826_v44 = vadd.f32 %v6027_v57, %v1776_v40  ;;  %v1779_v19 = vadd.f32 %v1724_v34, %v1412_v3  ;;  %v6059_v3 = vpop.f32.mrf.mxu1  ;;  %3515 = vmatpush.bf16.msrb.mxu0 %v5310_v51  ;;  %v5226_v51 = vld [vmem:[#allocation7 + $0x180] sm:$0xff] }
 0x304   :  { %v2062_v59 = vpack.c.b16 %v2060_v6, %v2058_v38  ;;  %v2063_v48 = vpack.c.b16 %v2061_v21, %v2059_v43  ;;  %v5231_v6 = vld [vmem:[#allocation7 + $0x1a8] sm:$0xff] }
 0x305   :  { %vm1870_vm7 = vcmp.gt.f32.partialorder %v1826_v44, 0.0  ;;  %v1914_v8 = vmul.f32 0.1, %v1826_v44  ;;  %v1829_v41 = vadd.f32 %v6022_v62, %v1779_v19  ;;  %v5239_v21 = vld [vmem:[#allocation7 + $0x1e8] sm:$0xff]  ;;  %v5230_v19 = vld [vmem:[#allocation7 + $0x1a0] sm:$0xff] }
 0x306   :  { %2170 = vmatmul.bf16.vlgmr.msra.gmra.mxu2 %v2062_v59  ;;  %2184 = vmatmul.bf16.vlgmr.msra.gmra.mxu1 %v2063_v48  ;;  %v1417_v48 = vadd.f32 %v6007_v47, %v5921_v42 }
 0x307   :  { %v1958_v26 = vsel %vm1870_vm7, %v1826_v44, %v1914_v8  ;;  %2667 = vmatpush.bf16.msra.mxu2 %v5233_v24  ;;  %2681 = vmatpush.bf16.msra.mxu1 %v5241_v50  ;;  %v1917_v0 = vmul.f32 0.1, %v1829_v41  ;;  %vm1873_vm8 = vcmp.gt.f32.partialorder %v1829_v41, 0.0  ;;  %v5238_v24 = vld [vmem:[#allocation7 + $0x1e0] sm:$0xff] }
 0x308   :  { %v2000_v31 = vpack.c.bf16 %v1959_v17, %v1958_v26  ;;  %v1660_v13 = vpop.f32.mrf.mxu3 }
 0x309   :  { %v1778_v20 = vadd.f32 %v1660_v13, %v1348_v56  ;;  %v1961_v18 = vsel %vm1873_vm8, %v1829_v41, %v1917_v0  ;;  %v6067_v49 = vpop.f32.mrf.mxu2  ;;  %v1353_v0 = vadd.f32 %v6005_v52, %v5923_v60 }
 0x30a   :  { %v1727_v40 = vpop.f32.mrf.mxu0  ;;  %v2225_v56 = vunpack.c.l.b16 %v2000_v31  ;;  %v2226_v17 = vunpack.c.h.b16 %v2000_v31 }
 0x30b   :  { %v1828_v38 = vadd.f32 %v6027_v57, %v1778_v20  ;;  %v1781_v43 = vadd.f32 %v1727_v40, %v1415_v30  ;;  %2668 = vmatpush.bf16.msra.mxu2 %v5232_v37  ;;  %2682 = vmatpush.bf16.msra.mxu1 %v5240_v39  ;;  %v6069_v41 = vpop.f32.mrf.mxu1  ;;  %v5237_v40 = vld [vmem:[#allocation7 + $0x1d8] sm:$0xff] }
 0x30d   :  { %vm1872_vm10 = vcmp.gt.f32.partialorder %v1828_v38, 0.0  ;;  %v1916_v34 = vmul.f32 0.1, %v1828_v38  ;;  %1702 = vmatmul.bf16.gmra.mxu3 %v5161_v9  ;;  %1766 = vmatmul.bf16.gmra.mxu0 %v5161_v9  ;;  %v1831_v44 = vadd.f32 %v6022_v62, %v1781_v43  ;;  %v5229_v9 = vld [vmem:[#allocation7 + $0x198] sm:$0xff] }
 0x30f   :  { %v1960_v53 = vsel %vm1872_vm10, %v1828_v38, %v1916_v34  ;;  %2669 = vmatpush.bf16.msra.mxu2 %v5231_v6  ;;  %2683 = vmatpush.bf16.msra.mxu1 %v5239_v21  ;;  %v1919_v13 = vmul.f32 0.1, %v1831_v44  ;;  %vm1875_vm11 = vcmp.gt.f32.partialorder %v1831_v44, 0.0  ;;  %v5228_v21 = vld [vmem:[#allocation7 + $0x190] sm:$0xff] }
 0x310   :  { %v2001_v50 = vpack.c.bf16 %v1961_v18, %v1960_v53  ;;  %v1663_v59 = vpop.f32.mrf.mxu3  ;;  %v5236_v34 = vld [vmem:[#allocation7 + $0x1d0] sm:$0xff]  ;;  %v1420_v53 = vadd.f32 %v6020_v63, %v5925_v61  ;;  %v1356_v61 = vadd.f32 %v6018_v45, %v5927_v1 }
 0x311   :  { %v1780_v8 = vadd.f32 %v1663_v59, %v1351_v58  ;;  %v1963_v38 = vsel %vm1875_vm11, %v1831_v44, %v1919_v13  ;;  %v5227_v44 = vld [vmem:[#allocation7 + $0x188] sm:$0xff]  ;;  %v5248_v63 = vld [vmem:[#allocation7 + $0x230] sm:$0xff]  ;;  %v5234_v13 = vld [vmem:[#allocation7 + $0x1c0] sm:$0xff] }
 0x312   :  { %v2227_v26 = vunpack.c.l.b16 %v2001_v50  ;;  %v2228_v37 = vunpack.c.h.b16 %v2001_v50  ;;  %v1729_v39 = vpop.f32.mrf.mxu0  ;;  %v5249_v50 = vld [vmem:[#allocation7 + $0x238] sm:$0xff] }
 0x313   :  { %v1830_v30 = vadd.f32 %v6027_v57, %v1780_v8  ;;  %v1783_v20 = vadd.f32 %v1729_v39, %v1417_v48  ;;  %2670 = vmatpush.bf16.msra.mxu2 %v5230_v19  ;;  %2684 = vmatpush.bf16.msra.mxu1 %v5238_v24  ;;  %v5235_v48 = vld [vmem:[#allocation7 + $0x1c8] sm:$0xff]  ;;  %v6078_v8 = vpop.f32.mrf.mxu2 }
 0x314   :  { %v2230_v42 = vpack.c.b16 %v2228_v37, %v2226_v17  ;;  %v2229_v47 = vpack.c.b16 %v2227_v26, %v2225_v56  ;;  %v6080_v56 = vpop.f32.mrf.mxu1 }
 0x315   :  { %vm1874_vm12 = vcmp.gt.f32.partialorder %v1830_v30, 0.0  ;;  %v1918_v31 = vmul.f32 0.1, %v1830_v30  ;;  %v1833_v6 = vadd.f32 %v6022_v62, %v1783_v20 }
 0x316   :  { %2351 = vmatmul.bf16.vlgmr.msrb.gmra.mxu2 %v2230_v42 }
 0x317   :  { %v1962_v43 = vsel %vm1874_vm12, %v1830_v30, %v1918_v31  ;;  %2671 = vmatpush.bf16.msra.mxu2 %v5229_v9  ;;  %2685 = vmatpush.bf16.msra.mxu1 %v5237_v40  ;;  %v1921_v59 = vmul.f32 0.1, %v1833_v6  ;;  %vm1877_vm4 = vcmp.gt.f32.partialorder %v1833_v6, 0.0  ;;  %v5257_v9 = vld [vmem:[#allocation7 + $0x278] sm:$0xff]  ;;  %v1422_v40 = vadd.f32 %v6034_v33, %v5929_v2  ;;  %v5256_v2 = vld [vmem:[#allocation7 + $0x270] sm:$0xff] }
 0x318   :  { %v2002_v58 = vpack.c.bf16 %v1963_v38, %v1962_v43  ;;  %v1665_v18 = vpop.f32.mrf.mxu3  ;;  %v5247_v38 = vld [vmem:[#allocation7 + $0x228] sm:$0xff]  ;;  %v5309_v43 = vld [vmem:[#allocation7 + $0x418] sm:$0xff] }
 0x319   :  { %v1782_v19 = vadd.f32 %v1665_v18, %v1353_v0  ;;  %v1965_v26 = vsel %vm1877_vm4, %v1833_v6, %v1921_v59  ;;  %v5265_v18 = vld [vmem:[#allocation7 + $0x2b8] sm:$0xff]  ;;  %3516 = vmatpush.bf16.msrb.mxu0 %v5309_v43  ;;  %v1427_v43 = vadd.f32 %v6059_v3, %v5937_v7  ;;  %v5252_v7 = vld [vmem:[#allocation7 + $0x250] sm:$0xff] }
 0x31a   :  { %v1732_v24 = vpop.f32.mrf.mxu0  ;;  %v2395_v31 = vunpack.c.h.b16 %v2002_v58  ;;  %v5261_v3 = vld [vmem:[#allocation7 + $0x298] sm:$0xff] }
 0x31b   :  { %v1832_v60 = vadd.f32 %v6027_v57, %v1782_v19  ;;  %v1785_v52 = vadd.f32 %v1732_v24, %v1420_v53  ;;  %2672 = vmatpush.bf16.msra.mxu2 %v5228_v21  ;;  %2686 = vmatpush.bf16.msra.mxu1 %v5236_v34  ;;  %v5246_v19 = vld [vmem:[#allocation7 + $0x220] sm:$0xff]  ;;  %v1358_v24 = vadd.f32 %v6032_v28, %v5931_v4  ;;  %v5245_v28 = vld [vmem:[#allocation7 + $0x218] sm:$0xff] }
 0x31c   :  { %v6092_v59 = vpop.f32.mrf.mxu1 }
 0x31d   :  { %vm1876_vm13 = vcmp.gt.f32.partialorder %v1832_v60, 0.0  ;;  %v1920_v17 = vmul.f32 0.1, %v1832_v60  ;;  %2337 = vmatmul.bf16.vlgmr.msra.gmra.mxu3 %v2229_v47  ;;  %v1835_v39 = vadd.f32 %v6022_v62, %v1785_v52  ;;  %v2394_v47 = vunpack.c.l.b16 %v2002_v58 }
 0x31e   :  { %2836 = vmatpush.bf16.msra.mxu3 %v5249_v50  ;;  %v6090_v50 = vpop.f32.mrf.mxu2 }
 0x31f   :  { %v1964_v37 = vsel %vm1876_vm13, %v1832_v60, %v1920_v17  ;;  %2673 = vmatpush.bf16.msra.mxu2 %v5227_v44  ;;  %2687 = vmatpush.bf16.msra.mxu1 %v5235_v48  ;;  %v1923_v6 = vmul.f32 0.1, %v1835_v39  ;;  %vm1879_vm14 = vcmp.gt.f32.partialorder %v1835_v39, 0.0  ;;  %v5264_v48 = vld [vmem:[#allocation7 + $0x2b0] sm:$0xff] }
 0x320   :  { %v2003_v30 = vpack.c.bf16 %v1965_v26, %v1964_v37  ;;  %v1668_v20 = vpop.f32.mrf.mxu3  ;;  %v1425_v26 = vadd.f32 %v6046_v29, %v5933_v5  ;;  %v1361_v5 = vadd.f32 %v6044_v54, %v5935_v55 }
 0x321   :  { %v1784_v42 = vadd.f32 %v1668_v20, %v1356_v61  ;;  %v1967_v60 = vsel %vm1879_vm14, %v1835_v39, %v1923_v6  ;;  %v5254_v20 = vld [vmem:[#allocation7 + $0x260] sm:$0xff] }
 0x322   :  { %v2396_v1 = vunpack.c.l.b16 %v2003_v30  ;;  %v2397_v45 = vunpack.c.h.b16 %v2003_v30  ;;  %2837 = vmatpush.bf16.msra.mxu3 %v5248_v63  ;;  %v1734_v0 = vpop.f32.mrf.mxu0  ;;  %v5255_v63 = vld [vmem:[#allocation7 + $0x268] sm:$0xff] }
 0x323   :  { %v1834_v21 = vadd.f32 %v6027_v57, %v1784_v42  ;;  %v1787_v34 = vadd.f32 %v1734_v0, %v1422_v40  ;;  %2674 = vmatpush.bf16.msra.mxu2 %v5226_v51  ;;  %2688 = vmatpush.bf16.msra.mxu1 %v5234_v13  ;;  %v5263_v30 = vld [vmem:[#allocation7 + $0x2a8] sm:$0xff]  ;;  %v5244_v40 = vld [vmem:[#allocation7 + $0x210] sm:$0xff]  ;;  %v5253_v0 = vld [vmem:[#allocation7 + $0x258] sm:$0xff] }
 0x324   :  { %v2398_v53 = vpack.c.b16 %v2396_v1, %v2394_v47  ;;  %v2399_v33 = vpack.c.b16 %v2397_v45, %v2395_v31  ;;  %v5262_v31 = vld [vmem:[#allocation7 + $0x2a0] sm:$0xff]  ;;  %v6105_v6 = vpop.f32.mrf.mxu1 }
 0x325   :  { %vm1878_vm15 = vcmp.gt.f32.partialorder %v1834_v21, 0.0  ;;  %v1922_v58 = vmul.f32 0.1, %v1834_v21  ;;  %v1837_v44 = vadd.f32 %v6022_v62, %v1787_v34 }
 0x326   :  { %2838 = vmatpush.bf16.msra.mxu3 %v5247_v38  ;;  %2506 = vmatmul.bf16.vlgmr.msrb.gmra.mxu1 %v2398_v53  ;;  %v6101_v38 = vpop.f32.mrf.mxu2 }
 0x327   :  { %2850 = vmatpush.bf16.msrb.mxu2 %v5257_v9  ;;  %v1966_v52 = vsel %vm1878_vm15, %v1834_v21, %v1922_v58  ;;  %3005 = vmatpush.bf16.msrb.mxu1 %v5265_v18  ;;  %v1925_v51 = vmul.f32 0.1, %v1837_v44  ;;  %vm1881_vm9 = vcmp.gt.f32.partialorder %v1837_v44, 0.0 }
 0x328   :  { %v2004_v17 = vpack.c.bf16 %v1967_v60, %v1966_v52  ;;  %v1670_v61 = vpop.f32.mrf.mxu3 }
 0x329   :  { %v1786_v37 = vadd.f32 %v1670_v61, %v1358_v24  ;;  %v1969_v29 = vsel %vm1881_vm9, %v1837_v44, %v1925_v51  ;;  %v5242_v44 = vld [vmem:[#allocation7 + $0x200] sm:$0xff]  ;;  %v5260_v51 = vld [vmem:[#allocation7 + $0x290] sm:$0xff] }
 0x32a   :  { %2839 = vmatpush.bf16.msra.mxu3 %v5246_v19  ;;  %v1737_v4 = vpop.f32.mrf.mxu0  ;;  %v2563_v34 = vunpack.c.l.b16 %v2004_v17  ;;  %v2564_v55 = vunpack.c.h.b16 %v2004_v17 }
 0x32b   :  { %2851 = vmatpush.bf16.msrb.mxu2 %v5256_v2  ;;  %v1836_v13 = vadd.f32 %v6027_v57, %v1786_v37  ;;  %v1789_v39 = vadd.f32 %v1737_v4, %v1425_v26  ;;  %3006 = vmatpush.bf16.msrb.mxu1 %v5264_v48  ;;  %v5243_v2 = vld [vmem:[#allocation7 + $0x208] sm:$0xff]  ;;  %v1363_v48 = vadd.f32 %v6057_v23, %v5939_v10  ;;  %v5273_v26 = vld [vmem:[#allocation7 + $0x2f8] sm:$0xff] }
 0x32c   :  { %v6115_v23 = vpop.f32.mrf.mxu1 }
 0x32d   :  { %vm1880_vm0 = vcmp.gt.f32.partialorder %v1836_v13, 0.0  ;;  %v1924_v9 = vmul.f32 0.1, %v1836_v13  ;;  %2520 = vmatmul.bf16.vlgmr.msrb.gmra.mxu3 %v2399_v33  ;;  %v1839_v47 = vadd.f32 %v6022_v62, %v1789_v39 }
 0x32e   :  { %2840 = vmatpush.bf16.msra.mxu3 %v5245_v28  ;;  %v5251_v28 = vld [vmem:[#allocation7 + $0x248] sm:$0xff]  ;;  %v6113_v10 = vpop.f32.mrf.mxu2 }
 0x32f   :  { %2852 = vmatpush.bf16.msrb.mxu2 %v5255_v63  ;;  %v1968_v42 = vsel %vm1880_vm0, %v1836_v13, %v1924_v9  ;;  %3007 = vmatpush.bf16.msrb.mxu1 %v5263_v30  ;;  %v1927_v33 = vmul.f32 0.1, %v1839_v47  ;;  %vm1883_vm1 = vcmp.gt.f32.partialorder %v1839_v47, 0.0  ;;  %v1430_v13 = vadd.f32 %v6069_v41, %v5941_v11  ;;  %v5281_v41 = vld [vmem:[#allocation7 + $0x338] sm:$0xff] }
 0x330   :  { %v2005_v1 = vpack.c.bf16 %v1969_v29, %v1968_v42  ;;  %v1673_v45 = vpop.f32.mrf.mxu3  ;;  %v5272_v29 = vld [vmem:[#allocation7 + $0x2f0] sm:$0xff]  ;;  %v5250_v42 = vld [vmem:[#allocation7 + $0x240] sm:$0xff] }
 0x331   :  { %v1788_v21 = vadd.f32 %v1673_v45, %v1361_v5  ;;  %v1971_v17 = vsel %vm1883_vm1, %v1839_v47, %v1927_v33  ;;  %v5259_v47 = vld [vmem:[#allocation7 + $0x288] sm:$0xff] }
 0x332   :  { %v2565_v54 = vunpack.c.l.b16 %v2005_v1  ;;  %v2566_v18 = vunpack.c.h.b16 %v2005_v1  ;;  %2841 = vmatpush.bf16.msra.mxu3 %v5244_v40  ;;  %v1739_v53 = vpop.f32.mrf.mxu0 }
 0x333   :  { %2853 = vmatpush.bf16.msrb.mxu2 %v5254_v20  ;;  %v1838_v58 = vadd.f32 %v6027_v57, %v1788_v21  ;;  %v1791_v19 = vadd.f32 %v1739_v53, %v1427_v43  ;;  %3008 = vmatpush.bf16.msrb.mxu1 %v5262_v31  ;;  %v5308_v20 = vld [vmem:[#allocation7 + $0x410] sm:$0xff]  ;;  %v1366_v31 = vadd.f32 %v6067_v49, %v5943_v12  ;;  %v5271_v43 = vld [vmem:[#allocation7 + $0x2e8] sm:$0xff] }
 0x334   :  { %v2567_v24 = vpack.c.b16 %v2565_v54, %v2563_v34  ;;  %v2568_v60 = vpack.c.b16 %v2566_v18, %v2564_v55  ;;  %3517 = vmatpush.bf16.msrb.mxu0 %v5308_v20  ;;  %v5258_v55 = vld [vmem:[#allocation7 + $0x280] sm:$0xff]  ;;  %v1432_v54 = vadd.f32 %v6080_v56, %v5945_v14  ;;  %v5280_v53 = vld [vmem:[#allocation7 + $0x330] sm:$0xff]  ;;  %v6126_v56 = vpop.f32.mrf.mxu1 }
 0x335   :  { %vm1882_vm2 = vcmp.gt.f32.partialorder %v1838_v58, 0.0  ;;  %v1926_v52 = vmul.f32 0.1, %v1838_v58  ;;  %v1841_v63 = vadd.f32 %v6022_v62, %v1791_v19  ;;  %v5278_v20 = vld [vmem:[#allocation7 + $0x320] sm:$0xff] }
 0x336   :  { %2842 = vmatpush.bf16.msra.mxu3 %v5243_v2  ;;  %2675 = vmatmul.bf16.vlgmr.msra.gmra.mxu2 %v2567_v24  ;;  %v5289_v2 = vld [vmem:[#allocation7 + $0x378] sm:$0xff]  ;;  %v6124_v14 = vpop.f32.mrf.mxu2 }
 0x337   :  { %2854 = vmatpush.bf16.msrb.mxu2 %v5253_v0  ;;  %v1970_v61 = vsel %vm1882_vm2, %v1838_v58, %v1926_v52  ;;  %2689 = vmatmul.bf16.vlgmr.msra.gmra.mxu1 %v2568_v60  ;;  %v1929_v9 = vmul.f32 0.1, %v1841_v63  ;;  %vm1885_vm3 = vcmp.gt.f32.partialorder %v1841_v63, 0.0 }
 0x338   :  { %v2006_v37 = vpack.c.bf16 %v1971_v17, %v1970_v61  ;;  %v1675_v4 = vpop.f32.mrf.mxu3  ;;  %3009 = vmatpush.bf16.msrb.mxu1 %v5261_v3  ;;  %v5270_v3 = vld [vmem:[#allocation7 + $0x2e0] sm:$0xff]  ;;  %v5279_v17 = vld [vmem:[#allocation7 + $0x328] sm:$0xff]  ;;  %v5288_v61 = vld [vmem:[#allocation7 + $0x370] sm:$0xff] }
 0x339   :  { %v1790_v39 = vadd.f32 %v1675_v4, %v1363_v48  ;;  %v1973_v1 = vsel %vm1885_vm3, %v1841_v63, %v1929_v9  ;;  %v1368_v63 = vadd.f32 %v6078_v8, %v5947_v15  ;;  %v5287_v9 = vld [vmem:[#allocation7 + $0x368] sm:$0xff] }
 0x33a   :  { %2843 = vmatpush.bf16.msra.mxu3 %v5242_v44  ;;  %v1742_v30 = vpop.f32.mrf.mxu0  ;;  %v2732_v33 = vunpack.c.l.b16 %v2006_v37  ;;  %v2733_v12 = vunpack.c.h.b16 %v2006_v37 }
 0x33b   :  { %2855 = vmatpush.bf16.msrb.mxu2 %v5252_v7  ;;  %v1840_v40 = vadd.f32 %v6027_v57, %v1790_v39  ;;  %v1793_v5 = vadd.f32 %v1742_v30, %v1430_v13  ;;  %v1435_v39 = vadd.f32 %v6092_v59, %v5949_v16  ;;  %v1371_v16 = vadd.f32 %v6090_v50, %v5951_v22  ;;  %v5285_v22 = vld [vmem:[#allocation7 + $0x358] sm:$0xff] }
 0x33c   :  { %3010 = vmatpush.bf16.msrb.mxu1 %v5260_v51 }
 0x33d   :  { %vm1884_vm5 = vcmp.gt.f32.partialorder %v1840_v40, 0.0  ;;  %v1928_v11 = vmul.f32 0.1, %v1840_v40  ;;  %v1843_v0 = vadd.f32 %v6022_v62, %v1793_v5 }
 0x33e   :  { %3019 = vmatpush.bf16.msrb.mxu3 %v5273_v26  ;;  %v6136_v59 = vpop.f32.mrf.mxu2 }
 0x33f   :  { %2856 = vmatpush.bf16.msrb.mxu2 %v5251_v28  ;;  %v1972_v45 = vsel %vm1884_vm5, %v1840_v40, %v1928_v11  ;;  %v1931_v24 = vmul.f32 0.1, %v1843_v0  ;;  %vm1887_vm6 = vcmp.gt.f32.partialorder %v1843_v0, 0.0  ;;  %v5269_v28 = vld [vmem:[#allocation7 + $0x2d8] sm:$0xff]  ;;  %v5286_v11 = vld [vmem:[#allocation7 + $0x360] sm:$0xff] }
 0x340   :  { %v2007_v21 = vpack.c.bf16 %v1973_v1, %v1972_v45  ;;  %v1678_v34 = vpop.f32.mrf.mxu3  ;;  %3011 = vmatpush.bf16.msrb.mxu1 %v5259_v47  ;;  %v5277_v47 = vld [vmem:[#allocation7 + $0x318] sm:$0xff] }
 0x341   :  { %v1792_v18 = vadd.f32 %v1678_v34, %v1366_v31  ;;  %v1975_v26 = vsel %vm1887_vm6, %v1843_v0, %v1931_v24  ;;  %v5267_v0 = vld [vmem:[#allocation7 + $0x2c8] sm:$0xff]  ;;  %v1437_v34 = vadd.f32 %v6105_v6, %v5953_v25  ;;  %v5266_v24 = vld [vmem:[#allocation7 + $0x2c0] sm:$0xff]  ;;  %v5297_v25 = vld [vmem:[#allocation7 + $0x3b8] sm:$0xff] }
 0x342   :  { %3020 = vmatpush.bf16.msrb.mxu3 %v5272_v29  ;;  %v2734_v49 = vunpack.c.l.b16 %v2007_v21  ;;  %v2735_v58 = vunpack.c.h.b16 %v2007_v21  ;;  %v1744_v19 = vpop.f32.mrf.mxu0  ;;  %v5268_v29 = vld [vmem:[#allocation7 + $0x2d0] sm:$0xff] }
 0x343   :  { %2857 = vmatpush.bf16.msrb.mxu2 %v5250_v42  ;;  %v1842_v60 = vadd.f32 %v6027_v57, %v1792_v18  ;;  %v1795_v7 = vadd.f32 %v1744_v19, %v1432_v54  ;;  %v5276_v54 = vld [vmem:[#allocation7 + $0x310] sm:$0xff] }
 0x344   :  { %v2736_v52 = vpack.c.b16 %v2734_v49, %v2732_v33  ;;  %v2737_v44 = vpack.c.b16 %v2735_v58, %v2733_v12  ;;  %3012 = vmatpush.bf16.msrb.mxu1 %v5258_v55  ;;  %v5307_v12 = vld [vmem:[#allocation7 + $0x408] sm:$0xff] }
 0x345   :  { %vm1886_vm7 = vcmp.gt.f32.partialorder %v1842_v60, 0.0  ;;  %v1930_v48 = vmul.f32 0.1, %v1842_v60  ;;  %v1845_v4 = vadd.f32 %v6022_v62, %v1795_v7  ;;  %3518 = vmatpush.bf16.msrb.mxu0 %v5307_v12  ;;  %v5293_v12 = vld [vmem:[#allocation7 + $0x398] sm:$0xff] }
 0x346   :  { %3021 = vmatpush.bf16.msrb.mxu3 %v5271_v43  ;;  %2858 = vmatmul.bf16.vlgmr.msrb.gmra.mxu2 %v2737_v44  ;;  %v1373_v44 = vadd.f32 %v6101_v38, %v5955_v46  ;;  %v5274_v46 = vld [vmem:[#allocation7 + $0x300] sm:$0xff]  ;;  %v5283_v38 = vld [vmem:[#allocation7 + $0x348] sm:$0xff] }
 0x347   :  { %3174 = vmatpush.bf16.msra.mxu2 %v5281_v41  ;;  %2844 = vmatmul.bf16.vlgmr.msra.gmra.mxu3 %v2736_v52  ;;  %v1974_v37 = vsel %vm1886_vm7, %v1842_v60, %v1930_v48  ;;  %v1933_v5 = vmul.f32 0.1, %v1845_v4  ;;  %vm1889_vm8 = vcmp.gt.f32.partialorder %v1845_v4, 0.0  ;;  %v6138_v41 = vpop.f32.mrf.mxu1  ;;  %v5284_v52 = vld [vmem:[#allocation7 + $0x350] sm:$0xff] }
 0x348   :  { %3188 = vmatpush.bf16.msra.mxu1 %v5289_v2  ;;  %v2008_v51 = vpack.c.bf16 %v1975_v26, %v1974_v37  ;;  %v1680_v13 = vpop.f32.mrf.mxu3  ;;  %v5296_v37 = vld [vmem:[#allocation7 + $0x3b0] sm:$0xff] }
 0x349   :  { %v1794_v30 = vadd.f32 %v1680_v13, %v1368_v63  ;;  %v1977_v31 = vsel %vm1889_vm8, %v1845_v4, %v1933_v5  ;;  %v6147_v4 = vpop.f32.mrf.mxu2  ;;  %v5295_v5 = vld [vmem:[#allocation7 + $0x3a8] sm:$0xff] }
 0x34a   :  { %3022 = vmatpush.bf16.msrb.mxu3 %v5270_v3  ;;  %v1747_v40 = vpop.f32.mrf.mxu0  ;;  %v2901_v50 = vunpack.c.l.b16 %v2008_v51  ;;  %v2902_v18 = vunpack.c.h.b16 %v2008_v51  ;;  %v5275_v3 = vld [vmem:[#allocation7 + $0x308] sm:$0xff] }
 0x34b   :  { %3175 = vmatpush.bf16.msra.mxu2 %v5280_v53  ;;  %v1844_v15 = vadd.f32 %v6027_v57, %v1794_v30  ;;  %v1797_v8 = vadd.f32 %v1747_v40, %v1435_v39  ;;  %v5305_v30 = vld [vmem:[#allocation7 + $0x3f8] sm:$0xff] }
 0x34c   :  { %3189 = vmatpush.bf16.msra.mxu1 %v5288_v61 }
 0x34d   :  { %vm1888_vm10 = vcmp.gt.f32.partialorder %v1844_v15, 0.0  ;;  %v1932_v42 = vmul.f32 0.1, %v1844_v15  ;;  %v1847_v45 = vadd.f32 %v6022_v62, %v1797_v8  ;;  %v5321_v8 = vld [vmem:[#allocation7 + $0x478] sm:$0xff] }
 0x34e   :  { %3023 = vmatpush.bf16.msrb.mxu3 %v5269_v28  ;;  %v1440_v28 = vadd.f32 %v6115_v23, %v5957_v27  ;;  %v5282_v27 = vld [vmem:[#allocation7 + $0x340] sm:$0xff]  ;;  %v5304_v23 = vld [vmem:[#allocation7 + $0x3f0] sm:$0xff] }
 0x34f   :  { %3176 = vmatpush.bf16.msra.mxu2 %v5279_v17  ;;  %v1976_v1 = vsel %vm1888_vm10, %v1844_v15, %v1932_v42  ;;  %v1935_v49 = vmul.f32 0.1, %v1847_v45  ;;  %vm1891_vm11 = vcmp.gt.f32.partialorder %v1847_v45, 0.0  ;;  %v6151_v51 = vpop.f32.mrf.mxu1 }
 0x350   :  { %3190 = vmatpush.bf16.msra.mxu1 %v5287_v9  ;;  %v2009_v43 = vpack.c.bf16 %v1977_v31, %v1976_v1  ;;  %v1683_v21 = vpop.f32.mrf.mxu3  ;;  %v5294_v1 = vld [vmem:[#allocation7 + $0x3a0] sm:$0xff] }
 0x351   :  { %v1796_v55 = vadd.f32 %v1683_v21, %v1371_v16  ;;  %v1979_v48 = vsel %vm1891_vm11, %v1847_v45, %v1935_v49  ;;  %v1442_v45 = vadd.f32 %v6126_v56, %v5965_v35  ;;  %v5320_v35 = vld [vmem:[#allocation7 + $0x470] sm:$0xff] }
 0x352   :  { %3024 = vmatpush.bf16.msrb.mxu3 %v5268_v29  ;;  %v2903_v53 = vunpack.c.l.b16 %v2009_v43  ;;  %v2904_v2 = vunpack.c.h.b16 %v2009_v43  ;;  %v1749_v33 = vpop.f32.mrf.mxu0  ;;  %v1376_v29 = vadd.f32 %v6113_v10, %v5963_v32  ;;  %v5303_v32 = vld [vmem:[#allocation7 + $0x3e8] sm:$0xff]  ;;  %v5306_v10 = vld [vmem:[#allocation7 + $0x400] sm:$0xff] }
 0x353   :  { %3177 = vmatpush.bf16.msra.mxu2 %v5278_v20  ;;  %v1846_v58 = vadd.f32 %v6027_v57, %v1796_v55  ;;  %v1799_v19 = vadd.f32 %v1749_v33, %v1437_v34  ;;  %3519 = vmatpush.bf16.msrb.mxu0 %v5306_v10  ;;  %v5316_v10 = vld [vmem:[#allocation7 + $0x450] sm:$0xff] }
 0x354   :  { %3191 = vmatpush.bf16.msra.mxu1 %v5286_v11  ;;  %v2905_v60 = vpack.c.b16 %v2903_v53, %v2901_v50  ;;  %v2906_v6 = vpack.c.b16 %v2904_v2, %v2902_v18 }
 0x355   :  { %vm1890_vm12 = vcmp.gt.f32.partialorder %v1846_v58, 0.0  ;;  %v1934_v7 = vmul.f32 0.1, %v1846_v58  ;;  %v1849_v61 = vadd.f32 %v6022_v62, %v1799_v19  ;;  %v5302_v19 = vld [vmem:[#allocation7 + $0x3e0] sm:$0xff] }
 0x356   :  { %3025 = vmatpush.bf16.msrb.mxu3 %v5267_v0  ;;  %3013 = vmatmul.bf16.vlgmr.msrb.gmra.mxu1 %v2905_v60 }
 0x357   :  { %3178 = vmatpush.bf16.msra.mxu2 %v5277_v47  ;;  %v1978_v17 = vsel %vm1890_vm12, %v1846_v58, %v1934_v7  ;;  %v1937_v20 = vmul.f32 0.1, %v1849_v61  ;;  %vm1893_vm4 = vcmp.gt.f32.partialorder %v1849_v61, 0.0  ;;  %v6161_v50 = vpop.f32.mrf.mxu1  ;;  %v1378_v58 = vadd.f32 %v6124_v14, %v5967_v36  ;;  %v5319_v7 = vld [vmem:[#allocation7 + $0x468] sm:$0xff] }
 0x358   :  { %3192 = vmatpush.bf16.msra.mxu1 %v5285_v22  ;;  %v2010_v63 = vpack.c.bf16 %v1979_v48, %v1978_v17  ;;  %v1685_v26 = vpop.f32.mrf.mxu3  ;;  %v6159_v22 = vpop.f32.mrf.mxu2  ;;  %v6250_v48 = vld [vmem:[#allocation13_spill] sm:$0xff] }
 0x359   :  { %v1798_v13 = vadd.f32 %v1685_v26, %v1373_v44  ;;  %v1981_v42 = vsel %vm1893_vm4, %v1849_v61, %v1937_v20  ;;  %v5292_v44 = vld [vmem:[#allocation7 + $0x390] sm:$0xff]  ;;  %v1445_v17 = vadd.f32 %v6138_v41, %v6250_v48  ;;  %v5301_v61 = vld [vmem:[#allocation7 + $0x3d8] sm:$0xff]  ;;  %v5343_v20 = vld [vmem:[#allocation7 + $0x528] sm:$0xff] }
 0x35a   :  { %3026 = vmatpush.bf16.msrb.mxu3 %v5266_v24  ;;  %v1752_v39 = vpop.f32.mrf.mxu0  ;;  %v3070_v43 = vunpack.c.l.b16 %v2010_v63  ;;  %v3071_v21 = vunpack.c.h.b16 %v2010_v63  ;;  %v5345_v24 = vld [vmem:[#allocation7 + $0x538] sm:$0xff]  ;;  %v5344_v63 = vld [vmem:[#allocation7 + $0x530] sm:$0xff]  ;;  %v5327_v48 = vld [vmem:[#allocation7 + $0x4a8] sm:$0xff] }
 0x35b   :  { %3179 = vmatpush.bf16.msra.mxu2 %v5276_v54  ;;  %v1848_v9 = vadd.f32 %v6027_v57, %v1798_v13  ;;  %v1801_v40 = vadd.f32 %v1752_v39, %v1440_v28  ;;  %3850 = vmatpush.bf16.msra.mxu0 %v5345_v24  ;;  %v5318_v13 = vld [vmem:[#allocation7 + $0x460] sm:$0xff] }
 0x35c   :  { %3193 = vmatpush.bf16.msra.mxu1 %v5284_v52 }
 0x35d   :  { %3027 = vmatmul.bf16.vlgmr.msrb.gmra.mxu3 %v2906_v6  ;;  %vm1892_vm13 = vcmp.gt.f32.partialorder %v1848_v9, 0.0  ;;  %v1936_v15 = vmul.f32 0.1, %v1848_v9  ;;  %v1851_v11 = vadd.f32 %v6022_v62, %v1801_v40 }
 0x35e   :  { %3343 = vmatpush.bf16.msra.mxu3 %v5297_v25 }
 0x35f   :  { %3180 = vmatpush.bf16.msra.mxu2 %v5275_v3  ;;  %v1980_v47 = vsel %vm1892_vm13, %v1848_v9, %v1936_v15  ;;  %v1939_v18 = vmul.f32 0.1, %v1851_v11  ;;  %vm1895_vm14 = vcmp.gt.f32.partialorder %v1851_v11, 0.0  ;;  %3851 = vmatpush.bf16.msra.mxu0 %v5344_v63  ;;  %v6172_v39 = vpop.f32.mrf.mxu1  ;;  %v6251_v9 = vld [vmem:[#allocation14_spill] sm:$0xff] }
 0x360   :  { %3194 = vmatpush.bf16.msra.mxu1 %v5283_v38  ;;  %v2011_v16 = vpack.c.bf16 %v1981_v42, %v1980_v47  ;;  %v1688_v31 = vpop.f32.mrf.mxu3  ;;  %v6170_v38 = vpop.f32.mrf.mxu2  ;;  %v1381_v40 = vadd.f32 %v6136_v59, %v6251_v9  ;;  %v5290_v42 = vld [vmem:[#allocation7 + $0x380] sm:$0xff] }
 0x361   :  { %v1800_v0 = vadd.f32 %v1688_v31, %v1376_v29  ;;  %v1983_v60 = vsel %vm1895_vm14, %v1851_v11, %v1939_v18  ;;  %v6252_v47 = vld [vmem:[#allocation15_spill] sm:$0xff]  ;;  %v5329_v31 = vld [vmem:[#allocation7 + $0x4b8] sm:$0xff] }
 0x362   :  { %3344 = vmatpush.bf16.msra.mxu3 %v5296_v37  ;;  %v3072_v34 = vunpack.c.l.b16 %v2011_v16  ;;  %v3073_v55 = vunpack.c.h.b16 %v2011_v16  ;;  %v1754_v54 = vpop.f32.mrf.mxu0  ;;  %v1447_v11 = vadd.f32 %v6151_v51, %v6252_v47 }
 0x363   :  { %3181 = vmatpush.bf16.msra.mxu2 %v5274_v46  ;;  %v1850_v53 = vadd.f32 %v6027_v57, %v1800_v0  ;;  %v1803_v2 = vadd.f32 %v1754_v54, %v1442_v45  ;;  %v5291_v46 = vld [vmem:[#allocation7 + $0x388] sm:$0xff]  ;;  %3852 = vmatpush.bf16.msra.mxu0 %v5343_v20 }
 0x364   :  { %3195 = vmatpush.bf16.msra.mxu1 %v5282_v27  ;;  %v3074_v56 = vpack.c.b16 %v3072_v34, %v3070_v43  ;;  %v3075_v33 = vpack.c.b16 %v3073_v55, %v3071_v21  ;;  %v5299_v21 = vld [vmem:[#allocation7 + $0x3c8] sm:$0xff]  ;;  %v5342_v34 = vld [vmem:[#allocation7 + $0x520] sm:$0xff] }
 0x365   :  { %vm1894_vm15 = vcmp.gt.f32.partialorder %v1850_v53, 0.0  ;;  %v1938_v49 = vmul.f32 0.1, %v1850_v53  ;;  %v1853_v6 = vadd.f32 %v6022_v62, %v1803_v2  ;;  %v5328_v2 = vld [vmem:[#allocation7 + $0x4b0] sm:$0xff] }
 0x366   :  { %3345 = vmatpush.bf16.msra.mxu3 %v5295_v5  ;;  %3182 = vmatmul.bf16.vlgmr.msra.gmra.mxu2 %v3074_v56 }
 0x367   :  { %3357 = vmatpush.bf16.msrb.mxu2 %v5305_v30  ;;  %3196 = vmatmul.bf16.vlgmr.msra.gmra.mxu1 %v3075_v33  ;;  %v1982_v25 = vsel %vm1894_vm15, %v1850_v53, %v1938_v49  ;;  %v1941_v26 = vmul.f32 0.1, %v1853_v6  ;;  %vm1897_vm9 = vcmp.gt.f32.partialorder %v1853_v6, 0.0  ;;  %v5300_v30 = vld [vmem:[#allocation7 + $0x3d0] sm:$0xff]  ;;  %v5298_v33 = vld [vmem:[#allocation7 + $0x3c0] sm:$0xff] }
 0x368   :  { %3526 = vmatpush.bf16.msrb.mxu1 %v5321_v8  ;;  %v2012_v3 = vpack.c.bf16 %v1983_v60, %v1982_v25  ;;  %v1690_v52 = vpop.f32.mrf.mxu3  ;;  %3853 = vmatpush.bf16.msra.mxu0 %v5342_v34  ;;  %v6182_v49 = vpop.f32.mrf.mxu2  ;;  %v5337_v25 = vld [vmem:[#allocation7 + $0x4f8] sm:$0xff] }
 0x369   :  { %v1802_v36 = vadd.f32 %v1690_v52, %v1378_v58  ;;  %v1985_v5 = vsel %vm1897_vm9, %v1853_v6, %v1941_v26  ;;  %v6184_v58 = vpop.f32.mrf.mxu1  ;;  %v5315_v6 = vld [vmem:[#allocation7 + $0x448] sm:$0xff]  ;;  %v6254_v52 = vld [vmem:[#allocation17_spill] sm:$0xff] }
 0x36a   :  { %3346 = vmatpush.bf16.msra.mxu3 %v5294_v1  ;;  %v1757_v14 = vpop.f32.mrf.mxu0  ;;  %v3239_v1 = vunpack.c.l.b16 %v2012_v3  ;;  %v3240_v45 = vunpack.c.h.b16 %v2012_v3  ;;  %v5336_v26 = vld [vmem:[#allocation7 + $0x4f0] sm:$0xff] }
 0x36b   :  { %3358 = vmatpush.bf16.msrb.mxu2 %v5304_v23  ;;  %v1852_v37 = vadd.f32 %v6027_v57, %v1802_v36  ;;  %v1805_v28 = vadd.f32 %v1757_v14, %v1445_v17  ;;  %v5317_v23 = vld [vmem:[#allocation7 + $0x458] sm:$0xff]  ;;  %v5340_v36 = vld [vmem:[#allocation7 + $0x510] sm:$0xff] }
 0x36c   :  { %3527 = vmatpush.bf16.msrb.mxu1 %v5320_v35  ;;  %v6253_v35 = vld [vmem:[#allocation16_spill] sm:$0xff] }
 0x36d   :  { %vm1896_vm0 = vcmp.gt.f32.partialorder %v1852_v37, 0.0  ;;  %v1940_v41 = vmul.f32 0.1, %v1852_v37  ;;  %v1855_v27 = vadd.f32 %v6022_v62, %v1805_v28  ;;  %v1383_v56 = vadd.f32 %v6147_v4, %v6253_v35  ;;  %v5353_v28 = vld [vmem:[#allocation7 + $0x578] sm:$0xff] }
 0x36e   :  { %3347 = vmatpush.bf16.msra.mxu3 %v5293_v12  ;;  %v5341_v12 = vld [vmem:[#allocation7 + $0x518] sm:$0xff]  ;;  %v1450_v4 = vadd.f32 %v6161_v50, %v6254_v52  ;;  %v5326_v50 = vld [vmem:[#allocation7 + $0x4a0] sm:$0xff] }
 0x36f   :  { %3359 = vmatpush.bf16.msrb.mxu2 %v5303_v32  ;;  %v1984_v15 = vsel %vm1896_vm0, %v1852_v37, %v1940_v41  ;;  %v1943_v55 = vmul.f32 0.1, %v1855_v27  ;;  %vm1899_vm1 = vcmp.gt.f32.partialorder %v1855_v27, 0.0  ;;  %3854 = vmatpush.bf16.msra.mxu0 %v5341_v12  ;;  %v5314_v37 = vld [vmem:[#allocation7 + $0x440] sm:$0xff]  ;;  %v5333_v12 = vld [vmem:[#allocation7 + $0x4d8] sm:$0xff] }
 0x370   :  { %3528 = vmatpush.bf16.msrb.mxu1 %v5319_v7  ;;  %v2013_v8 = vpack.c.bf16 %v1985_v5, %v1984_v15  ;;  %v1693_v29 = vpop.f32.mrf.mxu3  ;;  %v5335_v5 = vld [vmem:[#allocation7 + $0x4e8] sm:$0xff] }
 0x371   :  { %v1804_v16 = vadd.f32 %v1693_v29, %v1381_v40  ;;  %v6256_v29 = vld [vmem:[#allocation19_spill] sm:$0xff]  ;;  %v6197_v47 = vpop.f32.mrf.mxu1 }
 0x372   :  { %3348 = vmatpush.bf16.msra.mxu3 %v5292_v44  ;;  %v3241_v0 = vunpack.c.l.b16 %v2013_v8  ;;  %v3242_v59 = vunpack.c.h.b16 %v2013_v8  ;;  %v1759_v43 = vpop.f32.mrf.mxu0  ;;  %v6193_v8 = vpop.f32.mrf.mxu2 }
 0x373   :  { %3360 = vmatpush.bf16.msrb.mxu2 %v5302_v19  ;;  %v1854_v54 = vadd.f32 %v6027_v57, %v1804_v16  ;;  %v1807_v32 = vadd.f32 %v1759_v43, %v1447_v11  ;;  %v1987_v19 = vsel %vm1899_vm1, %v1855_v27, %v1943_v55  ;;  %3855 = vmatpush.bf16.msra.mxu0 %v5340_v36  ;;  %v5325_v11 = vld [vmem:[#allocation7 + $0x498] sm:$0xff]  ;;  %v5334_v55 = vld [vmem:[#allocation7 + $0x4e0] sm:$0xff] }
 0x374   :  { %3529 = vmatpush.bf16.msrb.mxu1 %v5318_v13  ;;  %v3243_v18 = vpack.c.b16 %v3241_v0, %v3239_v1  ;;  %v3244_v51 = vpack.c.b16 %v3242_v59, %v3240_v45  ;;  %v5338_v59 = vld [vmem:[#allocation7 + $0x500] sm:$0xff] }
 0x375   :  { %vm1898_vm2 = vcmp.gt.f32.partialorder %v1854_v54, 0.0  ;;  %v1942_v53 = vmul.f32 0.1, %v1854_v54  ;;  %v1857_v60 = vadd.f32 %v6022_v62, %v1807_v32  ;;  %v5351_v32 = vld [vmem:[#allocation7 + $0x568] sm:$0xff] }
 0x376   :  { %3349 = vmatpush.bf16.msra.mxu3 %v5291_v46  ;;  %v6255_v46 = vld [vmem:[#allocation18_spill] sm:$0xff] }
 0x377   :  { %3361 = vmatpush.bf16.msrb.mxu2 %v5301_v61  ;;  %v1986_v24 = vsel %vm1898_vm2, %v1854_v54, %v1942_v53  ;;  %v1945_v14 = vmul.f32 0.1, %v1857_v60  ;;  %vm1901_vm3 = vcmp.gt.f32.partialorder %v1857_v60, 0.0  ;;  %v1386_v41 = vadd.f32 %v6159_v22, %v6255_v46  ;;  %v6257_v53 = vld [vmem:[#allocation20_spill] sm:$0xff] }
 0x378   :  { %3530 = vmatpush.bf16.msrb.mxu1 %v5317_v23  ;;  %v2014_v7 = vpack.c.bf16 %v1987_v19, %v1986_v24  ;;  %v1695_v3 = vpop.f32.mrf.mxu3  ;;  %v5352_v23 = vld [vmem:[#allocation7 + $0x570] sm:$0xff] }
 0x379   :  { %v1806_v44 = vadd.f32 %v1695_v3, %v1383_v56  ;;  %v1989_v20 = vsel %vm1901_vm3, %v1857_v60, %v1945_v14  ;;  %v5350_v60 = vld [vmem:[#allocation7 + $0x560] sm:$0xff]  ;;  %v5332_v14 = vld [vmem:[#allocation7 + $0x4d0] sm:$0xff] }
 0x37a   :  { %3350 = vmatpush.bf16.msra.mxu3 %v5290_v42  ;;  %v1762_v17 = vpop.f32.mrf.mxu0  ;;  %v1452_v42 = vadd.f32 %v6172_v39, %v6256_v29  ;;  %v3408_v16 = vunpack.c.l.b16 %v2014_v7 }
 0x37b   :  { %3362 = vmatpush.bf16.msrb.mxu2 %v5300_v30  ;;  %v1856_v61 = vadd.f32 %v6027_v57, %v1806_v44  ;;  %v1809_v63 = vadd.f32 %v1762_v17, %v1450_v4  ;;  %v5339_v30 = vld [vmem:[#allocation7 + $0x508] sm:$0xff] }
 0x37c   :  { %3531 = vmatpush.bf16.msrb.mxu1 %v5316_v10  ;;  %3856 = vmatpush.bf16.msra.mxu0 %v5339_v30  ;;  %v5323_v4 = vld [vmem:[#allocation7 + $0x488] sm:$0xff] }
 0x37d   :  { %3351 = vmatmul.bf16.vlgmr.msra.gmra.mxu3 %v3243_v18  ;;  %vm1900_vm5 = vcmp.gt.f32.partialorder %v1856_v61, 0.0  ;;  %v1944_v13 = vmul.f32 0.1, %v1856_v61  ;;  %v1859_v40 = vadd.f32 %v6022_v62, %v1809_v63  ;;  %v5324_v18 = vld [vmem:[#allocation7 + $0x490] sm:$0xff]  ;;  %v5349_v63 = vld [vmem:[#allocation7 + $0x558] sm:$0xff] }
 0x37e   :  { %3681 = vmatpush.bf16.msrb.mxu3 %v5329_v31  ;;  %v3409_v31 = vunpack.c.h.b16 %v2014_v7 }
 0x37f   :  { %3363 = vmatpush.bf16.msrb.mxu2 %v5299_v21  ;;  %v1988_v9 = vsel %vm1900_vm5, %v1856_v61, %v1944_v13  ;;  %v1947_v43 = vmul.f32 0.1, %v1859_v40  ;;  %vm1903_vm6 = vcmp.gt.f32.partialorder %v1859_v40, 0.0 }
 0x380   :  { %3532 = vmatpush.bf16.msrb.mxu1 %v5315_v6  ;;  %v2015_v15 = vpack.c.bf16 %v1989_v20, %v1988_v9  ;;  %v1698_v27 = vpop.f32.mrf.mxu3  ;;  %3857 = vmatpush.bf16.msra.mxu0 %v5338_v59  ;;  %v5348_v9 = vld [vmem:[#allocation7 + $0x550] sm:$0xff] }
 0x381   :  { %v1808_v22 = vadd.f32 %v1698_v27, %v1386_v41  ;;  %v1991_v35 = vsel %vm1903_vm6, %v1859_v40, %v1947_v43  ;;  %v5331_v41 = vld [vmem:[#allocation7 + $0x4c8] sm:$0xff]  ;;  %v6260_v40 = vld [vmem:[#allocation23_spill] sm:$0xff] }
 0x382   :  { %3682 = vmatpush.bf16.msrb.mxu3 %v5328_v2  ;;  %v3410_v1 = vunpack.c.l.b16 %v2015_v15  ;;  %v3411_v45 = vunpack.c.h.b16 %v2015_v15  ;;  %v1764_v0 = vpop.f32.mrf.mxu0  ;;  %v1388_v2 = vadd.f32 %v6170_v38, %v6257_v53  ;;  %v5346_v53 = vld [vmem:[#allocation7 + $0x540] sm:$0xff] }
 0x383   :  { %3364 = vmatpush.bf16.msrb.mxu2 %v5298_v33  ;;  %v1858_v21 = vadd.f32 %v6027_v57, %v1808_v22  ;;  %v1811_v34 = vadd.f32 %v1764_v0, %v1452_v42  ;;  %v2185_v7 = vpop.f32.mrf.mxu1  ;;  %v5330_v0 = vld [vmem:[#allocation7 + $0x4c0] sm:$0xff] }
 0x384   :  { %3533 = vmatpush.bf16.msrb.mxu1 %v5314_v37  ;;  %v3412_v54 = vpack.c.b16 %v3410_v1, %v3408_v16  ;;  %v3413_v39 = vpack.c.b16 %v3411_v45, %v3409_v31  ;;  %v6259_v37 = vld [vmem:[#allocation22_spill] sm:$0xff] }
 0x385   :  { %vm1902_vm7 = vcmp.gt.f32.partialorder %v1858_v21, 0.0  ;;  %v1946_v10 = vmul.f32 0.1, %v1858_v21  ;;  %v1861_v33 = vadd.f32 %v6022_v62, %v1811_v34 }
 0x386   :  { %3365 = vmatmul.bf16.vlgmr.msrb.gmra.mxu2 %v3244_v51  ;;  %3683 = vmatpush.bf16.msrb.mxu3 %v5327_v48  ;;  %v5431_v51 = vld [vmem:[%s6236_s8] ss:$0 sm:$0xff]  ;;  %s5518_s8 = smov [#allocation9]  }
 0x387   :  { %3695 = vmatpush.bf16.msra.mxu2 %v5337_v25  ;;  %3520 = vmatmul.bf16.vlgmr.msrb.gmra.mxu0 %v3412_v54  ;;  %v1990_v56 = vsel %vm1902_vm7, %v1858_v21, %v1946_v10  ;;  %v6258_v25 = vld [vmem:[#allocation21_spill] sm:$0xff]  ;;  %v1949_v48 = vmul.f32 0.1, %v1861_v33  ;;  %vm1905_vm8 = vcmp.gt.f32.partialorder %v1861_v33, 0.0  ;;  %v5347_v21 = vld [vmem:[#allocation7 + $0x548] sm:$0xff]  ;;  %s3886_s2 = sshll.u32 %s5518_s8, 4  ;;  %s3887_s2 = int_to_ptr.vmem [resolvable:$true] %s3886_s2 }
 0x388   :  { %3864 = vmatpush.bf16.msra.mxu1 %v5353_v28  ;;  %v2016_v19 = vpack.c.bf16 %v1991_v35, %v1990_v56  ;;  %v1700_v24 = vpop.f32.mrf.mxu3  ;;  %v1455_v6 = vadd.f32 %v6184_v58, %v6258_v25  ;;  %v1391_v28 = vadd.f32 %v6182_v49, %v6259_v37 }
 0x389   :  { %3534 = vmatmul.bf16.vlgmr.msrb.gmra.mxu1 %v3413_v39  ;;  %v1810_v3 = vadd.f32 %v1700_v24, %v1388_v2  ;;  %v2171_v52 = vpop.f32.mrf.mxu2  ;;  %v1993_v13 = vsel %vm1905_vm8, %v1861_v33, %v1949_v48 }
 0x38a   :  { %3684 = vmatpush.bf16.msrb.mxu3 %v5326_v50  ;;  %v2172_v44 = vadd.f32 %v5431_v51, %v2171_v52  ;;  %v1767_v38 = vpop.f32.mrf.mxu0  ;;  %v3577_v15 = vunpack.c.l.b16 %v2016_v19  ;;  %v3578_v29 = vunpack.c.h.b16 %v2016_v19 }
 0x38b   :  { %3696 = vmatpush.bf16.msra.mxu2 %v5336_v26  ;;  %v1860_v17 = vadd.f32 %v6027_v57, %v1810_v3  ;;  %v1813_v36 = vadd.f32 %v1767_v38, %v1455_v6  ;;  %v5322_v26 = vld [vmem:[#allocation7 + $0x480] sm:$0xff]  ;;  %v2187_v31 = vpop.f32.mrf.mxu1 }
 0x38c   :  { %3865 = vmatpush.bf16.msra.mxu1 %v5352_v23  ;;  %v6209_v61 = vadd.f32 %v2185_v7, %v2172_v44 }
 0x38d   :  { %vm1904_vm10 = vcmp.gt.f32.partialorder %v1860_v17, 0.0  ;;  %v1948_v58 = vmul.f32 0.1, %v1860_v17  ;;  %v1863_v46 = vadd.f32 %v6022_v62, %v1813_v36 }
 0x38e   :  { %3685 = vmatpush.bf16.msrb.mxu3 %v5325_v11 }
 0x38f   :  { %3697 = vmatpush.bf16.msra.mxu2 %v5335_v5  ;;  %v1992_v50 = vsel %vm1904_vm10, %v1860_v17, %v1948_v58  ;;  %v1457_v5 = vadd.f32 %v6197_v47, %v6260_v40  ;;  %v1951_v16 = vmul.f32 0.1, %v1863_v46  ;;  %vm1907_vm11 = vcmp.gt.f32.partialorder %v1863_v46, 0.0 }
 0x390   :  { %3866 = vmatpush.bf16.msra.mxu1 %v5351_v32  ;;  %v2017_v30 = vpack.c.bf16 %v1993_v13, %v1992_v50  ;;  %v1703_v20 = vpop.f32.mrf.mxu3 }
 0x391   :  { %v1812_v27 = vadd.f32 %v1703_v20, %v1391_v28  ;;  %v2173_v23 = vpop.f32.mrf.mxu2  ;;  %v1995_v39 = vsel %vm1907_vm11, %v1863_v46, %v1951_v16 }
 0x392   :  { %3686 = vmatpush.bf16.msrb.mxu3 %v5324_v18  ;;  %v3579_v42 = vunpack.c.l.b16 %v2017_v30  ;;  %v3580_v49 = vunpack.c.h.b16 %v2017_v30  ;;  %v2174_v22 = vadd.f32 %v5431_v51, %v2173_v23  ;;  %v1769_v11 = vpop.f32.mrf.mxu0 }
 0x393   :  { %3698 = vmatpush.bf16.msra.mxu2 %v5334_v55  ;;  %v1862_v1 = vadd.f32 %v6027_v57, %v1812_v27  ;;  %v1815_v45 = vadd.f32 %v1769_v11, %v1457_v5  ;;  %v6261_v55 = vld [vmem:[#allocation24_spill] sm:$0xff] }
 0x394   :  { %3867 = vmatpush.bf16.msra.mxu1 %v5350_v60  ;;  %v2188_v59 = vadd.f32 %v2187_v31, %v2174_v22  ;;  %v3581_v43 = vpack.c.b16 %v3579_v42, %v3577_v15  ;;  %v3582_v47 = vpack.c.b16 %v3580_v49, %v3578_v29  ;;  %v1393_v54 = vadd.f32 %v6193_v8, %v6261_v55 }
 0x395   :  { %vm1906_vm12 = vcmp.gt.f32.partialorder %v1862_v1, 0.0  ;;  %v1950_v34 = vmul.f32 0.1, %v1862_v1  ;;  %v1865_v10 = vadd.f32 %v6022_v62, %v1815_v45 }
 0x396   :  { %3687 = vmatpush.bf16.msrb.mxu3 %v5323_v4 }
 0x397   :  { %3699 = vmatpush.bf16.msra.mxu2 %v5333_v12  ;;  %v1994_v32 = vsel %vm1906_vm12, %v1862_v1, %v1950_v34  ;;  %v1953_v35 = vmul.f32 0.1, %v1865_v10  ;;  %vm1909_vm4 = vcmp.gt.f32.partialorder %v1865_v10, 0.0 }
 0x398   :  { %3868 = vmatpush.bf16.msra.mxu1 %v5349_v63  ;;  %v2018_v18 = vpack.c.bf16 %v1995_v39, %v1994_v32  ;;  %v1705_v51 = vpop.f32.mrf.mxu3 }
 0x399   :  { %v1814_v2 = vadd.f32 %v1705_v51, %v1393_v54  ;;  %v2352_v12 = vpop.f32.mrf.mxu2  ;;  %v1997_v8 = vsel %vm1909_vm4, %v1865_v10, %v1953_v35 }
 0x39a   :  { %3688 = vmatpush.bf16.msrb.mxu3 %v5322_v26  ;;  %v3746_v25 = vunpack.c.l.b16 %v2018_v18  ;;  %v3747_v6 = vunpack.c.h.b16 %v2018_v18 }
 0x39b   :  { %3700 = vmatpush.bf16.msra.mxu2 %v5332_v14  ;;  %v1864_v56 = vadd.f32 %v6027_v57, %v1814_v2 }
 0x39c   :  { %3869 = vmatpush.bf16.msra.mxu1 %v5348_v9 }
 0x39d   :  { %3689 = vmatmul.bf16.vlgmr.msrb.gmra.mxu3 %v3581_v43  ;;  %vm1908_vm13 = vcmp.gt.f32.partialorder %v1864_v56, 0.0  ;;  %v1952_v33 = vmul.f32 0.1, %v1864_v56 }
 0x39f   :  { %3701 = vmatpush.bf16.msra.mxu2 %v5331_v41  ;;  %v1996_v19 = vsel %vm1908_vm13, %v1864_v56, %v1952_v33 }
 0x3a0   :  { %3870 = vmatpush.bf16.msra.mxu1 %v5347_v21  ;;  %v2019_v24 = vpack.c.bf16 %v1997_v8, %v1996_v19  ;;  %v2338_v60 = vpop.f32.mrf.mxu3 }
 0x3a1   :  { %v2353_v62 = vadd.f32 %v2352_v12, %v2338_v60  ;;  %v2354_v57 = vpop.f32.mrf.mxu2 }
 0x3a2   :  { %v3748_v7 = vunpack.c.l.b16 %v2019_v24  ;;  %v3749_v3 = vunpack.c.h.b16 %v2019_v24 }
 0x3a3   :  { %3702 = vmatpush.bf16.msra.mxu2 %v5330_v0  ;;  %v2357_v52 = vadd.f32 %v2353_v62, %v6209_v61  ;;  %v2507_v36 = vpop.f32.mrf.mxu1 }
 0x3a4   :  { %3871 = vmatpush.bf16.msra.mxu1 %v5346_v53  ;;  %v3750_v4 = vpack.c.b16 %v3748_v7, %v3746_v25  ;;  %v3751_v44 = vpack.c.b16 %v3749_v3, %v3747_v6 }
 0x3a6   :  { %3703 = vmatmul.bf16.vlgmr.msra.gmra.mxu2 %v3582_v47  ;;  %3858 = vmatmul.bf16.vlgmr.msra.gmra.mxu0 %v3750_v4 }
 0x3a7   :  { %3872 = vmatmul.bf16.vlgmr.msra.gmra.mxu1 %v3751_v44 }
 0x3a8   :  { %v2340_v38 = vpop.f32.mrf.mxu3 }
 0x3a9   :  { %v2355_v48 = vadd.f32 %v2354_v57, %v2340_v38 }
 0x3ab   :  { %v2358_v17 = vadd.f32 %v2355_v48, %v2188_v59  ;;  %v2509_v26 = vpop.f32.mrf.mxu1 }
 0x3b0   :  { %v2521_v14 = vpop.f32.mrf.mxu3 }
 0x3b1   :  { %v2522_v63 = vadd.f32 %v2521_v14, %v2507_v36 }
 0x3b3   :  { %v2526_v58 = vadd.f32 %v2522_v63, %v2357_v52 }
 0x3b4   :  { %v2690_v46 = vpop.f32.mrf.mxu1 }
 0x3b8   :  { %v2523_v37 = vpop.f32.mrf.mxu3 }
 0x3b9   :  { %v2524_v28 = vadd.f32 %v2523_v37, %v2509_v26  ;;  %v2676_v50 = vpop.f32.mrf.mxu2 }
 0x3ba   :  { %v2691_v45 = vadd.f32 %v2690_v46, %v2676_v50 }
 0x3bb   :  { %v2527_v13 = vadd.f32 %v2524_v28, %v2358_v17 }
 0x3bc   :  { %v2692_v61 = vpop.f32.mrf.mxu1  ;;  %v2695_v47 = vadd.f32 %v2691_v45, %v2526_v58 }
 0x3c1   :  { %v2678_v41 = vpop.f32.mrf.mxu2 }
 0x3c2   :  { %v2693_v32 = vadd.f32 %v2692_v61, %v2678_v41 }
 0x3c4   :  { %v2696_v33 = vadd.f32 %v2693_v32, %v2527_v13 }
 0x3c9   :  { %v2859_v20 = vpop.f32.mrf.mxu2 }
 0x3ca   :  { %v2845_v30 = vpop.f32.mrf.mxu3 }
 0x3cb   :  { %v2860_v43 = vadd.f32 %v2859_v20, %v2845_v30 }
 0x3cd   :  { %v2864_v34 = vadd.f32 %v2860_v43, %v2695_v47 }
 0x3d1   :  { %v2861_v5 = vpop.f32.mrf.mxu2 }
 0x3d2   :  { %v2847_v40 = vpop.f32.mrf.mxu3 }
 0x3d3   :  { %v3014_v9 = vpop.f32.mrf.mxu1  ;;  %v2862_v2 = vadd.f32 %v2861_v5, %v2847_v40 }
 0x3d5   :  { %v2865_v24 = vadd.f32 %v2862_v2, %v2696_v33 }
 0x3db   :  { %v3016_v15 = vpop.f32.mrf.mxu1 }
 0x3e0   :  { %v3028_v27 = vpop.f32.mrf.mxu3 }
 0x3e1   :  { %v3029_v21 = vadd.f32 %v3028_v27, %v3014_v9 }
 0x3e3   :  { %v3033_v10 = vadd.f32 %v3029_v21, %v2864_v34 }
 0x3e4   :  { %v3197_v29 = vpop.f32.mrf.mxu1 }
 0x3e8   :  { %v3030_v42 = vpop.f32.mrf.mxu3 }
 0x3e9   :  { %v3183_v23 = vpop.f32.mrf.mxu2  ;;  %v3031_v12 = vadd.f32 %v3030_v42, %v3016_v15 }
 0x3ea   :  { %v3198_v55 = vadd.f32 %v3197_v29, %v3183_v23 }
 0x3eb   :  { %v3034_v7 = vadd.f32 %v3031_v12, %v2865_v24 }
 0x3ec   :  { %v3199_v22 = vpop.f32.mrf.mxu1  ;;  %v3202_v35 = vadd.f32 %v3198_v55, %v3033_v10 }
 0x3f1   :  { %v3185_v49 = vpop.f32.mrf.mxu2 }
 0x3f2   :  { %v3200_v60 = vadd.f32 %v3199_v22, %v3185_v49 }
 0x3f4   :  { %v3203_v57 = vadd.f32 %v3200_v60, %v3034_v7 }
 0x400   :  { %v3352_v11 = vpop.f32.mrf.mxu3 }
 0x404   :  { %v3521_v31 = vpop.f32.mrf.mxu0 }
 0x406   :  { %v3535_v1 = vpop.f32.mrf.mxu1 }
 0x407   :  { %v3536_v56 = vadd.f32 %v3535_v1, %v3521_v31 }
 0x408   :  { %v3354_v0 = vpop.f32.mrf.mxu3 }
 0x409   :  { %v3366_v16 = vpop.f32.mrf.mxu2 }
 0x40a   :  { %v3367_v18 = vadd.f32 %v3366_v16, %v3352_v11 }
 0x40c   :  { %v3523_v54 = vpop.f32.mrf.mxu0  ;;  %v3371_v8 = vadd.f32 %v3367_v18, %v3202_v35 }
 0x40e   :  { %v3537_v39 = vpop.f32.mrf.mxu1  ;;  %v3540_v62 = vadd.f32 %v3536_v56, %v3371_v8 }
 0x40f   :  { %v3538_v38 = vadd.f32 %v3537_v39, %v3523_v54 }
 0x411   :  { %v3368_v59 = vpop.f32.mrf.mxu2 }
 0x412   :  { %v3369_v3 = vadd.f32 %v3368_v59, %v3354_v0 }
 0x414   :  { %v3372_v36 = vadd.f32 %v3369_v3, %v3203_v57 }
 0x416   :  { %v3541_v63 = vadd.f32 %v3538_v38, %v3372_v36 }
 0x420   :  { %v3690_v51 = vpop.f32.mrf.mxu3 }
 0x423   :  { %v3859_v25 = vpop.f32.mrf.mxu0 }
 0x424   :  { %v3873_v6 = vpop.f32.mrf.mxu1 }
 0x425   :  { %v3874_v4 = vadd.f32 %v3873_v6, %v3859_v25 }
 0x428   :  { %v3692_v17 = vpop.f32.mrf.mxu3 }
 0x429   :  { %v3704_v53 = vpop.f32.mrf.mxu2 }
 0x42a   :  { %v3705_v19 = vadd.f32 %v3704_v53, %v3690_v51 }
 0x42b   :  { %v3861_v58 = vpop.f32.mrf.mxu0 }
 0x42c   :  { %v3709_v52 = vadd.f32 %v3705_v19, %v3540_v62  ;;  %v3875_v26 = vpop.f32.mrf.mxu1 }
 0x42d   :  { %v3876_v28 = vadd.f32 %v3875_v26, %v3861_v58 }
 0x42e   :  { %v3878_v48 = vadd.f32 %v3874_v4, %v3709_v52 }
 0x430   :  { %3880 = vst [vmem:[#allocation9] sm:$0xff] %v3878_v48 }
 0x431   :  { %v3706_v44 = vpop.f32.mrf.mxu2 }
 0x432   :  { %v3707_v14 = vadd.f32 %v3706_v44, %v3692_v17 }
 0x434   :  { %v3710_v37 = vadd.f32 %v3707_v14, %v3541_v63 }
 0x436   :  { %v3879_v13 = vadd.f32 %v3876_v28, %v3710_v37 }
 0x438   :  { %3881 = vst [vmem:[#allocation9 + $0x8] sm:$0xff] %v3879_v13 }
 0x439   :  { %3894 = dma.vmem_to_hbm [thread:$0]  %s3887_s2, 256, %s3889_s15, [#allocation6], %s5511_s17, %s5511_s17, %s5512_s18  }
 0x43a   :  { %5508 = dma.done.wait [#allocation6], 256  }
 0x43b   :  { %5509 = vsyncadd [#allocation6], 4294967040 }
 0x43c   :  { %3899 = vsyncpa [#allocation5], 1 }
 0x43d   :  { %3900 = vsyncpa [#allocation8], 1 }
 0x43e   :  { %3901 = vsyncpa [#allocation6], 1 }

</bundles_post_ra>
